<compile_context>
chip_gen: v7x
topology: tpu7x:2x2x1
jax: 0.10.0
libtpu: 0.0.40
codegen_flags: <defaults>
</compile_context>

<pallas_src>
import functools

import jax
import jax.numpy as jnp
import numpy as np
from jax.experimental import pallas as pl
from jax.experimental.pallas import tpu as pltpu


def _rup(x, m):
    return (x + m - 1) // m * m


# ---------------------------------------------------------------------------
# Pallas kernel: fused 3x3 conv (+ bias, + pre-ReLU on input, + residual adds)
# ---------------------------------------------------------------------------
def _conv3x3_kernel(p_ref, w_ref, b_ref, *rest, n_res, input_relu, wp):
    """One (row-block, cout-tile) step of a 3x3 / stride-1 / pad-1 convolution.

    p_ref : ((R+2)*Wp, 3*Cin) bf16  W-im2col'd input rows incl. 1-row halo.
    w_ref : (3, 3*Cin, TN)    bf16  weights, one (3*Cin, TN) matrix per row tap.
    b_ref : (1, TN)           f32   bias.
    rest  : n_res residual refs of shape (R*Wp, TN) f32, then the output ref.
    """
    o_ref = rest[n_res]
    res_refs = rest[:n_res]
    m = o_ref.shape[0]                       # R * Wp output rows

    acc = jnp.zeros(o_ref.shape, jnp.float32)
    for dy in range(3):                      # unrolled row taps -> bf16 MXU dots
        a = p_ref[dy * wp: dy * wp + m, :]
        if input_relu:
            a = jnp.maximum(a, 0)            # pre-activation ReLU, fused (VPU)
        acc = acc + jax.lax.dot_general(
            a, w_ref[dy],
            dimension_numbers=(((1,), (0,)), ((), ())),
            preferred_element_type=jnp.float32)

    y = acc + b_ref[...]                     # bias
    for r in res_refs:                       # fused residual adds (f32)
        y = y + r[...]
    o_ref[...] = y


def _pad_nhwc(x, hp, wp, cp):
    n, h, w, c = x.shape
    return jnp.pad(x, ((0, 0), (0, hp - h), (0, wp - w), (0, cp - c)))


def conv3x3_pallas(x, conv_p, *, input_relu=False, residuals=()):
    """x: (N, H, W, Cin) f32 NHWC.  Returns (N, H, W, Cout) f32."""
    n, h, wd, c = x.shape
    wmat, bias, cout = conv_p['w'], conv_p['b'], conv_p['cout']
    coutp = wmat.shape[-1]
    assert wmat.shape[1] == 3 * c, (wmat.shape, c)

    r_tile = h if h <= 32 else 16                       # output rows per block
    hp = _rup(h, r_tile)
    ht = hp // r_tile
    wp = _rup(wd, 8)                                    # sublane multiple of 8
    if coutp <= 128:
        tn = coutp
    else:
        tn = 256 if coutp % 256 == 0 else 128
    m_out = r_tile * wp
    m_in = (r_tile + 2) * wp

    # --- W-only im2col (3x), bf16, with 1-row halo on H --------------------
    xb = x.astype(jnp.bfloat16)
    xpad = jnp.pad(xb, ((0, 0), (1, 1), (1, 1), (0, 0)))          # (N,H+2,W+2,C)
    patches = jnp.concatenate(
        [xpad[:, :, dx:dx + wd, :] for dx in range(3)], axis=-1)  # (N,H+2,W,3C)
    patches = jnp.pad(
        patches, ((0, 0), (0, hp - h), (0, wp - wd), (0, 0)))     # (N,Hp+2,Wp,3C)
    if ht > 1:                                                    # halo'd row blocks
        rows = jnp.arange(ht)[:, None] * r_tile + jnp.arange(r_tile + 2)[None, :]
        patches = patches[:, rows]                                # (N,HT,R+2,Wp,3C)
    p_mat = patches.reshape(n * ht * m_in, 3 * c)

    res_flat = tuple(
        _pad_nhwc(rr, hp, wp, coutp).reshape(n * hp * wp, coutp) for rr in residuals)
    n_res = len(residuals)

    grid = (n * ht, coutp // tn)
    in_specs = [
        pl.BlockSpec((m_in, 3 * c), lambda g, j: (g, 0)),
        pl.BlockSpec((3, 3 * c, tn), lambda g, j: (0, 0, j)),
        pl.BlockSpec((1, tn), lambda g, j: (0, j)),
    ] + [pl.BlockSpec((m_out, tn), lambda g, j: (g, j)) for _ in range(n_res)]

    out = pl.pallas_call(
        functools.partial(_conv3x3_kernel, n_res=n_res,
                          input_relu=input_relu, wp=wp),
        grid=grid,
        in_specs=in_specs,
        out_specs=pl.BlockSpec((m_out, tn), lambda g, j: (g, j)),
        out_shape=jax.ShapeDtypeStruct((n * hp * wp, coutp), jnp.float32),
        compiler_params=pltpu.CompilerParams(
            dimension_semantics=("parallel", "parallel")),
    )(p_mat, wmat, bias, *res_flat)

    return out.reshape(n, hp, wp, coutp)[:, :h, :wd, :cout]


# ---------------------------------------------------------------------------
# Bilinear 2x upsample (align_corners=False), NHWC.  Plain JAX (see TODO above).
# ---------------------------------------------------------------------------
def upsample2x_bilinear(x):
    def up1(a, axis):
        nn = a.shape[axis]
        idx = jnp.arange(nn)
        prev = jnp.take(a, jnp.maximum(idx - 1, 0), axis=axis)
        nxt = jnp.take(a, jnp.minimum(idx + 1, nn - 1), axis=axis)
        even = 0.25 * prev + 0.75 * a
        odd = 0.75 * a + 0.25 * nxt
        out = jnp.stack([even, odd], axis=axis + 1)
        return out.reshape(a.shape[:axis] + (2 * nn,) + a.shape[axis + 1:])

    return up1(up1(x, 1), 2)


# ---------------------------------------------------------------------------
# Parameters (deterministic synthetic init, PyTorch Conv2d-style)
# ---------------------------------------------------------------------------
def _init_conv(key, cin, cout):
    kw, kb = jax.random.split(key)
    fan_in = cin * 9
    w = jax.random.normal(kw, (cout, cin, 3, 3), jnp.float32) * np.sqrt(2.0 / fan_in)
    bound = 1.0 / np.sqrt(fan_in)
    b = jax.random.uniform(kb, (cout,), jnp.float32, minval=-bound, maxval=bound)
    return w, b


def _format_conv(w, b):
    """Pre-transform a (Cout,Cin,3,3) torch-layout weight once, outside jit."""
    cout, cin, _, _ = w.shape
    coutp = cout if cout <= 128 else _rup(cout, 128)
    wmat = jnp.transpose(w, (2, 3, 1, 0)).reshape(3, 3 * cin, cout)  # (dy, dx*Cin+ci, co)
    bp = b
    if coutp != cout:
        wmat = jnp.pad(wmat, ((0, 0), (0, 0), (0, coutp - cout)))
        bp = jnp.pad(b, (0, coutp - cout))
    return {'w': wmat.astype(jnp.bfloat16),
            'b': bp.reshape(1, coutp).astype(jnp.float32),
            'cout': cout}


def make_raw_params(key, inplanes, planes):
    ks = jax.random.split(key, 5)
    return {
        'convFS': _init_conv(ks[0], inplanes, planes),
        'resFS1': _init_conv(ks[1], planes, planes),
        'resFS2': _init_conv(ks[2], planes, planes),
        'resMM1': _init_conv(ks[3], planes, planes),
        'resMM2': _init_conv(ks[4], planes, planes),
    }


def format_params(raw):
    return {k: _format_conv(w, b) for k, (w, b) in raw.items()}


# ---------------------------------------------------------------------------
# Forward passes
# ---------------------------------------------------------------------------
def refine_forward_pallas(f_nchw, pm_nchw, params):
    f = jnp.transpose(f_nchw, (0, 2, 3, 1))                       # NCHW -> NHWC
    pm = jnp.transpose(pm_nchw, (0, 2, 3, 1))
    s0 = conv3x3_pallas(f, params['convFS'], input_relu=False)    # convFS(f)
    r1 = conv3x3_pallas(s0, params['resFS1'], input_relu=True)    # ResFS.conv1(relu(.))
    up = upsample2x_bilinear(pm)
    # m0 = s0 + ResFS.conv2(relu(r1)) + upsample(pm)   (both adds fused in epilogue)
    m0 = conv3x3_pallas(r1, params['resFS2'], input_relu=True, residuals=(s0, up))
    r3 = conv3x3_pallas(m0, params['resMM1'], input_relu=True)    # ResMM.conv1(relu(.))
    m = conv3x3_pallas(r3, params['resMM2'], input_relu=True, residuals=(m0,))
    return jnp.transpose(m, (0, 3, 1, 2))                         # NHWC -> NCHW


def _conv3x3_ref(x, w, b):
    y = jax.lax.conv_general_dilated(
        x.astype(jnp.bfloat16),
        jnp.transpose(w, (2, 3, 1, 0)).astype(jnp.bfloat16),
        window_strides=(1, 1), padding=[(1, 1), (1, 1)],
        dimension_numbers=('NHWC', 'HWIO', 'NHWC'),
        preferred_element_type=jnp.float32)
    return y + b.reshape(1, 1, 1, -1)


def refine_forward_ref(f_nchw, pm_nchw, raw):
    f = jnp.transpose(f_nchw, (0, 2, 3, 1))
    pm = jnp.transpose(pm_nchw, (0, 2, 3, 1))
    s0 = _conv3x3_ref(f, *raw['convFS'])
    r = _conv3x3_ref(jnp.maximum(s0, 0.0), *raw['resFS1'])
    r = _conv3x3_ref(jnp.maximum(r, 0.0), *raw['resFS2'])
    s = s0 + r
    m0 = s + upsample2x_bilinear(pm)
    r = _conv3x3_ref(jnp.maximum(m0, 0.0), *raw['resMM1'])
    r = _conv3x3_ref(jnp.maximum(r, 0.0), *raw['resMM2'])
    m = m0 + r
    return jnp.transpose(m, (0, 3, 1, 2))


# ---------------------------------------------------------------------------
if __name__ == "__main__":
    key = jax.random.PRNGKey(0)
    kp, kf, km = jax.random.split(key, 3)

    N, inplanes, planes, H, W = 2, 64, 32, 16, 16
    raw = make_raw_params(kp, inplanes, planes)
    params = format_params(raw)

    f_in = jax.random.normal(kf, (N, inplanes, H, W), jnp.float32)
    pm_in = jax.random.normal(km, (N, planes, H // 2, W // 2), jnp.float32)

    fwd = jax.jit(lambda a, b: refine_forward_pallas(a, b, params))
    out = jax.block_until_ready(fwd(f_in, pm_in))

    ref = refine_forward_ref(f_in, pm_in, raw)

    assert out.shape == (N, planes, H, W), out.shape
    np.testing.assert_allclose(np.asarray(out), np.asarray(ref), rtol=2e-3, atol=2e-3)
    print("KERNEL_OK")
</pallas_src>

<mosaic_0001>
module attributes {stable_mosaic.version = 11 : i64} {
  func.func @_conv3x3_kernel(%arg0: i32, %arg1: i32, %arg2: memref<288x192xbf16, #tpu.memory_space<vmem>>, %arg3: memref<3x192x32xbf16, #tpu.memory_space<vmem>>, %arg4: memref<1x32xf32, #tpu.memory_space<vmem>>, %arg5: memref<256x32xf32, #tpu.memory_space<vmem>>) attributes {dimension_semantics = [#tpu.dimension_semantics<parallel>, #tpu.dimension_semantics<parallel>], iteration_bounds = array<i64: 2, 1>, scalar_prefetch = 0 : i64, scratch_operands = 0 : i64, tpu.core_type = #tpu.core_type<tc>, window_params = [{transform_indices = @transform_0, window_bounds = array<i64: 288, 192>}, {transform_indices = @transform_1, window_bounds = array<i64: 3, 192, 32>}, {transform_indices = @transform_2, window_bounds = array<i64: 1, 32>}, {transform_indices = @transform_3, window_bounds = array<i64: 256, 32>}]} {
    %cst = arith.constant 0.000000e+00 : f32
    %0 = vector.broadcast %cst : f32 to vector<256x32xf32>
    %c0 = arith.constant 0 : index
    %c0_0 = arith.constant 0 : index
    %1 = vector.load %arg2[%c0, %c0_0] : memref<288x192xbf16, #tpu.memory_space<vmem>>, vector<256x192xbf16>
    %c0_1 = arith.constant 0 : index
    %c0_2 = arith.constant 0 : index
    %c0_3 = arith.constant 0 : index
    %2 = vector.load %arg3[%c0_1, %c0_2, %c0_3] : memref<3x192x32xbf16, #tpu.memory_space<vmem>>, vector<1x192x32xbf16>
    %3 = vector.shape_cast %2 : vector<1x192x32xbf16> to vector<192x32xbf16>
    %cst_4 = arith.constant dense<0.000000e+00> : vector<256x32xf32>
    %4 = tpu.matmul %1, %3, %cst_4 {dimension_numbers = #tpu.dot_dimension_numbers<[1], [0], [0], [1], [0, 0, 1, 1], [], []>} : vector<256x192xbf16>, vector<192x32xbf16>, vector<256x32xf32> -> vector<256x32xf32>
    %5 = arith.addf %0, %4 : vector<256x32xf32>
    %c16 = arith.constant 16 : index
    %c0_5 = arith.constant 0 : index
    %6 = vector.load %arg2[%c16, %c0_5] : memref<288x192xbf16, #tpu.memory_space<vmem>>, vector<256x192xbf16>
    %c1 = arith.constant 1 : index
    %c0_6 = arith.constant 0 : index
    %c0_7 = arith.constant 0 : index
    %7 = vector.load %arg3[%c1, %c0_6, %c0_7] : memref<3x192x32xbf16, #tpu.memory_space<vmem>>, vector<1x192x32xbf16>
    %8 = vector.shape_cast %7 : vector<1x192x32xbf16> to vector<192x32xbf16>
    %cst_8 = arith.constant dense<0.000000e+00> : vector<256x32xf32>
    %9 = tpu.matmul %6, %8, %cst_8 {dimension_numbers = #tpu.dot_dimension_numbers<[1], [0], [0], [1], [0, 0, 1, 1], [], []>} : vector<256x192xbf16>, vector<192x32xbf16>, vector<256x32xf32> -> vector<256x32xf32>
    %10 = arith.addf %5, %9 : vector<256x32xf32>
    %c32 = arith.constant 32 : index
    %c0_9 = arith.constant 0 : index
    %11 = vector.load %arg2[%c32, %c0_9] : memref<288x192xbf16, #tpu.memory_space<vmem>>, vector<256x192xbf16>
    %c2 = arith.constant 2 : index
    %c0_10 = arith.constant 0 : index
    %c0_11 = arith.constant 0 : index
    %12 = vector.load %arg3[%c2, %c0_10, %c0_11] : memref<3x192x32xbf16, #tpu.memory_space<vmem>>, vector<1x192x32xbf16>
    %13 = vector.shape_cast %12 : vector<1x192x32xbf16> to vector<192x32xbf16>
    %cst_12 = arith.constant dense<0.000000e+00> : vector<256x32xf32>
    %14 = tpu.matmul %11, %13, %cst_12 {dimension_numbers = #tpu.dot_dimension_numbers<[1], [0], [0], [1], [0, 0, 1, 1], [], []>} : vector<256x192xbf16>, vector<192x32xbf16>, vector<256x32xf32> -> vector<256x32xf32>
    %15 = arith.addf %10, %14 : vector<256x32xf32>
    %c0_13 = arith.constant 0 : index
    %c0_14 = arith.constant 0 : index
    %16 = vector.load %arg4[%c0_13, %c0_14] : memref<1x32xf32, #tpu.memory_space<vmem>>, vector<1x32xf32>
    %17 = vector.broadcast %16 : vector<1x32xf32> to vector<256x32xf32>
    %18 = arith.addf %15, %17 : vector<256x32xf32>
    %c0_15 = arith.constant 0 : index
    %c0_16 = arith.constant 0 : index
    %19 = vector.load %arg5[%c0_15, %c0_16] : memref<256x32xf32, #tpu.memory_space<vmem>>, vector<256x32xf32>
    tpu.vector_store %arg5[%c0_15, %c0_16], %18 {strides = array<i32>} : memref<256x32xf32, #tpu.memory_space<vmem>>, vector<256x32xf32>,
    return
  }
  func.func @transform_0(%arg0: i32, %arg1: i32) -> (i32, i32) {
    %c0_i32 = arith.constant 0 : i32
    %c0_i32_0 = arith.constant 0 : i32
    return %arg0, %c0_i32 : i32, i32
  }
  func.func @transform_1(%arg0: i32, %arg1: i32) -> (i32, i32, i32) {
    %c0_i32 = arith.constant 0 : i32
    %c0_i32_0 = arith.constant 0 : i32
    %c0_i32_1 = arith.constant 0 : i32
    return %c0_i32, %c0_i32_0, %arg1 : i32, i32, i32
  }
  func.func @transform_2(%arg0: i32, %arg1: i32) -> (i32, i32) {
    %c0_i32 = arith.constant 0 : i32
    %c0_i32_0 = arith.constant 0 : i32
    return %c0_i32, %arg1 : i32, i32
  }
  func.func @transform_3(%arg0: i32, %arg1: i32) -> (i32, i32) {
    %c0_i32 = arith.constant 0 : i32
    return %arg0, %arg1 : i32, i32
  }
}

module attributes {stable_mosaic.version = 11 : i64} {
  func.func @_conv3x3_kernel(%arg0: i32, %arg1: i32, %arg2: memref<288x96xbf16, #tpu.memory_space<vmem>>, %arg3: memref<3x96x32xbf16, #tpu.memory_space<vmem>>, %arg4: memref<1x32xf32, #tpu.memory_space<vmem>>, %arg5: memref<256x32xf32, #tpu.memory_space<vmem>>) attributes {dimension_semantics = [#tpu.dimension_semantics<parallel>, #tpu.dimension_semantics<parallel>], iteration_bounds = array<i64: 2, 1>, scalar_prefetch = 0 : i64, scratch_operands = 0 : i64, tpu.core_type = #tpu.core_type<tc>, window_params = [{transform_indices = @transform_0, window_bounds = array<i64: 288, 96>}, {transform_indices = @transform_1, window_bounds = array<i64: 3, 96, 32>}, {transform_indices = @transform_2, window_bounds = array<i64: 1, 32>}, {transform_indices = @transform_3, window_bounds = array<i64: 256, 32>}]} {
    %cst = arith.constant 0.000000e+00 : f32
    %0 = vector.broadcast %cst : f32 to vector<256x32xf32>
    %c0 = arith.constant 0 : index
    %c0_0 = arith.constant 0 : index
    %1 = vector.load %arg2[%c0, %c0_0] : memref<288x96xbf16, #tpu.memory_space<vmem>>, vector<256x96xbf16>
    %cst_1 = arith.constant 0.000000e+00 : bf16
    %2 = vector.broadcast %cst_1 : bf16 to vector<256x96xbf16>
    %3 = arith.maximumf %1, %2 : vector<256x96xbf16>
    %c0_2 = arith.constant 0 : index
    %c0_3 = arith.constant 0 : index
    %c0_4 = arith.constant 0 : index
    %4 = vector.load %arg3[%c0_2, %c0_3, %c0_4] : memref<3x96x32xbf16, #tpu.memory_space<vmem>>, vector<1x96x32xbf16>
    %5 = vector.shape_cast %4 : vector<1x96x32xbf16> to vector<96x32xbf16>
    %cst_5 = arith.constant dense<0.000000e+00> : vector<256x32xf32>
    %6 = tpu.matmul %3, %5, %cst_5 {dimension_numbers = #tpu.dot_dimension_numbers<[1], [0], [0], [1], [0, 0, 1, 1], [], []>} : vector<256x96xbf16>, vector<96x32xbf16>, vector<256x32xf32> -> vector<256x32xf32>
    %7 = arith.addf %0, %6 : vector<256x32xf32>
    %c16 = arith.constant 16 : index
    %c0_6 = arith.constant 0 : index
    %8 = vector.load %arg2[%c16, %c0_6] : memref<288x96xbf16, #tpu.memory_space<vmem>>, vector<256x96xbf16>
    %cst_7 = arith.constant 0.000000e+00 : bf16
    %9 = vector.broadcast %cst_7 : bf16 to vector<256x96xbf16>
    %10 = arith.maximumf %8, %9 : vector<256x96xbf16>
    %c1 = arith.constant 1 : index
    %c0_8 = arith.constant 0 : index
    %c0_9 = arith.constant 0 : index
    %11 = vector.load %arg3[%c1, %c0_8, %c0_9] : memref<3x96x32xbf16, #tpu.memory_space<vmem>>, vector<1x96x32xbf16>
    %12 = vector.shape_cast %11 : vector<1x96x32xbf16> to vector<96x32xbf16>
    %cst_10 = arith.constant dense<0.000000e+00> : vector<256x32xf32>
    %13 = tpu.matmul %10, %12, %cst_10 {dimension_numbers = #tpu.dot_dimension_numbers<[1], [0], [0], [1], [0, 0, 1, 1], [], []>} : vector<256x96xbf16>, vector<96x32xbf16>, vector<256x32xf32> -> vector<256x32xf32>
    %14 = arith.addf %7, %13 : vector<256x32xf32>
    %c32 = arith.constant 32 : index
    %c0_11 = arith.constant 0 : index
    %15 = vector.load %arg2[%c32, %c0_11] : memref<288x96xbf16, #tpu.memory_space<vmem>>, vector<256x96xbf16>
    %cst_12 = arith.constant 0.000000e+00 : bf16
    %16 = vector.broadcast %cst_12 : bf16 to vector<256x96xbf16>
    %17 = arith.maximumf %15, %16 : vector<256x96xbf16>
    %c2 = arith.constant 2 : index
    %c0_13 = arith.constant 0 : index
    %c0_14 = arith.constant 0 : index
    %18 = vector.load %arg3[%c2, %c0_13, %c0_14] : memref<3x96x32xbf16, #tpu.memory_space<vmem>>, vector<1x96x32xbf16>
    %19 = vector.shape_cast %18 : vector<1x96x32xbf16> to vector<96x32xbf16>
    %cst_15 = arith.constant dense<0.000000e+00> : vector<256x32xf32>
    %20 = tpu.matmul %17, %19, %cst_15 {dimension_numbers = #tpu.dot_dimension_numbers<[1], [0], [0], [1], [0, 0, 1, 1], [], []>} : vector<256x96xbf16>, vector<96x32xbf16>, vector<256x32xf32> -> vector<256x32xf32>
    %21 = arith.addf %14, %20 : vector<256x32xf32>
    %c0_16 = arith.constant 0 : index
    %c0_17 = arith.constant 0 : index
    %22 = vector.load %arg4[%c0_16, %c0_17] : memref<1x32xf32, #tpu.memory_space<vmem>>, vector<1x32xf32>
    %23 = vector.broadcast %22 : vector<1x32xf32> to vector<256x32xf32>
    %24 = arith.addf %21, %23 : vector<256x32xf32>
    %c0_18 = arith.constant 0 : index
    %c0_19 = arith.constant 0 : index
    %25 = vector.load %arg5[%c0_18, %c0_19] : memref<256x32xf32, #tpu.memory_space<vmem>>, vector<256x32xf32>
    tpu.vector_store %arg5[%c0_18, %c0_19], %24 {strides = array<i32>} : memref<256x32xf32, #tpu.memory_space<vmem>>, vector<256x32xf32>,
    return
  }
  func.func @transform_0(%arg0: i32, %arg1: i32) -> (i32, i32) {
    %c0_i32 = arith.constant 0 : i32
    %c0_i32_0 = arith.constant 0 : i32
    return %arg0, %c0_i32 : i32, i32
  }
  func.func @transform_1(%arg0: i32, %arg1: i32) -> (i32, i32, i32) {
    %c0_i32 = arith.constant 0 : i32
    %c0_i32_0 = arith.constant 0 : i32
    %c0_i32_1 = arith.constant 0 : i32
    return %c0_i32, %c0_i32_0, %arg1 : i32, i32, i32
  }
  func.func @transform_2(%arg0: i32, %arg1: i32) -> (i32, i32) {
    %c0_i32 = arith.constant 0 : i32
    %c0_i32_0 = arith.constant 0 : i32
    return %c0_i32, %arg1 : i32, i32
  }
  func.func @transform_3(%arg0: i32, %arg1: i32) -> (i32, i32) {
    %c0_i32 = arith.constant 0 : i32
    return %arg0, %arg1 : i32, i32
  }
}

module attributes {stable_mosaic.version = 11 : i64} {
  func.func @_conv3x3_kernel(%arg0: i32, %arg1: i32, %arg2: memref<288x96xbf16, #tpu.memory_space<vmem>>, %arg3: memref<3x96x32xbf16, #tpu.memory_space<vmem>>, %arg4: memref<1x32xf32, #tpu.memory_space<vmem>>, %arg5: memref<256x32xf32, #tpu.memory_space<vmem>>, %arg6: memref<256x32xf32, #tpu.memory_space<vmem>>, %arg7: memref<256x32xf32, #tpu.memory_space<vmem>>) attributes {dimension_semantics = [#tpu.dimension_semantics<parallel>, #tpu.dimension_semantics<parallel>], iteration_bounds = array<i64: 2, 1>, scalar_prefetch = 0 : i64, scratch_operands = 0 : i64, tpu.core_type = #tpu.core_type<tc>, window_params = [{transform_indices = @transform_0, window_bounds = array<i64: 288, 96>}, {transform_indices = @transform_1, window_bounds = array<i64: 3, 96, 32>}, {transform_indices = @transform_2, window_bounds = array<i64: 1, 32>}, {transform_indices = @transform_3, window_bounds = array<i64: 256, 32>}, {transform_indices = @transform_4, window_bounds = array<i64: 256, 32>}, {transform_indices = @transform_5, window_bounds = array<i64: 256, 32>}]} {
    %cst = arith.constant 0.000000e+00 : f32
    %0 = vector.broadcast %cst : f32 to vector<256x32xf32>
    %c0 = arith.constant 0 : index
    %c0_0 = arith.constant 0 : index
    %1 = vector.load %arg2[%c0, %c0_0] : memref<288x96xbf16, #tpu.memory_space<vmem>>, vector<256x96xbf16>
    %cst_1 = arith.constant 0.000000e+00 : bf16
    %2 = vector.broadcast %cst_1 : bf16 to vector<256x96xbf16>
    %3 = arith.maximumf %1, %2 : vector<256x96xbf16>
    %c0_2 = arith.constant 0 : index
    %c0_3 = arith.constant 0 : index
    %c0_4 = arith.constant 0 : index
    %4 = vector.load %arg3[%c0_2, %c0_3, %c0_4] : memref<3x96x32xbf16, #tpu.memory_space<vmem>>, vector<1x96x32xbf16>
    %5 = vector.shape_cast %4 : vector<1x96x32xbf16> to vector<96x32xbf16>
    %cst_5 = arith.constant dense<0.000000e+00> : vector<256x32xf32>
    %6 = tpu.matmul %3, %5, %cst_5 {dimension_numbers = #tpu.dot_dimension_numbers<[1], [0], [0], [1], [0, 0, 1, 1], [], []>} : vector<256x96xbf16>, vector<96x32xbf16>, vector<256x32xf32> -> vector<256x32xf32>
    %7 = arith.addf %0, %6 : vector<256x32xf32>
    %c16 = arith.constant 16 : index
    %c0_6 = arith.constant 0 : index
    %8 = vector.load %arg2[%c16, %c0_6] : memref<288x96xbf16, #tpu.memory_space<vmem>>, vector<256x96xbf16>
    %cst_7 = arith.constant 0.000000e+00 : bf16
    %9 = vector.broadcast %cst_7 : bf16 to vector<256x96xbf16>
    %10 = arith.maximumf %8, %9 : vector<256x96xbf16>
    %c1 = arith.constant 1 : index
    %c0_8 = arith.constant 0 : index
    %c0_9 = arith.constant 0 : index
    %11 = vector.load %arg3[%c1, %c0_8, %c0_9] : memref<3x96x32xbf16, #tpu.memory_space<vmem>>, vector<1x96x32xbf16>
    %12 = vector.shape_cast %11 : vector<1x96x32xbf16> to vector<96x32xbf16>
    %cst_10 = arith.constant dense<0.000000e+00> : vector<256x32xf32>
    %13 = tpu.matmul %10, %12, %cst_10 {dimension_numbers = #tpu.dot_dimension_numbers<[1], [0], [0], [1], [0, 0, 1, 1], [], []>} : vector<256x96xbf16>, vector<96x32xbf16>, vector<256x32xf32> -> vector<256x32xf32>
    %14 = arith.addf %7, %13 : vector<256x32xf32>
    %c32 = arith.constant 32 : index
    %c0_11 = arith.constant 0 : index
    %15 = vector.load %arg2[%c32, %c0_11] : memref<288x96xbf16, #tpu.memory_space<vmem>>, vector<256x96xbf16>
    %cst_12 = arith.constant 0.000000e+00 : bf16
    %16 = vector.broadcast %cst_12 : bf16 to vector<256x96xbf16>
    %17 = arith.maximumf %15, %16 : vector<256x96xbf16>
    %c2 = arith.constant 2 : index
    %c0_13 = arith.constant 0 : index
    %c0_14 = arith.constant 0 : index
    %18 = vector.load %arg3[%c2, %c0_13, %c0_14] : memref<3x96x32xbf16, #tpu.memory_space<vmem>>, vector<1x96x32xbf16>
    %19 = vector.shape_cast %18 : vector<1x96x32xbf16> to vector<96x32xbf16>
    %cst_15 = arith.constant dense<0.000000e+00> : vector<256x32xf32>
    %20 = tpu.matmul %17, %19, %cst_15 {dimension_numbers = #tpu.dot_dimension_numbers<[1], [0], [0], [1], [0, 0, 1, 1], [], []>} : vector<256x96xbf16>, vector<96x32xbf16>, vector<256x32xf32> -> vector<256x32xf32>
    %21 = arith.addf %14, %20 : vector<256x32xf32>
    %c0_16 = arith.constant 0 : index
    %c0_17 = arith.constant 0 : index
    %22 = vector.load %arg4[%c0_16, %c0_17] : memref<1x32xf32, #tpu.memory_space<vmem>>, vector<1x32xf32>
    %23 = vector.broadcast %22 : vector<1x32xf32> to vector<256x32xf32>
    %24 = arith.addf %21, %23 : vector<256x32xf32>
    %c0_18 = arith.constant 0 : index
    %c0_19 = arith.constant 0 : index
    %25 = vector.load %arg5[%c0_18, %c0_19] : memref<256x32xf32, #tpu.memory_space<vmem>>, vector<256x32xf32>
    %26 = arith.addf %24, %25 : vector<256x32xf32>
    %c0_20 = arith.constant 0 : index
    %c0_21 = arith.constant 0 : index
    %27 = vector.load %arg6[%c0_20, %c0_21] : memref<256x32xf32, #tpu.memory_space<vmem>>, vector<256x32xf32>
    %28 = arith.addf %26, %27 : vector<256x32xf32>
    %c0_22 = arith.constant 0 : index
    %c0_23 = arith.constant 0 : index
    %29 = vector.load %arg7[%c0_22, %c0_23] : memref<256x32xf32, #tpu.memory_space<vmem>>, vector<256x32xf32>
    tpu.vector_store %arg7[%c0_22, %c0_23], %28 {strides = array<i32>} : memref<256x32xf32, #tpu.memory_space<vmem>>, vector<256x32xf32>,
    return
  }
  func.func @transform_0(%arg0: i32, %arg1: i32) -> (i32, i32) {
    %c0_i32 = arith.constant 0 : i32
    %c0_i32_0 = arith.constant 0 : i32
    return %arg0, %c0_i32 : i32, i32
  }
  func.func @transform_1(%arg0: i32, %arg1: i32) -> (i32, i32, i32) {
    %c0_i32 = arith.constant 0 : i32
    %c0_i32_0 = arith.constant 0 : i32
    %c0_i32_1 = arith.constant 0 : i32
    return %c0_i32, %c0_i32_0, %arg1 : i32, i32, i32
  }
  func.func @transform_2(%arg0: i32, %arg1: i32) -> (i32, i32) {
    %c0_i32 = arith.constant 0 : i32
    %c0_i32_0 = arith.constant 0 : i32
    return %c0_i32, %arg1 : i32, i32
  }
  func.func @transform_3(%arg0: i32, %arg1: i32) -> (i32, i32) {
    %c0_i32 = arith.constant 0 : i32
    return %arg0, %arg1 : i32, i32
  }
  func.func @transform_4(%arg0: i32, %arg1: i32) -> (i32, i32) {
    %c0_i32 = arith.constant 0 : i32
    return %arg0, %arg1 : i32, i32
  }
  func.func @transform_5(%arg0: i32, %arg1: i32) -> (i32, i32) {
    %c0_i32 = arith.constant 0 : i32
    return %arg0, %arg1 : i32, i32
  }
}

module attributes {stable_mosaic.version = 11 : i64} {
  func.func @_conv3x3_kernel(%arg0: i32, %arg1: i32, %arg2: memref<288x96xbf16, #tpu.memory_space<vmem>>, %arg3: memref<3x96x32xbf16, #tpu.memory_space<vmem>>, %arg4: memref<1x32xf32, #tpu.memory_space<vmem>>, %arg5: memref<256x32xf32, #tpu.memory_space<vmem>>, %arg6: memref<256x32xf32, #tpu.memory_space<vmem>>) attributes {dimension_semantics = [#tpu.dimension_semantics<parallel>, #tpu.dimension_semantics<parallel>], iteration_bounds = array<i64: 2, 1>, scalar_prefetch = 0 : i64, scratch_operands = 0 : i64, tpu.core_type = #tpu.core_type<tc>, window_params = [{transform_indices = @transform_0, window_bounds = array<i64: 288, 96>}, {transform_indices = @transform_1, window_bounds = array<i64: 3, 96, 32>}, {transform_indices = @transform_2, window_bounds = array<i64: 1, 32>}, {transform_indices = @transform_3, window_bounds = array<i64: 256, 32>}, {transform_indices = @transform_4, window_bounds = array<i64: 256, 32>}]} {
    %cst = arith.constant 0.000000e+00 : f32
    %0 = vector.broadcast %cst : f32 to vector<256x32xf32>
    %c0 = arith.constant 0 : index
    %c0_0 = arith.constant 0 : index
    %1 = vector.load %arg2[%c0, %c0_0] : memref<288x96xbf16, #tpu.memory_space<vmem>>, vector<256x96xbf16>
    %cst_1 = arith.constant 0.000000e+00 : bf16
    %2 = vector.broadcast %cst_1 : bf16 to vector<256x96xbf16>
    %3 = arith.maximumf %1, %2 : vector<256x96xbf16>
    %c0_2 = arith.constant 0 : index
    %c0_3 = arith.constant 0 : index
    %c0_4 = arith.constant 0 : index
    %4 = vector.load %arg3[%c0_2, %c0_3, %c0_4] : memref<3x96x32xbf16, #tpu.memory_space<vmem>>, vector<1x96x32xbf16>
    %5 = vector.shape_cast %4 : vector<1x96x32xbf16> to vector<96x32xbf16>
    %cst_5 = arith.constant dense<0.000000e+00> : vector<256x32xf32>
    %6 = tpu.matmul %3, %5, %cst_5 {dimension_numbers = #tpu.dot_dimension_numbers<[1], [0], [0], [1], [0, 0, 1, 1], [], []>} : vector<256x96xbf16>, vector<96x32xbf16>, vector<256x32xf32> -> vector<256x32xf32>
    %7 = arith.addf %0, %6 : vector<256x32xf32>
    %c16 = arith.constant 16 : index
    %c0_6 = arith.constant 0 : index
    %8 = vector.load %arg2[%c16, %c0_6] : memref<288x96xbf16, #tpu.memory_space<vmem>>, vector<256x96xbf16>
    %cst_7 = arith.constant 0.000000e+00 : bf16
    %9 = vector.broadcast %cst_7 : bf16 to vector<256x96xbf16>
    %10 = arith.maximumf %8, %9 : vector<256x96xbf16>
    %c1 = arith.constant 1 : index
    %c0_8 = arith.constant 0 : index
    %c0_9 = arith.constant 0 : index
    %11 = vector.load %arg3[%c1, %c0_8, %c0_9] : memref<3x96x32xbf16, #tpu.memory_space<vmem>>, vector<1x96x32xbf16>
    %12 = vector.shape_cast %11 : vector<1x96x32xbf16> to vector<96x32xbf16>
    %cst_10 = arith.constant dense<0.000000e+00> : vector<256x32xf32>
    %13 = tpu.matmul %10, %12, %cst_10 {dimension_numbers = #tpu.dot_dimension_numbers<[1], [0], [0], [1], [0, 0, 1, 1], [], []>} : vector<256x96xbf16>, vector<96x32xbf16>, vector<256x32xf32> -> vector<256x32xf32>
    %14 = arith.addf %7, %13 : vector<256x32xf32>
    %c32 = arith.constant 32 : index
    %c0_11 = arith.constant 0 : index
    %15 = vector.load %arg2[%c32, %c0_11] : memref<288x96xbf16, #tpu.memory_space<vmem>>, vector<256x96xbf16>
    %cst_12 = arith.constant 0.000000e+00 : bf16
    %16 = vector.broadcast %cst_12 : bf16 to vector<256x96xbf16>
    %17 = arith.maximumf %15, %16 : vector<256x96xbf16>
    %c2 = arith.constant 2 : index
    %c0_13 = arith.constant 0 : index
    %c0_14 = arith.constant 0 : index
    %18 = vector.load %arg3[%c2, %c0_13, %c0_14] : memref<3x96x32xbf16, #tpu.memory_space<vmem>>, vector<1x96x32xbf16>
    %19 = vector.shape_cast %18 : vector<1x96x32xbf16> to vector<96x32xbf16>
    %cst_15 = arith.constant dense<0.000000e+00> : vector<256x32xf32>
    %20 = tpu.matmul %17, %19, %cst_15 {dimension_numbers = #tpu.dot_dimension_numbers<[1], [0], [0], [1], [0, 0, 1, 1], [], []>} : vector<256x96xbf16>, vector<96x32xbf16>, vector<256x32xf32> -> vector<256x32xf32>
    %21 = arith.addf %14, %20 : vector<256x32xf32>
    %c0_16 = arith.constant 0 : index
    %c0_17 = arith.constant 0 : index
    %22 = vector.load %arg4[%c0_16, %c0_17] : memref<1x32xf32, #tpu.memory_space<vmem>>, vector<1x32xf32>
    %23 = vector.broadcast %22 : vector<1x32xf32> to vector<256x32xf32>
    %24 = arith.addf %21, %23 : vector<256x32xf32>
    %c0_18 = arith.constant 0 : index
    %c0_19 = arith.constant 0 : index
    %25 = vector.load %arg5[%c0_18, %c0_19] : memref<256x32xf32, #tpu.memory_space<vmem>>, vector<256x32xf32>
    %26 = arith.addf %24, %25 : vector<256x32xf32>
    %c0_20 = arith.constant 0 : index
    %c0_21 = arith.constant 0 : index
    %27 = vector.load %arg6[%c0_20, %c0_21] : memref<256x32xf32, #tpu.memory_space<vmem>>, vector<256x32xf32>
    tpu.vector_store %arg6[%c0_20, %c0_21], %26 {strides = array<i32>} : memref<256x32xf32, #tpu.memory_space<vmem>>, vector<256x32xf32>,
    return
  }
  func.func @transform_0(%arg0: i32, %arg1: i32) -> (i32, i32) {
    %c0_i32 = arith.constant 0 : i32
    %c0_i32_0 = arith.constant 0 : i32
    return %arg0, %c0_i32 : i32, i32
  }
  func.func @transform_1(%arg0: i32, %arg1: i32) -> (i32, i32, i32) {
    %c0_i32 = arith.constant 0 : i32
    %c0_i32_0 = arith.constant 0 : i32
    %c0_i32_1 = arith.constant 0 : i32
    return %c0_i32, %c0_i32_0, %arg1 : i32, i32, i32
  }
  func.func @transform_2(%arg0: i32, %arg1: i32) -> (i32, i32) {
    %c0_i32 = arith.constant 0 : i32
    %c0_i32_0 = arith.constant 0 : i32
    return %c0_i32, %arg1 : i32, i32
  }
  func.func @transform_3(%arg0: i32, %arg1: i32) -> (i32, i32) {
    %c0_i32 = arith.constant 0 : i32
    return %arg0, %arg1 : i32, i32
  }
  func.func @transform_4(%arg0: i32, %arg1: i32) -> (i32, i32) {
    %c0_i32 = arith.constant 0 : i32
    return %arg0, %arg1 : i32, i32
  }
}

</mosaic_0001>

<bundles_post_ra>
// kernel: _lambda_.5
= control target key start
LH: loop header
LB: loop body
LE: loop exit
PB: predicated region body
PF: predicated region fallthrough
CT: control target
= control target key end

     0   :  { %s2068_s12 = smov 0   ;;  %s2070_s13 = smov 0   ;;  %s2677_s0 = inlined_call_operand.vmem [shape: bf16[576,192], index: 0, kind: input, shape index: {}]   ;;  %s2678_s1 = inlined_call_operand.vmem [shape: bf16[3,192,32], index: 1, kind: input, shape index: {}]   ;;  %s2679_s2 = inlined_call_operand.vmem [shape: f32[1,32], index: 2, kind: input, shape index: {}]   ;;  %s2680_s3 = inlined_call_operand.vmem [shape: f32[512,32], index: 3, kind: output, shape index: {}]  }
   0x1   :  { %s2072_s14 = smov 0  }
   0x2 LB: > { %s25_s15 = sadd.s32 1, %s2041_s13  ;;  %p1677_p0 = scmp.ge.s32.totalorder %s2045_s14, 1  ;;  %s2045_s14 = sphi %s2072_s14, %s13_s14   ;;  %s2041_s13 = sphi %s2070_s13, %s2682_s13   ;;  %s2037_s12 = sphi %s2068_s12, %s2681_s12  }
   0x3   : > { %p27_p1 = scmp.ge.s32.totalorder %s25_s15, 2  ;;  %p170_p2 = scmp.lt.s32.totalorder %s2045_s14, 3 }
   0x5   : > { %s2684_s15 = smov (%p27_p1, %s25_s15), 0  ;;  %p171_p3 = pnand %p1677_p0, %p170_p2 }
   0x6   : > { %v1933_v0 = vld [vmem:[%s2678_s1 + $0x60] sm:$0xff] (!%p171_p3)   ;;  %v2047_v1 = vmov (!%p171_p3), 0   ;;  %s205_s18 = smul.u32 (!%p171_p3), 36, %s2037_s12  ;;  %v1934_v2 = vld [vmem:[%s2678_s1 + $0x68] sm:$0xff] (!%p171_p3)   ;;  %v1935_v3 = vld [vmem:[%s2678_s1 + $0x70] sm:$0xff] (!%p171_p3)   ;;  %vm528_vm0 = vcmask (!%p171_p3), 523264  }
   0x7   : > { %174 = sbr.rel (%p171_p3) target bundleno = 460 (0x1cc), region = 32  ;;  %577 = vmatprep.subr.bf16.mxu0 (!%p171_p3), %v2047_v1  ;;  %1884 = vmatprep.subr.bf16.mxu1 (!%p171_p3), %v2047_v1  ;;  %v1936_v4 = vld [vmem:[%s2678_s1 + $0x78] sm:$0xff] (!%p171_p3)   ;;  %v1937_v6 = vld [vmem:[%s2678_s1 + $0x80] sm:$0xff] (!%p171_p3)   ;;  %v1938_v8 = vld [vmem:[%s2678_s1 + $0x88] sm:$0xff] (!%p171_p3)   ;;  %vm1536_vm1 = vcmask (!%p171_p3), 261120  }
   0x8   : > { %578 = vmatpush1.bf16.msra.mxu0 (!%p171_p3), %v1933_v0  ;;  %1896 = vmatpush1.bf16.msra.mxu1 (!%p171_p3), %v1933_v0  ;;  %p206_p4 = scmp.lt.s32.totalorder (!%p171_p3), %s205_s18, 71  ;;  %v1939_v9 = vld [vmem:[%s2678_s1 + $0x90] sm:$0xff] (!%p171_p3)   ;;  %v1940_v10 = vld [vmem:[%s2678_s1 + $0x98] sm:$0xff] (!%p171_p3)   ;;  %v1941_v11 = vld [vmem:[%s2678_s1 + $0xa0] sm:$0xff] (!%p171_p3)  }
   0x9   : > { %579 = vmatprep.subr.bf16.mxu0 (!%p171_p3), %v2047_v1  ;;  %1885 = vmatprep.subr.bf16.mxu1 (!%p171_p3), %v2047_v1  ;;  %v1942_v12 = vld [vmem:[%s2678_s1 + $0xa8] sm:$0xff] (!%p171_p3)   ;;  %v1943_v13 = vld [vmem:[%s2678_s1 + $0xb0] sm:$0xff] (!%p171_p3)   ;;  %v1944_v14 = vld [vmem:[%s2678_s1 + $0xb8] sm:$0xff] (!%p171_p3)  }
   0xa   : > { %v1951_v17 = vld [vmem:[%s2678_s1] sm:$0xff] (!%p171_p3)   ;;  %v1957_v21 = vld [vmem:[%s2678_s1 + $0x8] sm:$0xff] (!%p171_p3)   ;;  %v1961_v25 = vld [vmem:[%s2678_s1 + $0x10] sm:$0xff] (!%p171_p3)  }
   0xb   : > { %v1952_v18 = vld [vmem:[%s2678_s1 + $0xc0] sm:$0xff] (!%p171_p3)   ;;  %v1960_v22 = vld [vmem:[%s2678_s1 + $0xc8] sm:$0xff] (!%p171_p3)   ;;  %v1962_v26 = vld [vmem:[%s2678_s1 + $0xd0] sm:$0xff] (!%p171_p3)  }
   0xc   : > { %580 = vmatpush1.bf16.msra.mxu0 (!%p171_p3), %v1934_v2  ;;  %1897 = vmatpush1.bf16.msra.mxu1 (!%p171_p3), %v1934_v2  ;;  %v1969_v29 = vld [vmem:[%s2678_s1 + $0x18] sm:$0xff] (!%p171_p3)   ;;  %v1975_v35 = vld [vmem:[%s2678_s1 + $0x20] sm:$0xff] (!%p171_p3)   ;;  %v1979_v37 = vld [vmem:[%s2678_s1 + $0x28] sm:$0xff] (!%p171_p3)  }
   0xd   : > { %581 = vmatprep.subr.bf16.mxu0 (!%p171_p3), %v2047_v1  ;;  %1886 = vmatprep.subr.bf16.mxu1 (!%p171_p3), %v2047_v1  ;;  %v1970_v30 = vld [vmem:[%s2678_s1 + $0xd8] sm:$0xff] (!%p171_p3)   ;;  %v1978_v36 = vld [vmem:[%s2678_s1 + $0xe0] sm:$0xff] (!%p171_p3)   ;;  %v1980_v38 = vld [vmem:[%s2678_s1 + $0xe8] sm:$0xff] (!%p171_p3)  }
   0xe   : > { %s2686_s18 = smov (!%p206_p4, %s205_s18), 71  ;;  %v1987_v43 = vld [vmem:[%s2678_s1 + $0x30] sm:$0xff]   ;;  %v1993_v45 = vld [vmem:[%s2678_s1 + $0x38] sm:$0xff]   ;;  %v1997_v51 = vld [vmem:[%s2678_s1 + $0x40] sm:$0xff]  }
   0xf   : > { %s1883_s23 = sshll.u32 %s2686_s18, 3  ;;  %v1988_v44 = vld [vmem:[%s2678_s1 + $0xf0] sm:$0xff]   ;;  %v1996_v46 = vld [vmem:[%s2678_s1 + $0xf8] sm:$0xff]   ;;  %v1998_v52 = vld [vmem:[%s2678_s1 + $0x100] sm:$0xff]  }
  0x10   : > { %582 = vmatpush1.bf16.msra.mxu0 %v1935_v3  ;;  %1898 = vmatpush1.bf16.msra.mxu1 %v1935_v3  ;;  %s2110_s28 = scalar_lea.vmem %s2677_s0, %s1883_s23  ;;  %v2005_v53 = vld [vmem:[%s2678_s1 + $0x48] sm:$0xff]   ;;  %v2011_v59 = vld [vmem:[%s2678_s1 + $0x50] sm:$0xff]   ;;  %v2015_v61 = vld [vmem:[%s2678_s1 + $0x58] sm:$0xff]  }
  0x11   : > { %583 = vmatprep.subr.bf16.mxu0 %v2047_v1  ;;  %1887 = vmatprep.subr.bf16.mxu1 %v2047_v1  ;;  %v2115_v5 = vld [vmem:[%s2110_s28 + $0x14] ss:$8 sps:$4 sm:$0xff]   ;;  %v2165_v15 = vld [vmem:[%s2110_s28 + $0x10] ss:$8 sps:$4 sm:$0xff]   ;;  %v2179_v19 = vld [vmem:[%s2110_s28 + $0x24] ss:$8 sps:$4 sm:$0xff]  }
  0x12   : > { %v2121_v7 = vld [vmem:[%s2110_s28 + $0x94] ss:$8 sps:$4 sm:$0xff]   ;;  %1750 = vmatprep.mubr.msk.bf16.mxu0 %vm528_vm0, %v2115_v5  ;;  %v2168_v16 = vld [vmem:[%s2110_s28 + $0x90] ss:$8 sps:$4 sm:$0xff]   ;;  %v2182_v20 = vld [vmem:[%s2110_s28 + $0xa4] ss:$8 sps:$4 sm:$0xff]  }
  0x13   : > { %1758 = vmatprep.mubr.msk.bf16.mxu1 %vm528_vm0, %v2121_v7  ;;  %v2196_v23 = vld [vmem:[%s2110_s28 + $0x20] ss:$8 sps:$4 sm:$0xff]   ;;  %v2211_v27 = vld [vmem:[%s2110_s28 + $0x34] ss:$8 sps:$4 sm:$0xff]   ;;  %v2233_v31 = vld [vmem:[%s2110_s28 + $0x30] ss:$8 sps:$4 sm:$0xff]  }
  0x14   : > { %584 = vmatpush1.bf16.msra.mxu0 %v1936_v4  ;;  %1899 = vmatpush1.bf16.msra.mxu1 %v1936_v4  ;;  %v2201_v24 = vld [vmem:[%s2110_s28 + $0xa0] ss:$8 sps:$4 sm:$0xff]   ;;  %v2216_v28 = vld [vmem:[%s2110_s28 + $0xb4] ss:$8 sps:$4 sm:$0xff]   ;;  %v2236_v32 = vld [vmem:[%s2110_s28 + $0xb0] ss:$8 sps:$4 sm:$0xff]  }
  0x15   : > { %585 = vmatprep.subr.bf16.mxu0 %v2047_v1  ;;  %1888 = vmatprep.subr.bf16.mxu1 %v2047_v1  ;;  %v2239_v33 = vld [vmem:[%s2110_s28 + $0x44] ss:$8 sps:$4 sm:$0xff]   ;;  %v2267_v39 = vld [vmem:[%s2110_s28 + $0x40] ss:$8 sps:$4 sm:$0xff]   ;;  %v2273_v41 = vld [vmem:[%s2110_s28 + $0x54] ss:$8 sps:$4 sm:$0xff]  }
  0x16   : > { %v2242_v34 = vld [vmem:[%s2110_s28 + $0xc4] ss:$8 sps:$4 sm:$0xff]   ;;  %v2270_v40 = vld [vmem:[%s2110_s28 + $0xc0] ss:$8 sps:$4 sm:$0xff]   ;;  %v2276_v42 = vld [vmem:[%s2110_s28 + $0xd4] ss:$8 sps:$4 sm:$0xff]  }
  0x17   : > { %v2301_v47 = vld [vmem:[%s2110_s28 + $0x50] ss:$8 sps:$4 sm:$0xff]   ;;  %v2307_v49 = vld [vmem:[%s2110_s28 + $0x64] ss:$8 sps:$4 sm:$0xff]   ;;  %v1994_v55 = vld [vmem:[%s2110_s28 + $0x60] ss:$8 sps:$4 sm:$0xff]  }
  0x18   : > { %586 = vmatpush1.bf16.msra.mxu0 %v1937_v6  ;;  %1900 = vmatpush1.bf16.msra.mxu1 %v1937_v6  ;;  %v2304_v48 = vld [vmem:[%s2110_s28 + $0xd0] ss:$8 sps:$4 sm:$0xff]   ;;  %v2310_v50 = vld [vmem:[%s2110_s28 + $0xe4] ss:$8 sps:$4 sm:$0xff]   ;;  %v2336_v56 = vld [vmem:[%s2110_s28 + $0xe0] ss:$8 sps:$4 sm:$0xff]  }
  0x19   : > { %587 = vmatprep.subr.bf16.mxu0 %v2047_v1  ;;  %1889 = vmatprep.subr.bf16.mxu1 %v2047_v1  ;;  %v2006_v54 = vld [vmem:[%s2678_s1 + $0x108] sm:$0xff]   ;;  %v1999_v57 = vld [vmem:[%s2110_s28 + $0x74] ss:$8 sps:$4 sm:$0xff]   ;;  %v2003_v63 = vld [vmem:[%s2110_s28 + $0x70] ss:$8 sps:$4 sm:$0xff]  }
  0x1a   : > { %v2340_v58 = vld [vmem:[%s2110_s28 + $0xf4] ss:$8 sps:$4 sm:$0xff]   ;;  %v2364_v0 = vld [vmem:[%s2110_s28 + $0xf0] ss:$8 sps:$4 sm:$0xff]   ;;  %v2007_v2 = vld [vmem:[%s2110_s28 + $0x84] ss:$8 sps:$4 sm:$0xff]  }
  0x1b   : > { %v2014_v60 = vld [vmem:[%s2678_s1 + $0x110] sm:$0xff]   ;;  %v2016_v62 = vld [vmem:[%s2678_s1 + $0x118] sm:$0xff]   ;;  %v2368_v3 = vld [vmem:[%s2110_s28 + $0x104] ss:$8 sps:$4 sm:$0xff]  }
  0x1c   : > { %588 = vmatpush1.bf16.msra.mxu0 %v1938_v8  ;;  %1901 = vmatpush1.bf16.msra.mxu1 %v1938_v8  ;;  %v2012_v4 = vld [vmem:[%s2110_s28 + $0x80] ss:$8 sps:$4 sm:$0xff]  }
  0x1d   : > { %589 = vmatprep.subr.bf16.mxu0 %v2047_v1  ;;  %1890 = vmatprep.subr.bf16.mxu1 %v2047_v1  ;;  %v2376_v6 = vld [vmem:[%s2110_s28 + $0x100] ss:$8 sps:$4 sm:$0xff]  }
  0x1e   : > { %v2017_v8 = vld [vmem:[%s2110_s28] ss:$8 sps:$4 sm:$0xff]  }
  0x20   : > { %590 = vmatpush1.bf16.msra.mxu0 %v1939_v9  ;;  %1902 = vmatpush1.bf16.msra.mxu1 %v1939_v9 }
  0x21   : > { %591 = vmatprep.subr.bf16.mxu0 %v2047_v1  ;;  %1891 = vmatprep.subr.bf16.mxu1 %v2047_v1 }
  0x24   : > { %592 = vmatpush1.bf16.msra.mxu0 %v1940_v10  ;;  %1903 = vmatpush1.bf16.msra.mxu1 %v1940_v10 }
  0x25   : > { %593 = vmatprep.subr.bf16.mxu0 %v2047_v1  ;;  %1892 = vmatprep.subr.bf16.mxu1 %v2047_v1 }
  0x28   : > { %594 = vmatpush1.bf16.msra.mxu0 %v1941_v11  ;;  %1904 = vmatpush1.bf16.msra.mxu1 %v1941_v11 }
  0x29   : > { %595 = vmatprep.subr.bf16.mxu0 %v2047_v1  ;;  %1893 = vmatprep.subr.bf16.mxu1 %v2047_v1 }
  0x2c   : > { %596 = vmatpush1.bf16.msra.mxu0 %v1942_v12  ;;  %1905 = vmatpush1.bf16.msra.mxu1 %v1942_v12 }
  0x2d   : > { %597 = vmatprep.subr.bf16.mxu0 %v2047_v1  ;;  %1894 = vmatprep.subr.bf16.mxu1 %v2047_v1 }
  0x30   : > { %598 = vmatpush1.bf16.msra.mxu0 %v1943_v13  ;;  %1906 = vmatpush1.bf16.msra.mxu1 %v1943_v13 }
  0x31   : > { %599 = vmatprep.subr.bf16.mxu0 %v2047_v1  ;;  %1895 = vmatprep.subr.bf16.mxu1 %v2047_v1 }
  0x34   : > { %600 = vmatpush1.bf16.msra.mxu0 %v1944_v14  ;;  %1907 = vmatpush1.bf16.msra.mxu1 %v1944_v14 }
  0x35   : > { %822 = vmatprep.subr.bf16.mxu1 %v2047_v1  ;;  %1304 = vmatprep.subr.bf16.mxu0 %v2047_v1 }
  0x37   : > { %610 = vmatmul.mubr.bf16.vlgmr.msra.gmra.mrb[0].mxu0 %v2165_v15  ;;  %674 = vmatmul.mubr.bf16.vlgmr.msra.gmra.mrb[0].mxu1 %v2168_v16 }
  0x38   : > { %823 = vmatpush1.bf16.msra.mxu1 %v1951_v17  ;;  %1305 = vmatpush1.bf16.msra.mxu0 %v1952_v18 }
  0x39   : > { %824 = vmatprep.subr.bf16.mxu1 %v2047_v1  ;;  %1751 = vmatprep.mubr.msk.bf16.mxu0 %vm528_vm0, %v2179_v19 }
  0x3a   : > { %1759 = vmatprep.mubr.msk.bf16.mxu1 %vm528_vm0, %v2182_v20  ;;  %1306 = vmatprep.subr.bf16.mxu0 %v2047_v1 }
  0x3c   : > { %825 = vmatpush1.bf16.msra.mxu1 %v1957_v21  ;;  %1307 = vmatpush1.bf16.msra.mxu0 %v1960_v22 }
  0x3d   : > { %826 = vmatprep.subr.bf16.mxu1 %v2047_v1  ;;  %1308 = vmatprep.subr.bf16.mxu0 %v2047_v1 }
  0x3f   : > { %618 = vmatmul.mubr.bf16.gmra.mrb[4].mxu0 %v2196_v23  ;;  %682 = vmatmul.mubr.bf16.gmra.mrb[4].mxu1 %v2201_v24 }
  0x40   : > { %827 = vmatpush1.bf16.msra.mxu1 %v1961_v25  ;;  %1309 = vmatpush1.bf16.msra.mxu0 %v1962_v26 }
  0x41   : > { %1752 = vmatprep.mubr.msk.bf16.mxu0 %vm528_vm0, %v2211_v27  ;;  %1760 = vmatprep.mubr.msk.bf16.mxu1 %vm528_vm0, %v2216_v28 }
  0x42   : > { %828 = vmatprep.subr.bf16.mxu1 %v2047_v1  ;;  %1310 = vmatprep.subr.bf16.mxu0 %v2047_v1 }
  0x44   : > { %829 = vmatpush1.bf16.msra.mxu1 %v1969_v29  ;;  %1311 = vmatpush1.bf16.msra.mxu0 %v1970_v30 }
  0x45   : > { %830 = vmatprep.subr.bf16.mxu1 %v2047_v1  ;;  %1312 = vmatprep.subr.bf16.mxu0 %v2047_v1 }
  0x47   : > { %626 = vmatmul.mubr.bf16.gmra.mrb[8].mxu0 %v2233_v31  ;;  %690 = vmatmul.mubr.bf16.gmra.mrb[8].mxu1 %v2236_v32 }
  0x48   : > { %1753 = vmatprep.mubr.msk.bf16.mxu0 %vm528_vm0, %v2239_v33  ;;  %1761 = vmatprep.mubr.msk.bf16.mxu1 %vm528_vm0, %v2242_v34 }
  0x49   : > { %831 = vmatpush1.bf16.msra.mxu1 %v1975_v35  ;;  %1313 = vmatpush1.bf16.msra.mxu0 %v1978_v36 }
  0x4a   : > { %832 = vmatprep.subr.bf16.mxu1 %v2047_v1  ;;  %1314 = vmatprep.subr.bf16.mxu0 %v2047_v1 }
  0x4d   : > { %833 = vmatpush1.bf16.msra.mxu1 %v1979_v37  ;;  %1315 = vmatpush1.bf16.msra.mxu0 %v1980_v38 }
  0x4e   : > { %834 = vmatprep.subr.bf16.mxu1 %v2047_v1  ;;  %1316 = vmatprep.subr.bf16.mxu0 %v2047_v1 }
  0x4f   : > { %634 = vmatmul.mubr.bf16.gmra.mrb[12].mxu0 %v2267_v39  ;;  %698 = vmatmul.mubr.bf16.gmra.mrb[12].mxu1 %v2270_v40 }
  0x50   : > { %1754 = vmatprep.mubr.msk.bf16.mxu0 %vm528_vm0, %v2273_v41  ;;  %1762 = vmatprep.mubr.msk.bf16.mxu1 %vm528_vm0, %v2276_v42 }
  0x51   : > { %835 = vmatpush1.bf16.msra.mxu1 %v1987_v43  ;;  %1317 = vmatpush1.bf16.msra.mxu0 %v1988_v44 }
  0x52   : > { %836 = vmatprep.subr.bf16.mxu1 %v2047_v1  ;;  %1318 = vmatprep.subr.bf16.mxu0 %v2047_v1 }
  0x55   : > { %837 = vmatpush1.bf16.msra.mxu1 %v1993_v45  ;;  %1319 = vmatpush1.bf16.msra.mxu0 %v1996_v46 }
  0x56   : > { %838 = vmatprep.subr.bf16.mxu1 %v2047_v1  ;;  %1320 = vmatprep.subr.bf16.mxu0 %v2047_v1 }
  0x57   : > { %642 = vmatmul.mubr.bf16.gmra.mrb[16].mxu0 %v2301_v47  ;;  %706 = vmatmul.mubr.bf16.gmra.mrb[16].mxu1 %v2304_v48 }
  0x58   : > { %1755 = vmatprep.mubr.msk.bf16.mxu0 %vm528_vm0, %v2307_v49  ;;  %1763 = vmatprep.mubr.msk.bf16.mxu1 %vm528_vm0, %v2310_v50 }
  0x59   : > { %839 = vmatpush1.bf16.msra.mxu1 %v1997_v51  ;;  %1321 = vmatpush1.bf16.msra.mxu0 %v1998_v52 }
  0x5a   : > { %840 = vmatprep.subr.bf16.mxu1 %v2047_v1  ;;  %1322 = vmatprep.subr.bf16.mxu0 %v2047_v1 }
  0x5d   : > { %841 = vmatpush1.bf16.msra.mxu1 %v2005_v53  ;;  %1323 = vmatpush1.bf16.msra.mxu0 %v2006_v54 }
  0x5e   : > { %842 = vmatprep.subr.bf16.mxu1 %v2047_v1  ;;  %1324 = vmatprep.subr.bf16.mxu0 %v2047_v1 }
  0x5f   : > { %650 = vmatmul.mubr.bf16.gmra.mrb[20].mxu0 %v1994_v55  ;;  %714 = vmatmul.mubr.bf16.gmra.mrb[20].mxu1 %v2336_v56 }
  0x60   : > { %1756 = vmatprep.mubr.msk.bf16.mxu0 %vm528_vm0, %v1999_v57  ;;  %1764 = vmatprep.mubr.msk.bf16.mxu1 %vm528_vm0, %v2340_v58 }
  0x61   : > { %843 = vmatpush1.bf16.msra.mxu1 %v2011_v59  ;;  %1325 = vmatpush1.bf16.msra.mxu0 %v2014_v60 }
  0x62   : > { %844 = vmatprep.subr.bf16.mxu1 %v2047_v1  ;;  %1326 = vmatprep.subr.bf16.mxu0 %v2047_v1  ;;  %v2019_v1 = vld [vmem:[%s2110_s28 + $0x4] ss:$8 sps:$4 sm:$0xff]  }
  0x65   : > { %845 = vmatpush1.bf16.msra.mxu1 %v2015_v61  ;;  %1327 = vmatpush1.bf16.msra.mxu0 %v2016_v62 }
  0x67   : > { %658 = vmatmul.mubr.bf16.gmra.mrb[24].mxu0 %v2003_v63  ;;  %722 = vmatmul.mubr.bf16.gmra.mrb[24].mxu1 %v2364_v0 }
  0x68   : > { %1757 = vmatprep.mubr.msk.bf16.mxu0 %vm528_vm0, %v2007_v2  ;;  %1765 = vmatprep.mubr.msk.bf16.mxu1 %vm528_vm0, %v2368_v3 }
  0x6f   : > { %666 = vmatmul.mubr.bf16.gmra.mrb[28].mxu0 %v2012_v4  ;;  %730 = vmatmul.mubr.bf16.gmra.mrb[28].mxu1 %v2376_v6 }
  0x70   : > { %1780 = vmatprep.mubr.msk.bf16.mxu1 %vm528_vm0, %v2019_v1  ;;  %1864 = vmatprep.mubr.msk.bf16.mxu0 %vm528_vm0, %v2179_v19 }
  0x77   : > { %855 = vmatmul.mubr.bf16.vlgmr.msra.gmra.mrb[32].mxu1 %v2017_v8  ;;  %1337 = vmatmul.mubr.bf16.vlgmr.msra.gmra.mrb[32].mxu0 %v2196_v23 }
  0x78   : > { %1781 = vmatprep.mubr.msk.bf16.mxu1 %vm528_vm0, %v2115_v5  ;;  %1865 = vmatprep.mubr.msk.bf16.mxu0 %vm528_vm0, %v2211_v27  ;;  %v2020_v5 = vld [vmem:[%s2110_s28 + $0x114] ss:$8 sps:$4 sm:$0xff]  }
  0x7f   : > { %863 = vmatmul.mubr.bf16.gmra.mrb[36].mxu1 %v2165_v15  ;;  %1345 = vmatmul.mubr.bf16.gmra.mrb[36].mxu0 %v2233_v31 }
  0x80   : > { %1782 = vmatprep.mubr.msk.bf16.mxu1 %vm528_vm0, %v2179_v19  ;;  %1866 = vmatprep.mubr.msk.bf16.mxu0 %vm528_vm0, %v2239_v33 }
  0x87   : > { %871 = vmatmul.mubr.bf16.gmra.mrb[40].mxu1 %v2196_v23  ;;  %1353 = vmatmul.mubr.bf16.gmra.mrb[40].mxu0 %v2267_v39 }
  0x88   : > { %1783 = vmatprep.mubr.msk.bf16.mxu1 %vm528_vm0, %v2211_v27  ;;  %1867 = vmatprep.mubr.msk.bf16.mxu0 %vm528_vm0, %v2273_v41 }
  0x8f   : > { %879 = vmatmul.mubr.bf16.gmra.mrb[44].mxu1 %v2233_v31  ;;  %1361 = vmatmul.mubr.bf16.gmra.mrb[44].mxu0 %v2301_v47 }
  0x90   : > { %1784 = vmatprep.mubr.msk.bf16.mxu1 %vm528_vm0, %v2239_v33  ;;  %1868 = vmatprep.mubr.msk.bf16.mxu0 %vm528_vm0, %v2307_v49 }
  0x97   : > { %887 = vmatmul.mubr.bf16.gmra.mrb[48].mxu1 %v2267_v39  ;;  %1369 = vmatmul.mubr.bf16.gmra.mrb[48].mxu0 %v1994_v55 }
  0x98   : > { %1785 = vmatprep.mubr.msk.bf16.mxu1 %vm528_vm0, %v2273_v41  ;;  %1869 = vmatprep.mubr.msk.bf16.mxu0 %vm528_vm0, %v1999_v57 }
  0x9f   : > { %895 = vmatmul.mubr.bf16.gmra.mrb[52].mxu1 %v2301_v47  ;;  %1377 = vmatmul.mubr.bf16.gmra.mrb[52].mxu0 %v2003_v63 }
  0xa0   : > { %1786 = vmatprep.mubr.msk.bf16.mxu1 %vm528_vm0, %v2307_v49  ;;  %1870 = vmatprep.mubr.msk.bf16.mxu0 %vm528_vm0, %v2007_v2 }
  0xa7   : > { %903 = vmatmul.mubr.bf16.gmra.mrb[56].mxu1 %v1994_v55  ;;  %1385 = vmatmul.mubr.bf16.gmra.mrb[56].mxu0 %v2012_v4 }
  0xa8   : > { %1787 = vmatprep.mubr.msk.bf16.mxu1 %vm528_vm0, %v1999_v57  ;;  %1871 = vmatprep.mubr.msk.bf16.mxu0 %vm528_vm0, %v2121_v7 }
  0xaf   : > { %911 = vmatmul.mubr.bf16.gmra.mrb[60].mxu1 %v2003_v63  ;;  %1393 = vmatmul.mubr.bf16.gmra.mrb[60].mxu0 %v2168_v16 }
  0xb0   : > { %1788 = vmatprep.mubr.msk.bf16.mxu1 %vm528_vm0, %v2007_v2  ;;  %1872 = vmatprep.mubr.msk.bf16.mxu0 %vm528_vm0, %v2182_v20 }
  0xb7   : > { %919 = vmatmul.mubr.bf16.gmra.mrb[64].mxu1 %v2012_v4  ;;  %1401 = vmatmul.mubr.bf16.gmra.mrb[64].mxu0 %v2201_v24 }
  0xb8   : > { %1789 = vmatprep.mubr.msk.bf16.mxu1 %vm528_vm0, %v2121_v7  ;;  %1873 = vmatprep.mubr.msk.bf16.mxu0 %vm528_vm0, %v2216_v28  ;;  %v2022_v7 = vld [vmem:[%s2110_s28 + $0x110] ss:$8 sps:$4 sm:$0xff]   ;;  %s1680_s28 = sshll.u32 %s2037_s12, 5 }
  0xb9   : > { %p220_p5 = scmp.lt.s32.totalorder %s1680_s28, 63 }
  0xbb   : > { %s2688_s28 = smov (!%p220_p5, %s1680_s28), 63 }
  0xbc   : > { %s1681_s26 = sshll.u32 %s2688_s28, 3 }
  0xbd   : > { %s2540_s4 = scalar_lea.vmem %s2680_s3, %s1681_s26 }
  0xbf   : > { %927 = vmatmul.mubr.bf16.gmra.mrb[68].mxu1 %v2168_v16  ;;  %1409 = vmatmul.mubr.bf16.gmra.mrb[68].mxu0 %v2236_v32 }
  0xc0   : > { %1790 = vmatprep.mubr.msk.bf16.mxu1 %vm528_vm0, %v2182_v20  ;;  %1874 = vmatprep.mubr.msk.bf16.mxu0 %vm528_vm0, %v2242_v34 }
  0xc7   : > { %935 = vmatmul.mubr.bf16.gmra.mrb[72].mxu1 %v2201_v24  ;;  %1417 = vmatmul.mubr.bf16.gmra.mrb[72].mxu0 %v2270_v40 }
  0xc8   : > { %1791 = vmatprep.mubr.msk.bf16.mxu1 %vm528_vm0, %v2216_v28  ;;  %1875 = vmatprep.mubr.msk.bf16.mxu0 %vm528_vm0, %v2276_v42 }
  0xcf   : > { %943 = vmatmul.mubr.bf16.gmra.mrb[76].mxu1 %v2236_v32  ;;  %1425 = vmatmul.mubr.bf16.gmra.mrb[76].mxu0 %v2304_v48 }
  0xd0   : > { %1792 = vmatprep.mubr.msk.bf16.mxu1 %vm528_vm0, %v2242_v34  ;;  %1876 = vmatprep.mubr.msk.bf16.mxu0 %vm528_vm0, %v2310_v50 }
  0xd7   : > { %951 = vmatmul.mubr.bf16.gmra.mrb[80].mxu1 %v2270_v40  ;;  %1433 = vmatmul.mubr.bf16.gmra.mrb[80].mxu0 %v2336_v56 }
  0xd8   : > { %1793 = vmatprep.mubr.msk.bf16.mxu1 %vm528_vm0, %v2276_v42  ;;  %1877 = vmatprep.mubr.msk.bf16.mxu0 %vm528_vm0, %v2340_v58 }
  0xdf   : > { %959 = vmatmul.mubr.bf16.gmra.mrb[84].mxu1 %v2304_v48  ;;  %1441 = vmatmul.mubr.bf16.gmra.mrb[84].mxu0 %v2364_v0 }
  0xe0   : > { %1794 = vmatprep.mubr.msk.bf16.mxu1 %vm528_vm0, %v2310_v50  ;;  %1878 = vmatprep.mubr.msk.bf16.mxu0 %vm528_vm0, %v2368_v3 }
  0xe7   : > { %967 = vmatmul.mubr.bf16.gmra.mrb[88].mxu1 %v2336_v56  ;;  %1449 = vmatmul.mubr.bf16.gmra.mrb[88].mxu0 %v2376_v6 }
  0xe8   : > { %1795 = vmatprep.mubr.msk.bf16.mxu1 %vm528_vm0, %v2340_v58  ;;  %1879 = vmatprep.mubr.msk.bf16.mxu0 %vm528_vm0, %v2020_v5 }
  0xef   : > { %975 = vmatmul.mubr.bf16.gmra.mrb[92].mxu1 %v2364_v0  ;;  %1457 = vmatmul.mubr.bf16.gmra.mrb[92].mxu0 %v2022_v7 }
 0x10a   : > { %v2465_v9 = vpop.f32.mrb[0].mxu0  ;;  %v2467_v10 = vpop.f32.mrb[0].mxu1 }
 0x10b   : > { %v613_v11 = vpop.f32.mrb[1].mxu0  ;;  %v677_v12 = vpop.f32.mrb[1].mxu1 }
 0x10c   : > { %v2469_v13 = vpop.f32.mrb[2].mxu0  ;;  %v2471_v14 = vpop.f32.mrb[2].mxu1 }
 0x10d   : > { %v616_v15 = vpop.f32.mrb[3].mxu0  ;;  %v680_v16 = vpop.f32.mrb[3].mxu1 }
 0x112   : > { %v2473_v17 = vpop.f32.mrb[4].mxu0  ;;  %v2475_v18 = vpop.f32.mrb[4].mxu1 }
 0x113   : > { %v621_v19 = vpop.f32.mrb[5].mxu0  ;;  %v685_v20 = vpop.f32.mrb[5].mxu1 }
 0x114   : > { %v2477_v21 = vpop.f32.mrb[6].mxu0  ;;  %v2479_v22 = vpop.f32.mrb[6].mxu1  ;;  %v2534_v20 = vld [vmem:[%s2679_s2] ss:$0 sm:$0xff] }
 0x115   : > { %v624_v23 = vpop.f32.mrb[7].mxu0  ;;  %v688_v24 = vpop.f32.mrb[7].mxu1 }
 0x11a   : > { %v2481_v25 = vpop.f32.mrb[8].mxu0  ;;  %v2483_v26 = vpop.f32.mrb[8].mxu1 }
 0x11b   : > { %v629_v27 = vpop.f32.mrb[9].mxu0  ;;  %v693_v28 = vpop.f32.mrb[9].mxu1 }
 0x11c   : > { %v2485_v29 = vpop.f32.mrb[10].mxu0  ;;  %v2487_v30 = vpop.f32.mrb[10].mxu1 }
 0x11d   : > { %v632_v31 = vpop.f32.mrb[11].mxu0  ;;  %v696_v32 = vpop.f32.mrb[11].mxu1 }
 0x122   : > { %v2489_v33 = vpop.f32.mrb[12].mxu0  ;;  %v2491_v34 = vpop.f32.mrb[12].mxu1 }
 0x123   : > { %v637_v35 = vpop.f32.mrb[13].mxu0  ;;  %v701_v36 = vpop.f32.mrb[13].mxu1 }
 0x124   : > { %v2493_v37 = vpop.f32.mrb[14].mxu0  ;;  %v2495_v38 = vpop.f32.mrb[14].mxu1 }
 0x125   : > { %v640_v39 = vpop.f32.mrb[15].mxu0  ;;  %v704_v40 = vpop.f32.mrb[15].mxu1 }
 0x12a   : > { %v2497_v41 = vpop.f32.mrb[16].mxu0  ;;  %v2499_v42 = vpop.f32.mrb[16].mxu1 }
 0x12b   : > { %v645_v43 = vpop.f32.mrb[17].mxu0  ;;  %v709_v44 = vpop.f32.mrb[17].mxu1 }
 0x12c   : > { %v2501_v45 = vpop.f32.mrb[18].mxu0  ;;  %v2503_v46 = vpop.f32.mrb[18].mxu1 }
 0x12d   : > { %v648_v47 = vpop.f32.mrb[19].mxu0  ;;  %v712_v48 = vpop.f32.mrb[19].mxu1 }
 0x132   : > { %v2505_v49 = vpop.f32.mrb[20].mxu0  ;;  %v2507_v50 = vpop.f32.mrb[20].mxu1 }
 0x133   : > { %v653_v51 = vpop.f32.mrb[21].mxu0  ;;  %v717_v52 = vpop.f32.mrb[21].mxu1 }
 0x134   : > { %v2509_v53 = vpop.f32.mrb[22].mxu0  ;;  %v2511_v54 = vpop.f32.mrb[22].mxu1 }
 0x135   : > { %v656_v55 = vpop.f32.mrb[23].mxu0  ;;  %v720_v56 = vpop.f32.mrb[23].mxu1 }
 0x13a   : > { %v2513_v57 = vpop.f32.mrb[24].mxu0  ;;  %v2515_v58 = vpop.f32.mrb[24].mxu1 }
 0x13b   : > { %v661_v59 = vpop.f32.mrb[25].mxu0  ;;  %v725_v60 = vpop.f32.mrb[25].mxu1 }
 0x13c   : > { %v2517_v61 = vpop.f32.mrb[26].mxu0  ;;  %v2519_v62 = vpop.f32.mrb[26].mxu1 }
 0x13d   : > { %v664_v63 = vpop.f32.mrb[27].mxu0  ;;  %v728_v0 = vpop.f32.mrb[27].mxu1 }
 0x142   : > { %v2522_v2 = vpop.f32.mrb[28].mxu0  ;;  %v2524_v3 = vpop.f32.mrb[28].mxu1 }
 0x143   : > { %v669_v4 = vpop.f32.mrb[29].mxu0  ;;  %v733_v6 = vpop.f32.mrb[29].mxu1 }
 0x144   : > { %v2526_v1 = vpop.f32.mrb[30].mxu0  ;;  %v2528_v8 = vpop.f32.mrb[30].mxu1 }
 0x145   : > { %v672_v5 = vpop.f32.mrb[31].mxu0  ;;  %v736_v7 = vpop.f32.mrb[31].mxu1 }
 0x14a   : > { %v856_v11 = vpop.f32.mrb[32].mxu1  ;;  %v1338_v12 = vpop.f32.mrb[32].mxu0 }
 0x14b   : > { %v857_v15 = vadd.f32 %v856_v11, %v2465_v9  ;;  %v858_v16 = vpop.f32.mrb[33].mxu1  ;;  %v1340_v19 = vpop.f32.mrb[33].mxu0 }
 0x14c   : > { %v859_v23 = vpop.f32.mrb[34].mxu1  ;;  %v1341_v24 = vpop.f32.mrb[34].mxu0 }
 0x14d   : > { %v1465_v27 = vadd.f32 %v1338_v12, %v857_v15  ;;  %v860_v28 = vadd.f32 %v859_v23, %v2469_v13  ;;  %v861_v31 = vpop.f32.mrb[35].mxu1  ;;  %v1343_v32 = vpop.f32.mrb[35].mxu0 }
 0x14f   : > { %v1504_v9 = vadd.f32 %v2534_v20, %v1465_v27  ;;  %v1466_v35 = vadd.f32 %v1341_v24, %v860_v28 }
 0x151   : > { %1537 = vst.msk [vmem:[%s2540_s4] sm:$0xff] %vm1536_vm1, %v1504_v9  ;;  %v1505_v36 = vadd.f32 %v2534_v20, %v1466_v35 }
 0x152   : > { %v864_v39 = vpop.f32.mrb[36].mxu1  ;;  %v1346_v13 = vpop.f32.mrb[36].mxu0 }
 0x153   : > { %1538 = vst.msk [vmem:[%s2540_s4 + $0x8] sm:$0xff] %vm1536_vm1, %v1505_v36  ;;  %v865_v40 = vadd.f32 %v864_v39, %v2473_v17  ;;  %v866_v43 = vpop.f32.mrb[37].mxu1  ;;  %v1348_v44 = vpop.f32.mrb[37].mxu0 }
 0x154   : > { %v867_v47 = vpop.f32.mrb[38].mxu1  ;;  %v1349_v48 = vpop.f32.mrb[38].mxu0 }
 0x155   : > { %v1467_v51 = vadd.f32 %v1346_v13, %v865_v40  ;;  %v868_v52 = vadd.f32 %v867_v47, %v2477_v21  ;;  %v869_v55 = vpop.f32.mrb[39].mxu1  ;;  %v1351_v56 = vpop.f32.mrb[39].mxu0 }
 0x157   : > { %v1506_v59 = vadd.f32 %v2534_v20, %v1467_v51  ;;  %v1468_v60 = vadd.f32 %v1349_v48, %v868_v52 }
 0x159   : > { %1539 = vst.msk [vmem:[%s2540_s4 + $0x10] sm:$0xff] %vm1536_vm1, %v1506_v59  ;;  %v1507_v63 = vadd.f32 %v2534_v20, %v1468_v60 }
 0x15a   : > { %v872_v0 = vpop.f32.mrb[40].mxu1  ;;  %v1354_v4 = vpop.f32.mrb[40].mxu0 }
 0x15b   : > { %1540 = vst.msk [vmem:[%s2540_s4 + $0x18] sm:$0xff] %vm1536_vm1, %v1507_v63  ;;  %v873_v17 = vadd.f32 %v872_v0, %v2481_v25  ;;  %v874_v6 = vpop.f32.mrb[41].mxu1  ;;  %v1356_v5 = vpop.f32.mrb[41].mxu0 }
 0x15c   : > { %v875_v21 = vpop.f32.mrb[42].mxu1  ;;  %v1357_v7 = vpop.f32.mrb[42].mxu0 }
 0x15d   : > { %v1469_v11 = vadd.f32 %v1354_v4, %v873_v17  ;;  %v876_v12 = vadd.f32 %v875_v21, %v2485_v29  ;;  %v877_v15 = vpop.f32.mrb[43].mxu1  ;;  %v1359_v16 = vpop.f32.mrb[43].mxu0 }
 0x15f   : > { %v1508_v19 = vadd.f32 %v2534_v20, %v1469_v11  ;;  %v1470_v23 = vadd.f32 %v1357_v7, %v876_v12 }
 0x161   : > { %1541 = vst.msk [vmem:[%s2540_s4 + $0x20] sm:$0xff] %vm1536_vm1, %v1508_v19  ;;  %v1509_v24 = vadd.f32 %v2534_v20, %v1470_v23 }
 0x162   : > { %v880_v27 = vpop.f32.mrb[44].mxu1  ;;  %v1362_v28 = vpop.f32.mrb[44].mxu0 }
 0x163   : > { %1542 = vst.msk [vmem:[%s2540_s4 + $0x28] sm:$0xff] %vm1536_vm1, %v1509_v24  ;;  %v881_v25 = vadd.f32 %v880_v27, %v2489_v33  ;;  %v882_v31 = vpop.f32.mrb[45].mxu1  ;;  %v1364_v32 = vpop.f32.mrb[45].mxu0 }
 0x164   : > { %v883_v29 = vpop.f32.mrb[46].mxu1  ;;  %v1365_v9 = vpop.f32.mrb[46].mxu0 }
 0x165   : > { %v1471_v35 = vadd.f32 %v1362_v28, %v881_v25  ;;  %v884_v36 = vadd.f32 %v883_v29, %v2493_v37  ;;  %v885_v39 = vpop.f32.mrb[47].mxu1  ;;  %v1367_v13 = vpop.f32.mrb[47].mxu0 }
 0x167   : > { %v1510_v40 = vadd.f32 %v2534_v20, %v1471_v35  ;;  %v1472_v43 = vadd.f32 %v1365_v9, %v884_v36 }
 0x169   : > { %1543 = vst.msk [vmem:[%s2540_s4 + $0x30] sm:$0xff] %vm1536_vm1, %v1510_v40  ;;  %v1511_v44 = vadd.f32 %v2534_v20, %v1472_v43 }
 0x16a   : > { %v888_v47 = vpop.f32.mrb[48].mxu1  ;;  %v1370_v48 = vpop.f32.mrb[48].mxu0 }
 0x16b   : > { %1544 = vst.msk [vmem:[%s2540_s4 + $0x38] sm:$0xff] %vm1536_vm1, %v1511_v44  ;;  %v889_v33 = vadd.f32 %v888_v47, %v2497_v41  ;;  %v890_v51 = vpop.f32.mrb[49].mxu1  ;;  %v1372_v52 = vpop.f32.mrb[49].mxu0 }
 0x16c   : > { %v891_v37 = vpop.f32.mrb[50].mxu1  ;;  %v1373_v55 = vpop.f32.mrb[50].mxu0 }
 0x16d   : > { %v1473_v56 = vadd.f32 %v1370_v48, %v889_v33  ;;  %v892_v59 = vadd.f32 %v891_v37, %v2501_v45  ;;  %v893_v60 = vpop.f32.mrb[51].mxu1  ;;  %v1375_v63 = vpop.f32.mrb[51].mxu0 }
 0x16f   : > { %v1512_v0 = vadd.f32 %v2534_v20, %v1473_v56  ;;  %v1474_v4 = vadd.f32 %v1373_v55, %v892_v59 }
 0x171   : > { %1545 = vst.msk [vmem:[%s2540_s4 + $0x40] sm:$0xff] %vm1536_vm1, %v1512_v0  ;;  %v1513_v17 = vadd.f32 %v2534_v20, %v1474_v4 }
 0x172   : > { %v896_v6 = vpop.f32.mrb[52].mxu1  ;;  %v1378_v5 = vpop.f32.mrb[52].mxu0 }
 0x173   : > { %1546 = vst.msk [vmem:[%s2540_s4 + $0x48] sm:$0xff] %vm1536_vm1, %v1513_v17  ;;  %v897_v41 = vadd.f32 %v896_v6, %v2505_v49  ;;  %v898_v21 = vpop.f32.mrb[53].mxu1  ;;  %v1380_v7 = vpop.f32.mrb[53].mxu0 }
 0x174   : > { %v899_v45 = vpop.f32.mrb[54].mxu1  ;;  %v1381_v11 = vpop.f32.mrb[54].mxu0 }
 0x175   : > { %v1475_v12 = vadd.f32 %v1378_v5, %v897_v41  ;;  %v900_v15 = vadd.f32 %v899_v45, %v2509_v53  ;;  %v901_v16 = vpop.f32.mrb[55].mxu1  ;;  %v1383_v19 = vpop.f32.mrb[55].mxu0 }
 0x177   : > { %v1514_v23 = vadd.f32 %v2534_v20, %v1475_v12  ;;  %v1476_v24 = vadd.f32 %v1381_v11, %v900_v15 }
 0x179   : > { %1547 = vst.msk [vmem:[%s2540_s4 + $0x50] sm:$0xff] %vm1536_vm1, %v1514_v23  ;;  %v1515_v27 = vadd.f32 %v2534_v20, %v1476_v24 }
 0x17a   : > { %v904_v28 = vpop.f32.mrb[56].mxu1  ;;  %v1386_v25 = vpop.f32.mrb[56].mxu0 }
 0x17b   : > { %1548 = vst.msk [vmem:[%s2540_s4 + $0x58] sm:$0xff] %vm1536_vm1, %v1515_v27  ;;  %v905_v49 = vadd.f32 %v904_v28, %v2513_v57  ;;  %v906_v31 = vpop.f32.mrb[57].mxu1  ;;  %v1388_v32 = vpop.f32.mrb[57].mxu0 }
 0x17c   : > { %v907_v53 = vpop.f32.mrb[58].mxu1  ;;  %v1389_v29 = vpop.f32.mrb[58].mxu0 }
 0x17d   : > { %v1477_v9 = vadd.f32 %v1386_v25, %v905_v49  ;;  %v908_v35 = vadd.f32 %v907_v53, %v2517_v61  ;;  %v909_v36 = vpop.f32.mrb[59].mxu1  ;;  %v1391_v39 = vpop.f32.mrb[59].mxu0 }
 0x17f   : > { %v1516_v13 = vadd.f32 %v2534_v20, %v1477_v9  ;;  %v1478_v40 = vadd.f32 %v1389_v29, %v908_v35 }
 0x181   : > { %1549 = vst.msk [vmem:[%s2540_s4 + $0x60] sm:$0xff] %vm1536_vm1, %v1516_v13  ;;  %v1517_v43 = vadd.f32 %v2534_v20, %v1478_v40 }
 0x182   : > { %v912_v44 = vpop.f32.mrb[60].mxu1  ;;  %v1394_v47 = vpop.f32.mrb[60].mxu0 }
 0x183   : > { %1550 = vst.msk [vmem:[%s2540_s4 + $0x68] sm:$0xff] %vm1536_vm1, %v1517_v43  ;;  %v913_v57 = vadd.f32 %v912_v44, %v2522_v2  ;;  %v914_v48 = vpop.f32.mrb[61].mxu1  ;;  %v1396_v33 = vpop.f32.mrb[61].mxu0 }
 0x184   : > { %v915_v61 = vpop.f32.mrb[62].mxu1  ;;  %v1397_v51 = vpop.f32.mrb[62].mxu0 }
 0x185   : > { %v1479_v52 = vadd.f32 %v1394_v47, %v913_v57  ;;  %v916_v37 = vadd.f32 %v915_v61, %v2526_v1  ;;  %v917_v55 = vpop.f32.mrb[63].mxu1  ;;  %v1399_v56 = vpop.f32.mrb[63].mxu0 }
 0x187   : > { %v1518_v59 = vadd.f32 %v2534_v20, %v1479_v52  ;;  %v1480_v60 = vadd.f32 %v1397_v51, %v916_v37 }
 0x189   : > { %1551 = vst.msk [vmem:[%s2540_s4 + $0x70] sm:$0xff] %vm1536_vm1, %v1518_v59  ;;  %v1519_v63 = vadd.f32 %v2534_v20, %v1480_v60 }
 0x18a   : > { %v920_v0 = vpop.f32.mrb[64].mxu1  ;;  %v1402_v4 = vpop.f32.mrb[64].mxu0 }
 0x18b   : > { %1552 = vst.msk [vmem:[%s2540_s4 + $0x78] sm:$0xff] %vm1536_vm1, %v1519_v63  ;;  %v921_v2 = vadd.f32 %v920_v0, %v2467_v10  ;;  %v922_v17 = vpop.f32.mrb[65].mxu1  ;;  %v1404_v6 = vpop.f32.mrb[65].mxu0 }
 0x18c   : > { %v923_v1 = vpop.f32.mrb[66].mxu1  ;;  %v1405_v5 = vpop.f32.mrb[66].mxu0 }
 0x18d   : > { %v1481_v41 = vadd.f32 %v1402_v4, %v921_v2  ;;  %v924_v21 = vadd.f32 %v923_v1, %v2471_v14  ;;  %v925_v7 = vpop.f32.mrb[67].mxu1  ;;  %v1407_v45 = vpop.f32.mrb[67].mxu0 }
 0x18f   : > { %v1520_v11 = vadd.f32 %v2534_v20, %v1481_v41  ;;  %v1482_v12 = vadd.f32 %v1405_v5, %v924_v21 }
 0x191   : > { %1553 = vst.msk [vmem:[%s2540_s4 + $0x80] sm:$0xff] %vm1536_vm1, %v1520_v11  ;;  %v1521_v15 = vadd.f32 %v2534_v20, %v1482_v12 }
 0x192   : > { %v928_v16 = vpop.f32.mrb[68].mxu1  ;;  %v1410_v19 = vpop.f32.mrb[68].mxu0 }
 0x193   : > { %1554 = vst.msk [vmem:[%s2540_s4 + $0x88] sm:$0xff] %vm1536_vm1, %v1521_v15  ;;  %v929_v10 = vadd.f32 %v928_v16, %v2475_v18  ;;  %v930_v23 = vpop.f32.mrb[69].mxu1  ;;  %v1412_v24 = vpop.f32.mrb[69].mxu0 }
 0x194   : > { %v931_v14 = vpop.f32.mrb[70].mxu1  ;;  %v1413_v27 = vpop.f32.mrb[70].mxu0 }
 0x195   : > { %v1483_v28 = vadd.f32 %v1410_v19, %v929_v10  ;;  %v932_v25 = vadd.f32 %v931_v14, %v2479_v22  ;;  %v933_v49 = vpop.f32.mrb[71].mxu1  ;;  %v1415_v31 = vpop.f32.mrb[71].mxu0 }
 0x197   : > { %v1522_v32 = vadd.f32 %v2534_v20, %v1483_v28  ;;  %v1484_v53 = vadd.f32 %v1413_v27, %v932_v25 }
 0x199   : > { %1555 = vst.msk [vmem:[%s2540_s4 + $0x90] sm:$0xff] %vm1536_vm1, %v1522_v32  ;;  %v1523_v29 = vadd.f32 %v2534_v20, %v1484_v53 }
 0x19a   : > { %v936_v9 = vpop.f32.mrb[72].mxu1  ;;  %v1418_v35 = vpop.f32.mrb[72].mxu0 }
 0x19b   : > { %1556 = vst.msk [vmem:[%s2540_s4 + $0x98] sm:$0xff] %vm1536_vm1, %v1523_v29  ;;  %v937_v18 = vadd.f32 %v936_v9, %v2483_v26  ;;  %v938_v36 = vpop.f32.mrb[73].mxu1  ;;  %v1420_v39 = vpop.f32.mrb[73].mxu0 }
 0x19c   : > { %v939_v22 = vpop.f32.mrb[74].mxu1  ;;  %v1421_v13 = vpop.f32.mrb[74].mxu0 }
 0x19d   : > { %v1485_v40 = vadd.f32 %v1418_v35, %v937_v18  ;;  %v940_v43 = vadd.f32 %v939_v22, %v2487_v30  ;;  %v941_v44 = vpop.f32.mrb[75].mxu1  ;;  %v1423_v47 = vpop.f32.mrb[75].mxu0 }
 0x19f   : > { %v1524_v57 = vadd.f32 %v2534_v20, %v1485_v40  ;;  %v1486_v48 = vadd.f32 %v1421_v13, %v940_v43 }
 0x1a1   : > { %1557 = vst.msk [vmem:[%s2540_s4 + $0xa0] sm:$0xff] %vm1536_vm1, %v1524_v57  ;;  %v1525_v33 = vadd.f32 %v2534_v20, %v1486_v48 }
 0x1a2   : > { %v944_v61 = vpop.f32.mrb[76].mxu1  ;;  %v1426_v51 = vpop.f32.mrb[76].mxu0 }
 0x1a3   : > { %1558 = vst.msk [vmem:[%s2540_s4 + $0xa8] sm:$0xff] %vm1536_vm1, %v1525_v33  ;;  %v945_v26 = vadd.f32 %v944_v61, %v2491_v34  ;;  %v946_v52 = vpop.f32.mrb[77].mxu1  ;;  %v1428_v37 = vpop.f32.mrb[77].mxu0 }
 0x1a4   : > { %v947_v30 = vpop.f32.mrb[78].mxu1  ;;  %v1429_v55 = vpop.f32.mrb[78].mxu0 }
 0x1a5   : > { %v1487_v56 = vadd.f32 %v1426_v51, %v945_v26  ;;  %v948_v59 = vadd.f32 %v947_v30, %v2495_v38  ;;  %v949_v60 = vpop.f32.mrb[79].mxu1  ;;  %v1431_v63 = vpop.f32.mrb[79].mxu0 }
 0x1a7   : > { %v1526_v0 = vadd.f32 %v2534_v20, %v1487_v56  ;;  %v1488_v4 = vadd.f32 %v1429_v55, %v948_v59 }
 0x1a9   : > { %1559 = vst.msk [vmem:[%s2540_s4 + $0xb0] sm:$0xff] %vm1536_vm1, %v1526_v0  ;;  %v1527_v2 = vadd.f32 %v2534_v20, %v1488_v4 }
 0x1aa   : > { %v952_v17 = vpop.f32.mrb[80].mxu1  ;;  %v1434_v6 = vpop.f32.mrb[80].mxu0 }
 0x1ab   : > { %1560 = vst.msk [vmem:[%s2540_s4 + $0xb8] sm:$0xff] %vm1536_vm1, %v1527_v2  ;;  %v953_v34 = vadd.f32 %v952_v17, %v2499_v42  ;;  %v954_v1 = vpop.f32.mrb[81].mxu1  ;;  %v1436_v5 = vpop.f32.mrb[81].mxu0 }
 0x1ac   : > { %v955_v38 = vpop.f32.mrb[82].mxu1  ;;  %v1437_v41 = vpop.f32.mrb[82].mxu0 }
 0x1ad   : > { %v1489_v21 = vadd.f32 %v1434_v6, %v953_v34  ;;  %v956_v7 = vadd.f32 %v955_v38, %v2503_v46  ;;  %v957_v45 = vpop.f32.mrb[83].mxu1  ;;  %v1439_v11 = vpop.f32.mrb[83].mxu0 }
 0x1af   : > { %v1528_v12 = vadd.f32 %v2534_v20, %v1489_v21  ;;  %v1490_v15 = vadd.f32 %v1437_v41, %v956_v7 }
 0x1b1   : > { %1561 = vst.msk [vmem:[%s2540_s4 + $0xc0] sm:$0xff] %vm1536_vm1, %v1528_v12  ;;  %v1529_v16 = vadd.f32 %v2534_v20, %v1490_v15 }
 0x1b2   : > { %v960_v19 = vpop.f32.mrb[84].mxu1  ;;  %v1442_v10 = vpop.f32.mrb[84].mxu0 }
 0x1b3   : > { %1562 = vst.msk [vmem:[%s2540_s4 + $0xc8] sm:$0xff] %vm1536_vm1, %v1529_v16  ;;  %v961_v42 = vadd.f32 %v960_v19, %v2507_v50  ;;  %v962_v23 = vpop.f32.mrb[85].mxu1  ;;  %v1444_v24 = vpop.f32.mrb[85].mxu0 }
 0x1b4   : > { %v963_v46 = vpop.f32.mrb[86].mxu1  ;;  %v1445_v14 = vpop.f32.mrb[86].mxu0 }
 0x1b5   : > { %v1491_v27 = vadd.f32 %v1442_v10, %v961_v42  ;;  %v964_v28 = vadd.f32 %v963_v46, %v2511_v54  ;;  %v965_v25 = vpop.f32.mrb[87].mxu1  ;;  %v1447_v49 = vpop.f32.mrb[87].mxu0 }
 0x1b7   : > { %v1530_v31 = vadd.f32 %v2534_v20, %v1491_v27  ;;  %v1492_v32 = vadd.f32 %v1445_v14, %v964_v28 }
 0x1b9   : > { %1563 = vst.msk [vmem:[%s2540_s4 + $0xd0] sm:$0xff] %vm1536_vm1, %v1530_v31  ;;  %v1531_v53 = vadd.f32 %v2534_v20, %v1492_v32 }
 0x1ba   : > { %v968_v29 = vpop.f32.mrb[88].mxu1  ;;  %v1450_v9 = vpop.f32.mrb[88].mxu0 }
 0x1bb   : > { %1564 = vst.msk [vmem:[%s2540_s4 + $0xd8] sm:$0xff] %vm1536_vm1, %v1531_v53  ;;  %v969_v50 = vadd.f32 %v968_v29, %v2515_v58  ;;  %v970_v35 = vpop.f32.mrb[89].mxu1  ;;  %v1452_v18 = vpop.f32.mrb[89].mxu0 }
 0x1bc   : > { %v971_v54 = vpop.f32.mrb[90].mxu1  ;;  %v1453_v36 = vpop.f32.mrb[90].mxu0 }
 0x1bd   : > { %v1493_v39 = vadd.f32 %v1450_v9, %v969_v50  ;;  %v972_v22 = vadd.f32 %v971_v54, %v2519_v62  ;;  %v973_v13 = vpop.f32.mrb[91].mxu1  ;;  %v1455_v40 = vpop.f32.mrb[91].mxu0 }
 0x1bf   : > { %v1532_v43 = vadd.f32 %v2534_v20, %v1493_v39  ;;  %v1494_v44 = vadd.f32 %v1453_v36, %v972_v22 }
 0x1c1   : > { %1565 = vst.msk [vmem:[%s2540_s4 + $0xe0] sm:$0xff] %vm1536_vm1, %v1532_v43  ;;  %v1533_v47 = vadd.f32 %v2534_v20, %v1494_v44 }
 0x1c2   : > { %v976_v57 = vpop.f32.mrb[92].mxu1  ;;  %v1458_v58 = vpop.f32.mrb[92].mxu0 }
 0x1c3   : > { %1566 = vst.msk [vmem:[%s2540_s4 + $0xe8] sm:$0xff] %vm1536_vm1, %v1533_v47  ;;  %v977_v48 = vadd.f32 %v976_v57, %v2524_v3  ;;  %v978_v33 = vpop.f32.mrb[93].mxu1  ;;  %v1460_v61 = vpop.f32.mrb[93].mxu0 }
 0x1c4   : > { %v979_v62 = vpop.f32.mrb[94].mxu1  ;;  %v1461_v51 = vpop.f32.mrb[94].mxu0 }
 0x1c5   : > { %v1495_v26 = vadd.f32 %v1458_v58, %v977_v48  ;;  %v980_v52 = vadd.f32 %v979_v62, %v2528_v8  ;;  %v981_v37 = vpop.f32.mrb[95].mxu1  ;;  %v1463_v30 = vpop.f32.mrb[95].mxu0 }
 0x1c7   : > { %v1534_v55 = vadd.f32 %v2534_v20, %v1495_v26  ;;  %v1496_v56 = vadd.f32 %v1461_v51, %v980_v52 }
 0x1c9   : > { %1567 = vst.msk [vmem:[%s2540_s4 + $0xf0] sm:$0xff] %vm1536_vm1, %v1534_v55  ;;  %v1535_v59 = vadd.f32 %v2534_v20, %v1496_v56 }
 0x1cb   : > { %1568 = vst.msk [vmem:[%s2540_s4 + $0xf8] sm:$0xff] %vm1536_vm1, %v1535_v59 }
 0x1cc PF: > { %s13_s14 = sadd.s32 1, %s2045_s14   ;;  %s2681_s12 = smov %s2041_s13 }
 0x1cd   : > { %p10_p6 = scmp.ge.s32.totalorder %s13_s14, 4   ;;  %s2682_s13 = smov %s2684_s15 }
 0x1cf   :  { %12 = sbr.rel (!%p10_p6) target bundleno = 2 (0x2), region = 70 }

// kernel: _lambda_.6
= control target key start
LH: loop header
LB: loop body
LE: loop exit
PB: predicated region body
PF: predicated region fallthrough
CT: control target
= control target key end

     0   :  { %s1956_s12 = smov 0   ;;  %s1958_s13 = smov 0   ;;  %s2495_s0 = inlined_call_operand.vmem [shape: bf16[576,96], index: 0, kind: input, shape index: {}]   ;;  %s2496_s1 = inlined_call_operand.vmem [shape: bf16[3,96,32], index: 1, kind: input, shape index: {}]   ;;  %s2497_s2 = inlined_call_operand.vmem [shape: f32[1,32], index: 2, kind: input, shape index: {}]   ;;  %s2498_s3 = inlined_call_operand.vmem [shape: f32[512,32], index: 3, kind: output, shape index: {}]  }
   0x1   :  { %s1960_s14 = smov 0  }
   0x2 LB: > { %s25_s15 = sadd.s32 1, %s1929_s13  ;;  %p1464_p0 = scmp.ge.s32.totalorder %s1933_s14, 1  ;;  %s1933_s14 = sphi %s1960_s14, %s13_s14   ;;  %s1929_s13 = sphi %s1958_s13, %s2500_s13   ;;  %s1925_s12 = sphi %s1956_s12, %s2499_s12  }
   0x3   : > { %p27_p1 = scmp.ge.s32.totalorder %s25_s15, 2  ;;  %p169_p2 = scmp.lt.s32.totalorder %s1933_s14, 3 }
   0x5   : > { %s2502_s15 = smov (%p27_p1, %s25_s15), 0  ;;  %p170_p3 = pnand %p1464_p0, %p169_p2 }
   0x6   : > { %v1893_v0 = vld [vmem:[%s2496_s1 + $0x30] sm:$0xff] (!%p170_p3)   ;;  %s203_s18 = smul.u32 (!%p170_p3), 36, %s1925_s12  ;;  %v1983_v1 = vld [vmem:[%s2496_s1] sm:$0xff] (!%p170_p3)   ;;  %v1895_v2 = vld [vmem:[%s2496_s1 + $0x38] sm:$0xff] (!%p170_p3)   ;;  %v1935_v13 = vmov (!%p170_p3), 0   ;;  %vm435_vm0 = vcmask (!%p170_p3), 785408  }
   0x7   : > { %173 = sbr.rel (%p170_p3) target bundleno = 340 (0x154), region = 32  ;;  %1660 = vmatprep.subr.bf16.mxu1 (!%p170_p3), %v1893_v0  ;;  %1704 = vmatprep.subr.bf16.mxu0 (!%p170_p3), %v1983_v1  ;;  %v1992_v3 = vld [vmem:[%s2496_s1 + $0x8] sm:$0xff] (!%p170_p3)   ;;  %v1897_v4 = vld [vmem:[%s2496_s1 + $0x40] sm:$0xff] (!%p170_p3)   ;;  %v2002_v5 = vld [vmem:[%s2496_s1 + $0x10] sm:$0xff] (!%p170_p3)   ;;  %s1466_s7 = sshll.u32 (!%p170_p3), %s1925_s12, 5  ;;  %vm1323_vm1 = vcmask (!%p170_p3), 261120  }
   0x8   : > { %p204_p4 = scmp.lt.s32.totalorder (!%p170_p3), %s203_s18, 71  ;;  %1661 = vmatpush3.bf16.msra.mxu1 (!%p170_p3), %v1893_v0  ;;  %1705 = vmatpush3.bf16.msra.mxu0 (!%p170_p3), %v1983_v1  ;;  %v1899_v6 = vld [vmem:[%s2496_s1 + $0x48] sm:$0xff] (!%p170_p3)   ;;  %v2012_v7 = vld [vmem:[%s2496_s1 + $0x18] sm:$0xff] (!%p170_p3)   ;;  %v1901_v8 = vld [vmem:[%s2496_s1 + $0x50] sm:$0xff] (!%p170_p3)   ;;  %p217_p5 = scmp.lt.s32.totalorder (!%p170_p3), %s1466_s7, 63 }
   0x9   : > { %1662 = vmatprep.subr.bf16.mxu1 (!%p170_p3), %v1895_v2  ;;  %1706 = vmatprep.subr.bf16.mxu0 (!%p170_p3), %v1992_v3  ;;  %v2030_v12 = vld [vmem:[%s2496_s1 + $0x20] sm:$0xff] (!%p170_p3)   ;;  %v1903_v22 = vld [vmem:[%s2496_s1 + $0x58] sm:$0xff] (!%p170_p3)   ;;  %v2046_v23 = vld [vmem:[%s2496_s1 + $0x28] sm:$0xff] (!%p170_p3)  }
   0xa   : > { %v1905_v31 = vld [vmem:[%s2496_s1 + $0x60] sm:$0xff] (!%p170_p3)   ;;  %v1906_v38 = vld [vmem:[%s2496_s1 + $0x68] sm:$0xff] (!%p170_p3)   ;;  %v1907_v45 = vld [vmem:[%s2496_s1 + $0x70] sm:$0xff] (!%p170_p3)  }
   0xb   : > { %v1908_v52 = vld [vmem:[%s2496_s1 + $0x78] sm:$0xff] (!%p170_p3)   ;;  %v1909_v0 = vld [vmem:[%s2496_s1 + $0x80] sm:$0xff] (!%p170_p3)  }
   0xc   : > { %1663 = vmatpush3.bf16.msra.mxu1 (!%p170_p3), %v1895_v2  ;;  %1707 = vmatpush3.bf16.msra.mxu0 (!%p170_p3), %v1992_v3 }
   0xd   : > { %1664 = vmatprep.subr.bf16.mxu1 (!%p170_p3), %v1897_v4  ;;  %1708 = vmatprep.subr.bf16.mxu0 (!%p170_p3), %v2002_v5 }
   0xe   : > { %s2504_s18 = smov (!%p204_p4, %s203_s18), 71  ;;  %s2506_s7 = smov (!%p217_p5, %s1466_s7), 63 }
   0xf   : > { %s1465_s29 = sshll.u32 %s2504_s18, 2  ;;  %s1467_s8 = sshll.u32 %s2506_s7, 3 }
  0x10   : > { %s2017_s9 = scalar_lea.vmem %s2495_s0, %s1465_s29  ;;  %1665 = vmatpush3.bf16.msra.mxu1 %v1897_v4  ;;  %1709 = vmatpush3.bf16.msra.mxu0 %v2002_v5  ;;  %s2387_s12 = scalar_lea.vmem %s2498_s3, %s1467_s8 }
  0x11   : > { %1666 = vmatprep.subr.bf16.mxu1 %v1899_v6  ;;  %v228_v9 = vld [vmem:[%s2017_s9 + $0x8] sm:$0xf]  ;;  %v229_v10 = vld [vmem:[%s2017_s9 + $0xc] sm:$0xf]  ;;  %v226_v11 = vld [vmem:[%s2017_s9] sm:$0xf]  ;;  %1710 = vmatprep.subr.bf16.mxu0 %v2012_v7 }
  0x12   : > { %v260_v14 = vmax.bf16 %v1935_v13, %v228_v9  ;;  %v261_v15 = vmax.bf16 %v1935_v13, %v229_v10  ;;  %v227_v16 = vld [vmem:[%s2017_s9 + $0x4] sm:$0xf]  ;;  %v258_v17 = vmax.bf16 %v1935_v13, %v226_v11  ;;  %v230_v19 = vld [vmem:[%s2017_s9 + $0x10] sm:$0xf]  ;;  %v231_v21 = vld [vmem:[%s2017_s9 + $0x14] sm:$0xf] }
  0x13   : > { %v259_v18 = vmax.bf16 %v1935_v13, %v227_v16  ;;  %v232_v25 = vld [vmem:[%s2017_s9 + $0x18] sm:$0xf]  ;;  %v233_v26 = vld [vmem:[%s2017_s9 + $0x1c] sm:$0xf]  ;;  %v262_v27 = vmax.bf16 %v1935_v13, %v230_v19  ;;  %v263_v28 = vmax.bf16 %v1935_v13, %v231_v21  ;;  %v234_v33 = vld [vmem:[%s2017_s9 + $0x20] sm:$0xf] }
  0x14   : > { %1667 = vmatpush3.bf16.msra.mxu1 %v1899_v6  ;;  %v1480_v20 = vcombine.low %v260_v14, %v261_v15  ;;  %1711 = vmatpush3.bf16.msra.mxu0 %v2012_v7  ;;  %v264_v29 = vmax.bf16 %v1935_v13, %v232_v25  ;;  %v265_v30 = vmax.bf16 %v1935_v13, %v233_v26  ;;  %v235_v34 = vld [vmem:[%s2017_s9 + $0x24] sm:$0xf]  ;;  %v236_v36 = vld [vmem:[%s2017_s9 + $0x28] sm:$0xf]  ;;  %v237_v37 = vld [vmem:[%s2017_s9 + $0x2c] sm:$0xf] }
  0x15   : > { %1668 = vmatprep.subr.bf16.mxu1 %v1901_v8  ;;  %v1518_v24 = vcombine.low %v258_v17, %v259_v18  ;;  %1712 = vmatprep.subr.bf16.mxu0 %v2030_v12  ;;  %v1481_v32 = vcombine.low %v262_v27, %v263_v28  ;;  %v266_v39 = vmax.bf16 %v1935_v13, %v234_v33  ;;  %v238_v43 = vld [vmem:[%s2017_s9 + $0x30] sm:$0xf]  ;;  %v239_v44 = vld [vmem:[%s2017_s9 + $0x34] sm:$0xf]  ;;  %v240_v46 = vld [vmem:[%s2017_s9 + $0x38] sm:$0xf] }
  0x16   : > { %1672 = vmatprep.mubr.msk.bf16.mxu1 %vm435_vm0, %v1480_v20  ;;  %v1482_v35 = vcombine.low %v264_v29, %v265_v30  ;;  %v267_v40 = vmax.bf16 %v1935_v13, %v235_v34  ;;  %v268_v41 = vmax.bf16 %v1935_v13, %v236_v36  ;;  %v269_v42 = vmax.bf16 %v1935_v13, %v237_v37  ;;  %v241_v47 = vld [vmem:[%s2017_s9 + $0x3c] sm:$0xf]  ;;  %v242_v55 = vld [vmem:[%s2017_s9 + $0x40] sm:$0xf]  ;;  %v243_v56 = vld [vmem:[%s2017_s9 + $0x44] sm:$0xf] }
  0x17   : > { %1716 = vmatprep.mubr.msk.bf16.mxu0 %vm435_vm0, %v1518_v24  ;;  %v270_v50 = vmax.bf16 %v1935_v13, %v238_v43  ;;  %v271_v51 = vmax.bf16 %v1935_v13, %v239_v44  ;;  %v272_v53 = vmax.bf16 %v1935_v13, %v240_v46  ;;  %v273_v54 = vmax.bf16 %v1935_v13, %v241_v47  ;;  %v244_v57 = vld [vmem:[%s2017_s9 + $0x48] sm:$0xf]  ;;  %v245_v58 = vld [vmem:[%s2017_s9 + $0x4c] sm:$0xf]  ;;  %v850_v59 = vld [vmem:[%s2017_s9 + $0x10] sm:$0xf] }
  0x18   : > { %1669 = vmatpush3.bf16.msra.mxu1 %v1901_v8  ;;  %1713 = vmatpush3.bf16.msra.mxu0 %v2030_v12  ;;  %v1483_v48 = vcombine.low %v266_v39, %v267_v40  ;;  %v2089_v49 = vcombine.low %v268_v41, %v269_v42  ;;  %v851_v60 = vld [vmem:[%s2017_s9 + $0x14] sm:$0xf]  ;;  %v302_v61 = vld [vmem:[%s2017_s9 + $0x80] sm:$0xf]  ;;  %v303_v62 = vld [vmem:[%s2017_s9 + $0x84] sm:$0xf]  ;;  %v2118_v2 = vmax.bf16 %v1935_v13, %v243_v56 }
  0x19   : > { %1670 = vmatprep.subr.bf16.mxu1 %v1903_v22  ;;  %1714 = vmatprep.subr.bf16.mxu0 %v2046_v23  ;;  %v1485_v63 = vcombine.low %v270_v50, %v271_v51  ;;  %v865_v4 = vld [vmem:[%s2017_s9 + $0x4c] sm:$0xf]  ;;  %v866_v6 = vld [vmem:[%s2017_s9 + $0x50] sm:$0xf]  ;;  %v2124_v8 = vcombine.low %v272_v53, %v273_v54  ;;  %v2127_v9 = vmax.bf16 %v1935_v13, %v244_v57  ;;  %v867_v11 = vld [vmem:[%s2017_s9 + $0x54] sm:$0xf] }
  0x1a   : > { %v2130_v10 = vmax.bf16 %v1935_v13, %v245_v58  ;;  %v868_v14 = vld [vmem:[%s2017_s9 + $0x58] sm:$0xf]  ;;  %v869_v15 = vld [vmem:[%s2017_s9 + $0x5c] sm:$0xf]  ;;  %v2137_v16 = vmax.bf16 %v1935_v13, %v850_v59  ;;  %v2140_v17 = vmax.bf16 %v1935_v13, %v302_v61  ;;  %v2143_v18 = vmax.bf16 %v1935_v13, %v303_v62  ;;  %v870_v19 = vld [vmem:[%s2017_s9 + $0x60] sm:$0xf] }
  0x1b   : > { %v872_v21 = vld [vmem:[%s2017_s9 + $0x68] sm:$0xf]  ;;  %v2156_v24 = vmax.bf16 %v1935_v13, %v865_v4  ;;  %v2159_v25 = vmax.bf16 %v1935_v13, %v866_v6  ;;  %v873_v26 = vld [vmem:[%s2017_s9 + $0x6c] sm:$0xf]  ;;  %v2165_v28 = vmax.bf16 %v1935_v13, %v867_v11  ;;  %v2168_v29 = vmax.bf16 %v1935_v13, %v868_v14  ;;  %v876_v37 = vld [vmem:[%s2017_s9 + $0x78] sm:$0xf] }
  0x1c   : > { %1671 = vmatpush3.bf16.msra.mxu1 %v1903_v22  ;;  %1715 = vmatpush3.bf16.msra.mxu0 %v2046_v23  ;;  %v2149_v22 = vmax.bf16 %v1935_v13, %v851_v60  ;;  %v1495_v27 = vcombine.low %v2140_v17, %v2143_v18  ;;  %v2171_v30 = vmax.bf16 %v1935_v13, %v869_v15  ;;  %v1910_v39 = vld [vmem:[%s2496_s1 + $0x88] sm:$0xff]   ;;  %v878_v43 = vld [vmem:[%s2017_s9 + $0x80] sm:$0xf]  ;;  %v879_v44 = vld [vmem:[%s2017_s9 + $0x84] sm:$0xf] }
  0x1d   : > { %1792 = vmatprep.subr.bf16.mxu1 %v1983_v1  ;;  %1748 = vmatprep.subr.bf16.mxu0 %v1905_v31  ;;  %v2178_v34 = vmax.bf16 %v1935_v13, %v870_v19  ;;  %v2184_v36 = vmax.bf16 %v1935_v13, %v872_v21  ;;  %v1561_v40 = vcombine.low %v2159_v25, %v2165_v28  ;;  %v880_v47 = vld [vmem:[%s2017_s9 + $0x88] sm:$0xf]  ;;  %v246_v60 = vld [vmem:[%s2017_s9 + $0x50] sm:$0xf]  ;;  %v247_v61 = vld [vmem:[%s2017_s9 + $0x54] sm:$0xf] }
  0x1e   : > { %v1562_v41 = vcombine.low %v2168_v29, %v2171_v30  ;;  %v2197_v42 = vmax.bf16 %v1935_v13, %v873_v26  ;;  %v2220_v51 = vmax.bf16 %v1935_v13, %v876_v37  ;;  %v2229_v53 = vmax.bf16 %v1935_v13, %v878_v43  ;;  %v852_v62 = vld [vmem:[%s2017_s9 + $0x18] sm:$0xf]  ;;  %v854_v4 = vld [vmem:[%s2017_s9 + $0x20] sm:$0xf]  ;;  %v855_v6 = vld [vmem:[%s2017_s9 + $0x24] sm:$0xf] }
  0x1f   : > { %1673 = vmatmul.mubr.msk.bf16.vlgmr.msra.gmra.mrb[0].mxu1 %vm435_vm0, %v1481_v32  ;;  %1717 = vmatmul.mubr.msk.bf16.vlgmr.msra.gmra.mrb[0].mxu0 %vm435_vm0, %v1480_v20  ;;  %v871_v20 = vld [vmem:[%s2017_s9 + $0x64] sm:$0xf]  ;;  %v2232_v54 = vmax.bf16 %v1935_v13, %v879_v44  ;;  %v2238_v56 = vmax.bf16 %v1935_v13, %v880_v47  ;;  %v2252_v59 = vcombine.low %v2127_v9, %v2130_v10  ;;  %v857_v37 = vld [vmem:[%s2017_s9 + $0x2c] sm:$0xf]  ;;  %v858_v43 = vld [vmem:[%s2017_s9 + $0x30] sm:$0xf] }
  0x20   : > { %1798 = vmatpush3.bf16.msra.mxu1 %v1983_v1  ;;  %1749 = vmatpush3.bf16.msra.mxu0 %v1905_v31  ;;  %v2115_v1 = vmax.bf16 %v1935_v13, %v242_v55  ;;  %v874_v31 = vld [vmem:[%s2017_s9 + $0x70] sm:$0xf]  ;;  %v1564_v50 = vcombine.low %v2184_v36, %v2197_v42  ;;  %v278_v9 = vmax.bf16 %v1935_v13, %v246_v60  ;;  %v251_v26 = vld [vmem:[%s2017_s9 + $0x64] sm:$0xf]  ;;  %v859_v44 = vld [vmem:[%s2017_s9 + $0x34] sm:$0xf] }
  0x21   : > { %1676 = vmatprep.mubr.msk.bf16.mxu1 %vm435_vm0, %v1482_v35  ;;  %1750 = vmatprep.subr.bf16.mxu0 %v1906_v38  ;;  %v279_v10 = vmax.bf16 %v1935_v13, %v247_v61  ;;  %v884_v11 = vmax.bf16 %v1935_v13, %v852_v62  ;;  %v887_v19 = vmax.bf16 %v1935_v13, %v855_v6 }
  0x22   : > { %1720 = vmatprep.mubr.msk.bf16.mxu0 %vm435_vm0, %v1481_v32  ;;  %1793 = vmatprep.subr.bf16.mxu1 %v1992_v3  ;;  %v875_v32 = vld [vmem:[%s2017_s9 + $0x74] sm:$0xf]  ;;  %v2245_v58 = vcombine.low %v2115_v1, %v2118_v2  ;;  %v853_v1 = vld [vmem:[%s2017_s9 + $0x1c] sm:$0xf]  ;;  %v248_v2 = vld [vmem:[%s2017_s9 + $0x58] sm:$0xf]  ;;  %v889_v61 = vmax.bf16 %v1935_v13, %v857_v37 }
  0x23   : > { %v2209_v46 = vmax.bf16 %v1935_v13, %v875_v32  ;;  %v280_v14 = vmax.bf16 %v1935_v13, %v248_v2  ;;  %v891_v2 = vmax.bf16 %v1935_v13, %v859_v44 }
  0x24   : > { %1799 = vmatpush3.bf16.msra.mxu1 %v1992_v3  ;;  %1751 = vmatpush3.bf16.msra.mxu0 %v1906_v38  ;;  %v864_v3 = vld [vmem:[%s2017_s9 + $0x48] sm:$0xf]  ;;  %v877_v38 = vld [vmem:[%s2017_s9 + $0x7c] sm:$0xf] }
  0x25   : > { %1794 = vmatprep.subr.bf16.mxu1 %v2002_v5  ;;  %1752 = vmatprep.subr.bf16.mxu0 %v1907_v45 }
  0x27   : > { %1677 = vmatmul.mubr.msk.bf16.gmra.mrb[4].mxu1 %vm435_vm0, %v1483_v48  ;;  %1721 = vmatmul.mubr.msk.bf16.gmra.mrb[4].mxu0 %vm435_vm0, %v1482_v35  ;;  %v2181_v35 = vmax.bf16 %v1935_v13, %v871_v20 }
  0x28   : > { %1680 = vmatprep.mubr.msk.bf16.mxu1 %vm435_vm0, %v2089_v49  ;;  %1753 = vmatpush3.bf16.msra.mxu0 %v1907_v45 }
  0x29   : > { %1724 = vmatprep.mubr.msk.bf16.mxu0 %vm435_vm0, %v1483_v48  ;;  %1754 = vmatprep.subr.bf16.mxu0 %v1908_v52  ;;  %v1563_v45 = vcombine.low %v2178_v34, %v2181_v35  ;;  %v881_v48 = vld [vmem:[%s2017_s9 + $0x8c] sm:$0xf] }
  0x2a   : > { %1800 = vmatpush3.bf16.msra.mxu1 %v2002_v5  ;;  %v2153_v5 = vmax.bf16 %v1935_v13, %v864_v3  ;;  %v2241_v57 = vmax.bf16 %v1935_v13, %v881_v48  ;;  %v249_v3 = vld [vmem:[%s2017_s9 + $0x5c] sm:$0xf]  ;;  %v283_v48 = vmax.bf16 %v1935_v13, %v251_v26 }
  0x2b   : > { %1795 = vmatprep.subr.bf16.mxu1 %v2012_v7  ;;  %v281_v15 = vmax.bf16 %v1935_v13, %v249_v3 }
  0x2c   : > { %1755 = vmatpush3.bf16.msra.mxu0 %v1908_v52  ;;  %v1560_v33 = vcombine.low %v2153_v5, %v2156_v24  ;;  %v2223_v52 = vmax.bf16 %v1935_v13, %v877_v38  ;;  %v252_v38 = vld [vmem:[%s2017_s9 + $0x68] sm:$0xf] }
  0x2d   : > { %1756 = vmatprep.subr.bf16.mxu0 %v1909_v0  ;;  %v1490_v21 = vcombine.low %v280_v14, %v281_v15  ;;  %v284_v62 = vmax.bf16 %v1935_v13, %v252_v38  ;;  %v861_v14 = vld [vmem:[%s2017_s9 + $0x3c] sm:$0xf]  ;;  %v256_v15 = vld [vmem:[%s2017_s9 + $0x78] sm:$0xf] }
  0x2e   : > { %1801 = vmatpush3.bf16.msra.mxu1 %v2012_v7  ;;  %v2206_v7 = vmax.bf16 %v1935_v13, %v874_v31  ;;  %v1566_v55 = vcombine.low %v2220_v51, %v2223_v52  ;;  %v856_v31 = vld [vmem:[%s2017_s9 + $0x28] sm:$0xf]  ;;  %v288_v37 = vmax.bf16 %v1935_v13, %v256_v15 }
  0x2f   : > { %1681 = vmatmul.mubr.msk.bf16.gmra.mrb[8].mxu1 %vm435_vm0, %v1485_v63  ;;  %1796 = vmatprep.subr.bf16.mxu1 %v2030_v12  ;;  %v888_v60 = vmax.bf16 %v1935_v13, %v856_v31 }
  0x30   : > { %1725 = vmatmul.mubr.msk.bf16.gmra.mrb[8].mxu0 %vm435_vm0, %v2089_v49  ;;  %1684 = vmatprep.mubr.msk.bf16.mxu1 %vm435_vm0, %v2124_v8  ;;  %v1565_v49 = vcombine.low %v2206_v7, %v2209_v46 }
  0x31   : > { %1728 = vmatprep.mubr.msk.bf16.mxu0 %vm435_vm0, %v1485_v63  ;;  %1757 = vmatpush3.bf16.msra.mxu0 %v1909_v0  ;;  %v1568_v63 = vcombine.low %v2238_v56, %v2241_v57  ;;  %v1553_v0 = vcombine.low %v2137_v16, %v2149_v22  ;;  %v886_v16 = vmax.bf16 %v1935_v13, %v854_v4  ;;  %v250_v22 = vld [vmem:[%s2017_s9 + $0x60] sm:$0xf] }
  0x32   : > { %1758 = vmatprep.subr.bf16.mxu0 %v1910_v39  ;;  %1802 = vmatpush3.bf16.msra.mxu1 %v2030_v12  ;;  %v1567_v12 = vcombine.low %v2229_v53, %v2232_v54  ;;  %v282_v47 = vmax.bf16 %v1935_v13, %v250_v22  ;;  %v1556_v4 = vcombine.low %v888_v60, %v889_v61 }
  0x33   : > { %1797 = vmatprep.subr.bf16.mxu1 %v2046_v23  ;;  %v1555_v32 = vcombine.low %v886_v16, %v887_v19  ;;  %v257_v16 = vld [vmem:[%s2017_s9 + $0x7c] sm:$0xf]  ;;  %v862_v19 = vld [vmem:[%s2017_s9 + $0x40] sm:$0xf] }
  0x34   : > { %v1491_v3 = vcombine.low %v282_v47, %v283_v48  ;;  %v289_v38 = vmax.bf16 %v1935_v13, %v257_v16 }
  0x35   : > { %1759 = vmatpush3.bf16.msra.mxu0 %v1910_v39  ;;  %v253_v39 = vld [vmem:[%s2017_s9 + $0x6c] sm:$0xf] }
  0x36   : > { %1803 = vmatpush3.bf16.msra.mxu1 %v2046_v23  ;;  %v885_v23 = vmax.bf16 %v1935_v13, %v853_v1  ;;  %v890_v1 = vmax.bf16 %v1935_v13, %v858_v43  ;;  %v1494_v48 = vcombine.low %v288_v37, %v289_v38 }
  0x37   : > { %1685 = vmatmul.mubr.msk.bf16.gmra.mrb[12].mxu1 %vm435_vm0, %v2245_v58 }
  0x38   : > { %1729 = vmatmul.mubr.msk.bf16.gmra.mrb[12].mxu0 %vm435_vm0, %v2124_v8  ;;  %1688 = vmatprep.mubr.msk.bf16.mxu1 %vm435_vm0, %v2252_v59  ;;  %v1489_v8 = vcombine.low %v278_v9, %v279_v10  ;;  %v1554_v20 = vcombine.low %v884_v11, %v885_v23  ;;  %v254_v9 = vld [vmem:[%s2017_s9 + $0x70] sm:$0xf]  ;;  %v255_v10 = vld [vmem:[%s2017_s9 + $0x74] sm:$0xf]  ;;  %v860_v11 = vld [vmem:[%s2017_s9 + $0x38] sm:$0xf]  ;;  %v1557_v23 = vcombine.low %v890_v1, %v891_v2 }
  0x39   : > { %1760 = vmatprep.mubr.msk.bf16.mxu0 %vm435_vm0, %v1553_v0  ;;  %v285_v0 = vmax.bf16 %v1935_v13, %v253_v39  ;;  %v286_v22 = vmax.bf16 %v1935_v13, %v254_v9  ;;  %v287_v26 = vmax.bf16 %v1935_v13, %v255_v10  ;;  %v892_v31 = vmax.bf16 %v1935_v13, %v860_v11 }
  0x3a   : > { %v894_v39 = vmax.bf16 %v1935_v13, %v862_v19 }
  0x3b   : > { %v1492_v6 = vcombine.low %v284_v62, %v285_v0  ;;  %v1493_v44 = vcombine.low %v286_v22, %v287_v26 }
  0x3f   : > { %1689 = vmatmul.mubr.msk.bf16.gmra.mrb[16].mxu1 %vm435_vm0, %v1489_v8 }
  0x40   : > { %1761 = vmatmul.mubr.msk.bf16.vlgmr.msra.gmra.mrb[0].mxu0 %vm435_vm0, %v1554_v20  ;;  %1692 = vmatprep.mubr.msk.bf16.mxu1 %vm435_vm0, %v1490_v21  ;;  %v863_v20 = vld [vmem:[%s2017_s9 + $0x44] sm:$0xf] }
  0x41   : > { %1764 = vmatprep.mubr.msk.bf16.mxu0 %vm435_vm0, %v1555_v32  ;;  %v893_v32 = vmax.bf16 %v1935_v13, %v861_v14  ;;  %v895_v43 = vmax.bf16 %v1935_v13, %v863_v20 }
  0x43   : > { %v1558_v47 = vcombine.low %v892_v31, %v893_v32  ;;  %v1559_v60 = vcombine.low %v894_v39, %v895_v43 }
  0x47   : > { %1693 = vmatmul.mubr.msk.bf16.gmra.mrb[20].mxu1 %vm435_vm0, %v1491_v3 }
  0x48   : > { %1765 = vmatmul.mubr.msk.bf16.gmra.mrb[4].mxu0 %vm435_vm0, %v1556_v4  ;;  %1696 = vmatprep.mubr.msk.bf16.mxu1 %vm435_vm0, %v1492_v6 }
  0x49   : > { %1768 = vmatprep.mubr.msk.bf16.mxu0 %vm435_vm0, %v1557_v23 }
  0x4f   : > { %1697 = vmatmul.mubr.msk.bf16.gmra.mrb[24].mxu1 %vm435_vm0, %v1493_v44 }
  0x50   : > { %1769 = vmatmul.mubr.msk.bf16.gmra.mrb[8].mxu0 %vm435_vm0, %v1558_v47  ;;  %1700 = vmatprep.mubr.msk.bf16.mxu1 %vm435_vm0, %v1494_v48 }
  0x51   : > { %1772 = vmatprep.mubr.msk.bf16.mxu0 %vm435_vm0, %v1559_v60 }
  0x57   : > { %1701 = vmatmul.mubr.msk.bf16.gmra.mrb[28].mxu1 %vm435_vm0, %v1495_v27 }
  0x58   : > { %1773 = vmatmul.mubr.msk.bf16.gmra.mrb[12].mxu0 %vm435_vm0, %v1560_v33  ;;  %1732 = vmatprep.mubr.msk.bf16.mxu1 %vm435_vm0, %v2245_v58 }
  0x59   : > { %1776 = vmatprep.mubr.msk.bf16.mxu0 %vm435_vm0, %v1561_v40 }
  0x5f   : > { %1733 = vmatmul.mubr.msk.bf16.vlgmr.msra.gmra.mrb[16].mxu1 %vm435_vm0, %v2252_v59 }
  0x60   : > { %1777 = vmatmul.mubr.msk.bf16.gmra.mrb[16].mxu0 %vm435_vm0, %v1562_v41  ;;  %1736 = vmatprep.mubr.msk.bf16.mxu1 %vm435_vm0, %v1489_v8 }
  0x61   : > { %1780 = vmatprep.mubr.msk.bf16.mxu0 %vm435_vm0, %v1563_v45  ;;  %v2382_v45 = vld [vmem:[%s2497_s2] ss:$0 sm:$0xff] }
  0x67   : > { %1737 = vmatmul.mubr.msk.bf16.gmra.mrb[20].mxu1 %vm435_vm0, %v1490_v21 }
  0x68   : > { %1781 = vmatmul.mubr.msk.bf16.gmra.mrb[20].mxu0 %vm435_vm0, %v1564_v50  ;;  %1740 = vmatprep.mubr.msk.bf16.mxu1 %vm435_vm0, %v1491_v3 }
  0x69   : > { %1784 = vmatprep.mubr.msk.bf16.mxu0 %vm435_vm0, %v1565_v49 }
  0x6f   : > { %1741 = vmatmul.mubr.msk.bf16.gmra.mrb[24].mxu1 %vm435_vm0, %v1492_v6 }
  0x70   : > { %1785 = vmatmul.mubr.msk.bf16.gmra.mrb[24].mxu0 %vm435_vm0, %v1566_v55  ;;  %1744 = vmatprep.mubr.msk.bf16.mxu1 %vm435_vm0, %v1493_v44 }
  0x71   : > { %1788 = vmatprep.mubr.msk.bf16.mxu0 %vm435_vm0, %v1567_v12 }
  0x77   : > { %1745 = vmatmul.mubr.msk.bf16.gmra.mrb[28].mxu1 %vm435_vm0, %v1494_v48 }
  0x78   : > { %1789 = vmatmul.mubr.msk.bf16.gmra.mrb[28].mxu0 %vm435_vm0, %v1568_v63 }
  0xf2   : > { %v1674_v13 = vpop.f32.mrb[0].mxu1 }
  0xf3   : > { %v518_v17 = vpop.f32.mrb[1].mxu1 }
  0xf4   : > { %v1675_v18 = vpop.f32.mrb[2].mxu1 }
  0xf5   : > { %v521_v5 = vpop.f32.mrb[3].mxu1 }
  0xfa   : > { %v1678_v24 = vpop.f32.mrb[4].mxu1 }
  0xfb   : > { %v534_v25 = vpop.f32.mrb[5].mxu1 }
  0xfc   : > { %v1679_v27 = vpop.f32.mrb[6].mxu1 }
  0xfd   : > { %v537_v28 = vpop.f32.mrb[7].mxu1 }
 0x102   : > { %v1682_v29 = vpop.f32.mrb[8].mxu1 }
 0x103   : > { %v550_v30 = vpop.f32.mrb[9].mxu1 }
 0x104   : > { %v1683_v33 = vpop.f32.mrb[10].mxu1 }
 0x105   : > { %v553_v34 = vpop.f32.mrb[11].mxu1 }
 0x10a   : > { %v1686_v35 = vpop.f32.mrb[12].mxu1 }
 0x10b   : > { %v566_v36 = vpop.f32.mrb[13].mxu1 }
 0x10c   : > { %v1687_v40 = vpop.f32.mrb[14].mxu1 }
 0x10d   : > { %v2377_v41 = vpop.f32.mrb[15].mxu1 }
 0x113   : > { %v1762_v42 = vpop.f32.mrb[0].mxu0 }
 0x114   : > { %v1804_v7 = vadd.f32 %v1762_v42, %v1674_v13  ;;  %v1125_v46 = vpop.f32.mrb[1].mxu0 }
 0x115   : > { %v1805_v50 = vadd.f32 %v1125_v46, %v518_v17  ;;  %v1763_v51 = vpop.f32.mrb[2].mxu0 }
 0x116   : > { %v1293_v52 = vadd.f32 %v1804_v7, %v2382_v45  ;;  %v1806_v49 = vadd.f32 %v1763_v51, %v1675_v18  ;;  %v1128_v53 = vpop.f32.mrb[3].mxu0 }
 0x117   : > { %v1291_v54 = vadd.f32 %v1805_v50, %v2382_v45  ;;  %v1807_v55 = vadd.f32 %v1128_v53, %v521_v5 }
 0x118   : > { %1326 = vst.msk [vmem:[%s2387_s12 + $0x10] sm:$0xff] %vm1323_vm1, %v1293_v52  ;;  %v1294_v56 = vadd.f32 %v1806_v49, %v2382_v45 }
 0x119   : > { %1324 = vst.msk [vmem:[%s2387_s12] sm:$0xff] %vm1323_vm1, %v1291_v54  ;;  %v1292_v57 = vadd.f32 %v1807_v55, %v2382_v45 }
 0x11a   : > { %1327 = vst.msk [vmem:[%s2387_s12 + $0x18] sm:$0xff] %vm1323_vm1, %v1294_v56 }
 0x11b   : > { %1325 = vst.msk [vmem:[%s2387_s12 + $0x8] sm:$0xff] %vm1323_vm1, %v1292_v57  ;;  %v1766_v58 = vpop.f32.mrb[4].mxu0 }
 0x11c   : > { %v1808_v12 = vadd.f32 %v1766_v58, %v1678_v24  ;;  %v1141_v59 = vpop.f32.mrb[5].mxu0 }
 0x11d   : > { %v1809_v63 = vadd.f32 %v1141_v59, %v534_v25  ;;  %v1767_v8 = vpop.f32.mrb[6].mxu0 }
 0x11e   : > { %v1297_v21 = vadd.f32 %v1808_v12, %v2382_v45  ;;  %v1810_v61 = vadd.f32 %v1767_v8, %v1679_v27  ;;  %v1144_v62 = vpop.f32.mrb[7].mxu0 }
 0x11f   : > { %v1295_v0 = vadd.f32 %v1809_v63, %v2382_v45  ;;  %v1811_v1 = vadd.f32 %v1144_v62, %v537_v28 }
 0x120   : > { %1330 = vst.msk [vmem:[%s2387_s12 + $0x30] sm:$0xff] %vm1323_vm1, %v1297_v21  ;;  %v1298_v2 = vadd.f32 %v1810_v61, %v2382_v45 }
 0x121   : > { %1328 = vst.msk [vmem:[%s2387_s12 + $0x20] sm:$0xff] %vm1323_vm1, %v1295_v0  ;;  %v1296_v3 = vadd.f32 %v1811_v1, %v2382_v45 }
 0x122   : > { %1331 = vst.msk [vmem:[%s2387_s12 + $0x38] sm:$0xff] %vm1323_vm1, %v1298_v2 }
 0x123   : > { %1329 = vst.msk [vmem:[%s2387_s12 + $0x28] sm:$0xff] %vm1323_vm1, %v1296_v3  ;;  %v1770_v4 = vpop.f32.mrb[8].mxu0 }
 0x124   : > { %v1812_v6 = vadd.f32 %v1770_v4, %v1682_v29  ;;  %v1157_v9 = vpop.f32.mrb[9].mxu0 }
 0x125   : > { %v1813_v10 = vadd.f32 %v1157_v9, %v550_v30  ;;  %v1771_v11 = vpop.f32.mrb[10].mxu0 }
 0x126   : > { %v1301_v23 = vadd.f32 %v1812_v6, %v2382_v45  ;;  %v1814_v14 = vadd.f32 %v1771_v11, %v1683_v33  ;;  %v1160_v15 = vpop.f32.mrb[11].mxu0 }
 0x127   : > { %v1299_v16 = vadd.f32 %v1813_v10, %v2382_v45  ;;  %v1815_v19 = vadd.f32 %v1160_v15, %v553_v34 }
 0x128   : > { %1334 = vst.msk [vmem:[%s2387_s12 + $0x50] sm:$0xff] %vm1323_vm1, %v1301_v23  ;;  %v1302_v20 = vadd.f32 %v1814_v14, %v2382_v45 }
 0x129   : > { %1332 = vst.msk [vmem:[%s2387_s12 + $0x40] sm:$0xff] %vm1323_vm1, %v1299_v16  ;;  %v1300_v22 = vadd.f32 %v1815_v19, %v2382_v45 }
 0x12a   : > { %1335 = vst.msk [vmem:[%s2387_s12 + $0x58] sm:$0xff] %vm1323_vm1, %v1302_v20 }
 0x12b   : > { %1333 = vst.msk [vmem:[%s2387_s12 + $0x48] sm:$0xff] %vm1323_vm1, %v1300_v22  ;;  %v1774_v26 = vpop.f32.mrb[12].mxu0 }
 0x12c   : > { %v1816_v31 = vadd.f32 %v1774_v26, %v1686_v35  ;;  %v1173_v32 = vpop.f32.mrb[13].mxu0 }
 0x12d   : > { %v1817_v37 = vadd.f32 %v1173_v32, %v566_v36  ;;  %v1775_v38 = vpop.f32.mrb[14].mxu0 }
 0x12e   : > { %v1305_v39 = vadd.f32 %v1816_v31, %v2382_v45  ;;  %v1818_v43 = vadd.f32 %v1775_v38, %v1687_v40  ;;  %v1176_v44 = vpop.f32.mrb[15].mxu0 }
 0x12f   : > { %v1303_v47 = vadd.f32 %v1817_v37, %v2382_v45  ;;  %v1819_v48 = vadd.f32 %v1176_v44, %v2377_v41 }
 0x130   : > { %1338 = vst.msk [vmem:[%s2387_s12 + $0x70] sm:$0xff] %vm1323_vm1, %v1305_v39  ;;  %v1306_v60 = vadd.f32 %v1818_v43, %v2382_v45 }
 0x131   : > { %1336 = vst.msk [vmem:[%s2387_s12 + $0x60] sm:$0xff] %vm1323_vm1, %v1303_v47  ;;  %v1304_v13 = vadd.f32 %v1819_v48, %v2382_v45 }
 0x132   : > { %1339 = vst.msk [vmem:[%s2387_s12 + $0x78] sm:$0xff] %vm1323_vm1, %v1306_v60  ;;  %v1734_v17 = vpop.f32.mrb[16].mxu1 }
 0x133   : > { %1337 = vst.msk [vmem:[%s2387_s12 + $0x68] sm:$0xff] %vm1323_vm1, %v1304_v13  ;;  %v1778_v18 = vpop.f32.mrb[16].mxu0  ;;  %v787_v5 = vpop.f32.mrb[17].mxu1 }
 0x134   : > { %v1820_v24 = vadd.f32 %v1778_v18, %v1734_v17  ;;  %v1189_v25 = vpop.f32.mrb[17].mxu0  ;;  %v1735_v27 = vpop.f32.mrb[18].mxu1 }
 0x135   : > { %v1821_v28 = vadd.f32 %v1189_v25, %v787_v5  ;;  %v1779_v29 = vpop.f32.mrb[18].mxu0  ;;  %v790_v30 = vpop.f32.mrb[19].mxu1 }
 0x136   : > { %v1309_v33 = vadd.f32 %v1820_v24, %v2382_v45  ;;  %v1822_v34 = vadd.f32 %v1779_v29, %v1735_v27  ;;  %v1192_v35 = vpop.f32.mrb[19].mxu0 }
 0x137   : > { %v1307_v36 = vadd.f32 %v1821_v28, %v2382_v45  ;;  %v1823_v40 = vadd.f32 %v1192_v35, %v790_v30 }
 0x138   : > { %1342 = vst.msk [vmem:[%s2387_s12 + $0x90] sm:$0xff] %vm1323_vm1, %v1309_v33  ;;  %v1310_v41 = vadd.f32 %v1822_v34, %v2382_v45 }
 0x139   : > { %1340 = vst.msk [vmem:[%s2387_s12 + $0x80] sm:$0xff] %vm1323_vm1, %v1307_v36  ;;  %v1308_v42 = vadd.f32 %v1823_v40, %v2382_v45 }
 0x13a   : > { %1343 = vst.msk [vmem:[%s2387_s12 + $0x98] sm:$0xff] %vm1323_vm1, %v1310_v41  ;;  %v1738_v7 = vpop.f32.mrb[20].mxu1 }
 0x13b   : > { %1341 = vst.msk [vmem:[%s2387_s12 + $0x88] sm:$0xff] %vm1323_vm1, %v1308_v42  ;;  %v1782_v46 = vpop.f32.mrb[20].mxu0  ;;  %v803_v50 = vpop.f32.mrb[21].mxu1 }
 0x13c   : > { %v1824_v51 = vadd.f32 %v1782_v46, %v1738_v7  ;;  %v1205_v52 = vpop.f32.mrb[21].mxu0  ;;  %v1739_v49 = vpop.f32.mrb[22].mxu1 }
 0x13d   : > { %v1825_v53 = vadd.f32 %v1205_v52, %v803_v50  ;;  %v1783_v54 = vpop.f32.mrb[22].mxu0  ;;  %v806_v55 = vpop.f32.mrb[23].mxu1 }
 0x13e   : > { %v1313_v56 = vadd.f32 %v1824_v51, %v2382_v45  ;;  %v1826_v57 = vadd.f32 %v1783_v54, %v1739_v49  ;;  %v1208_v58 = vpop.f32.mrb[23].mxu0 }
 0x13f   : > { %v1311_v12 = vadd.f32 %v1825_v53, %v2382_v45  ;;  %v1827_v59 = vadd.f32 %v1208_v58, %v806_v55 }
 0x140   : > { %1346 = vst.msk [vmem:[%s2387_s12 + $0xb0] sm:$0xff] %vm1323_vm1, %v1313_v56  ;;  %v1314_v63 = vadd.f32 %v1826_v57, %v2382_v45 }
 0x141   : > { %1344 = vst.msk [vmem:[%s2387_s12 + $0xa0] sm:$0xff] %vm1323_vm1, %v1311_v12  ;;  %v1312_v8 = vadd.f32 %v1827_v59, %v2382_v45 }
 0x142   : > { %1347 = vst.msk [vmem:[%s2387_s12 + $0xb8] sm:$0xff] %vm1323_vm1, %v1314_v63  ;;  %v1742_v21 = vpop.f32.mrb[24].mxu1 }
 0x143   : > { %1345 = vst.msk [vmem:[%s2387_s12 + $0xa8] sm:$0xff] %vm1323_vm1, %v1312_v8  ;;  %v1786_v61 = vpop.f32.mrb[24].mxu0  ;;  %v819_v62 = vpop.f32.mrb[25].mxu1 }
 0x144   : > { %v1828_v0 = vadd.f32 %v1786_v61, %v1742_v21  ;;  %v1221_v1 = vpop.f32.mrb[25].mxu0  ;;  %v1743_v2 = vpop.f32.mrb[26].mxu1 }
 0x145   : > { %v1829_v3 = vadd.f32 %v1221_v1, %v819_v62  ;;  %v1787_v4 = vpop.f32.mrb[26].mxu0  ;;  %v822_v6 = vpop.f32.mrb[27].mxu1 }
 0x146   : > { %v1317_v9 = vadd.f32 %v1828_v0, %v2382_v45  ;;  %v1830_v10 = vadd.f32 %v1787_v4, %v1743_v2  ;;  %v1224_v11 = vpop.f32.mrb[27].mxu0 }
 0x147   : > { %v1315_v23 = vadd.f32 %v1829_v3, %v2382_v45  ;;  %v1831_v14 = vadd.f32 %v1224_v11, %v822_v6 }
 0x148   : > { %1350 = vst.msk [vmem:[%s2387_s12 + $0xd0] sm:$0xff] %vm1323_vm1, %v1317_v9  ;;  %v1318_v15 = vadd.f32 %v1830_v10, %v2382_v45 }
 0x149   : > { %1348 = vst.msk [vmem:[%s2387_s12 + $0xc0] sm:$0xff] %vm1323_vm1, %v1315_v23  ;;  %v1316_v16 = vadd.f32 %v1831_v14, %v2382_v45 }
 0x14a   : > { %1351 = vst.msk [vmem:[%s2387_s12 + $0xd8] sm:$0xff] %vm1323_vm1, %v1318_v15  ;;  %v1746_v19 = vpop.f32.mrb[28].mxu1 }
 0x14b   : > { %1349 = vst.msk [vmem:[%s2387_s12 + $0xc8] sm:$0xff] %vm1323_vm1, %v1316_v16  ;;  %v1790_v20 = vpop.f32.mrb[28].mxu0  ;;  %v835_v22 = vpop.f32.mrb[29].mxu1 }
 0x14c   : > { %v1832_v26 = vadd.f32 %v1790_v20, %v1746_v19  ;;  %v1237_v31 = vpop.f32.mrb[29].mxu0  ;;  %v1747_v32 = vpop.f32.mrb[30].mxu1 }
 0x14d   : > { %v1833_v37 = vadd.f32 %v1237_v31, %v835_v22  ;;  %v1791_v38 = vpop.f32.mrb[30].mxu0  ;;  %v838_v39 = vpop.f32.mrb[31].mxu1 }
 0x14e   : > { %v1321_v43 = vadd.f32 %v1832_v26, %v2382_v45  ;;  %v1834_v44 = vadd.f32 %v1791_v38, %v1747_v32  ;;  %v1240_v47 = vpop.f32.mrb[31].mxu0 }
 0x14f   : > { %v1319_v48 = vadd.f32 %v1833_v37, %v2382_v45  ;;  %v1835_v60 = vadd.f32 %v1240_v47, %v838_v39 }
 0x150   : > { %1354 = vst.msk [vmem:[%s2387_s12 + $0xf0] sm:$0xff] %vm1323_vm1, %v1321_v43  ;;  %v1322_v13 = vadd.f32 %v1834_v44, %v2382_v45 }
 0x151   : > { %1352 = vst.msk [vmem:[%s2387_s12 + $0xe0] sm:$0xff] %vm1323_vm1, %v1319_v48  ;;  %v1320_v17 = vadd.f32 %v1835_v60, %v2382_v45 }
 0x152   : > { %1355 = vst.msk [vmem:[%s2387_s12 + $0xf8] sm:$0xff] %vm1323_vm1, %v1322_v13 }
 0x153   : > { %1353 = vst.msk [vmem:[%s2387_s12 + $0xe8] sm:$0xff] %vm1323_vm1, %v1320_v17 }
 0x154 PF: > { %s13_s14 = sadd.s32 1, %s1933_s14   ;;  %s2499_s12 = smov %s1929_s13 }
 0x155   : > { %p10_p6 = scmp.ge.s32.totalorder %s13_s14, 4   ;;  %s2500_s13 = smov %s2502_s15 }
 0x157   :  { %12 = sbr.rel (!%p10_p6) target bundleno = 2 (0x2), region = 70 }

// kernel: _lambda_.7
= control target key start
LH: loop header
LB: loop body
LE: loop exit
PB: predicated region body
PF: predicated region fallthrough
CT: control target
= control target key end

     0   :  { %s2248_s18 = smov 0   ;;  %s2250_s19 = smov 0   ;;  %s2885_s0 = inlined_call_operand.vmem [shape: bf16[576,96], index: 0, kind: input, shape index: {}]   ;;  %s2886_s1 = inlined_call_operand.vmem [shape: bf16[3,96,32], index: 1, kind: input, shape index: {}]   ;;  %s2887_s2 = inlined_call_operand.vmem [shape: f32[1,32], index: 2, kind: input, shape index: {}]   ;;  %s2888_s3 = inlined_call_operand.vmem [shape: f32[512,32], index: 3, kind: input, shape index: {}]   ;;  %s2889_s4 = inlined_call_operand.vmem [shape: f32[512,32], index: 4, kind: input, shape index: {}]   ;;  %s2890_s5 = inlined_call_operand.vmem [shape: f32[512,32], index: 5, kind: output, shape index: {}]  }
   0x1   :  { %s2252_s20 = smov 0  }
   0x2 LB: > { %s27_s21 = sadd.s32 1, %s2211_s19  ;;  %p1742_p0 = scmp.ge.s32.totalorder %s2215_s20, 1  ;;  %s2215_s20 = sphi %s2252_s20, %s15_s20   ;;  %s2211_s19 = sphi %s2250_s19, %s2892_s19   ;;  %s2207_s18 = sphi %s2248_s18, %s2891_s18  }
   0x3   : > { %p29_p1 = scmp.ge.s32.totalorder %s27_s21, 2  ;;  %p251_p2 = scmp.lt.s32.totalorder %s2215_s20, 3 }
   0x5   : > { %s2894_s21 = smov (%p29_p1, %s27_s21), 0  ;;  %p252_p3 = pnand %p1742_p0, %p251_p2 }
   0x6   : > { %v2175_v0 = vld [vmem:[%s2886_s1 + $0x30] sm:$0xff] (!%p252_p3)   ;;  %s305_s24 = smul.u32 (!%p252_p3), 36, %s2207_s18  ;;  %v2275_v1 = vld [vmem:[%s2886_s1] sm:$0xff] (!%p252_p3)   ;;  %v2177_v2 = vld [vmem:[%s2886_s1 + $0x38] sm:$0xff] (!%p252_p3)   ;;  %v2217_v13 = vmov (!%p252_p3), 0   ;;  %vm555_vm0 = vcmask (!%p252_p3), 785408  }
   0x7   : > { %255 = sbr.rel (%p252_p3) target bundleno = 344 (0x158), region = 40  ;;  %1942 = vmatprep.subr.bf16.mxu1 (!%p252_p3), %v2175_v0  ;;  %1986 = vmatprep.subr.bf16.mxu0 (!%p252_p3), %v2275_v1  ;;  %v2284_v3 = vld [vmem:[%s2886_s1 + $0x8] sm:$0xff] (!%p252_p3)   ;;  %v2179_v4 = vld [vmem:[%s2886_s1 + $0x40] sm:$0xff] (!%p252_p3)   ;;  %v2294_v5 = vld [vmem:[%s2886_s1 + $0x10] sm:$0xff] (!%p252_p3)   ;;  %vm1571_vm1 = vcmask (!%p252_p3), 261120  }
   0x8   : > { %p306_p4 = scmp.lt.s32.totalorder (!%p252_p3), %s305_s24, 71  ;;  %1943 = vmatpush3.bf16.msra.mxu1 (!%p252_p3), %v2175_v0  ;;  %1987 = vmatpush3.bf16.msra.mxu0 (!%p252_p3), %v2275_v1  ;;  %v2181_v6 = vld [vmem:[%s2886_s1 + $0x48] sm:$0xff] (!%p252_p3)   ;;  %v2304_v7 = vld [vmem:[%s2886_s1 + $0x18] sm:$0xff] (!%p252_p3)   ;;  %v2183_v8 = vld [vmem:[%s2886_s1 + $0x50] sm:$0xff] (!%p252_p3)  }
   0x9   : > { %1944 = vmatprep.subr.bf16.mxu1 (!%p252_p3), %v2177_v2  ;;  %1988 = vmatprep.subr.bf16.mxu0 (!%p252_p3), %v2284_v3  ;;  %v2322_v12 = vld [vmem:[%s2886_s1 + $0x20] sm:$0xff] (!%p252_p3)   ;;  %v2185_v22 = vld [vmem:[%s2886_s1 + $0x58] sm:$0xff] (!%p252_p3)   ;;  %v2338_v23 = vld [vmem:[%s2886_s1 + $0x28] sm:$0xff] (!%p252_p3)  }
   0xa   : > { %v2187_v31 = vld [vmem:[%s2886_s1 + $0x60] sm:$0xff] (!%p252_p3)   ;;  %v2188_v38 = vld [vmem:[%s2886_s1 + $0x68] sm:$0xff] (!%p252_p3)   ;;  %v2189_v45 = vld [vmem:[%s2886_s1 + $0x70] sm:$0xff] (!%p252_p3)  }
   0xb   : > { %v2190_v52 = vld [vmem:[%s2886_s1 + $0x78] sm:$0xff] (!%p252_p3)   ;;  %v2191_v0 = vld [vmem:[%s2886_s1 + $0x80] sm:$0xff] (!%p252_p3)  }
   0xc   : > { %1945 = vmatpush3.bf16.msra.mxu1 (!%p252_p3), %v2177_v2  ;;  %1989 = vmatpush3.bf16.msra.mxu0 (!%p252_p3), %v2284_v3 }
   0xd   : > { %1946 = vmatprep.subr.bf16.mxu1 (!%p252_p3), %v2179_v4  ;;  %1990 = vmatprep.subr.bf16.mxu0 (!%p252_p3), %v2294_v5 }
   0xe   : > { %s2896_s24 = smov (!%p306_p4, %s305_s24), 71 }
   0xf   : > { %s1743_s10 = sshll.u32 %s2896_s24, 2 }
  0x10   : > { %s2309_s17 = scalar_lea.vmem %s2885_s0, %s1743_s10  ;;  %1947 = vmatpush3.bf16.msra.mxu1 %v2179_v4  ;;  %1991 = vmatpush3.bf16.msra.mxu0 %v2294_v5 }
  0x11   : > { %1948 = vmatprep.subr.bf16.mxu1 %v2181_v6  ;;  %v348_v9 = vld [vmem:[%s2309_s17 + $0x8] sm:$0xf]  ;;  %v349_v10 = vld [vmem:[%s2309_s17 + $0xc] sm:$0xf]  ;;  %v346_v11 = vld [vmem:[%s2309_s17] sm:$0xf]  ;;  %1992 = vmatprep.subr.bf16.mxu0 %v2304_v7 }
  0x12   : > { %v380_v14 = vmax.bf16 %v2217_v13, %v348_v9  ;;  %v381_v15 = vmax.bf16 %v2217_v13, %v349_v10  ;;  %v347_v16 = vld [vmem:[%s2309_s17 + $0x4] sm:$0xf]  ;;  %v378_v17 = vmax.bf16 %v2217_v13, %v346_v11  ;;  %v350_v19 = vld [vmem:[%s2309_s17 + $0x10] sm:$0xf]  ;;  %v351_v21 = vld [vmem:[%s2309_s17 + $0x14] sm:$0xf] }
  0x13   : > { %v379_v18 = vmax.bf16 %v2217_v13, %v347_v16  ;;  %v352_v25 = vld [vmem:[%s2309_s17 + $0x18] sm:$0xf]  ;;  %v353_v26 = vld [vmem:[%s2309_s17 + $0x1c] sm:$0xf]  ;;  %v382_v27 = vmax.bf16 %v2217_v13, %v350_v19  ;;  %v383_v28 = vmax.bf16 %v2217_v13, %v351_v21  ;;  %v354_v33 = vld [vmem:[%s2309_s17 + $0x20] sm:$0xf] }
  0x14   : > { %1949 = vmatpush3.bf16.msra.mxu1 %v2181_v6  ;;  %v1762_v20 = vcombine.low %v380_v14, %v381_v15  ;;  %1993 = vmatpush3.bf16.msra.mxu0 %v2304_v7  ;;  %v384_v29 = vmax.bf16 %v2217_v13, %v352_v25  ;;  %v385_v30 = vmax.bf16 %v2217_v13, %v353_v26  ;;  %v355_v34 = vld [vmem:[%s2309_s17 + $0x24] sm:$0xf]  ;;  %v356_v36 = vld [vmem:[%s2309_s17 + $0x28] sm:$0xf]  ;;  %v357_v37 = vld [vmem:[%s2309_s17 + $0x2c] sm:$0xf] }
  0x15   : > { %1950 = vmatprep.subr.bf16.mxu1 %v2183_v8  ;;  %v1800_v24 = vcombine.low %v378_v17, %v379_v18  ;;  %1994 = vmatprep.subr.bf16.mxu0 %v2322_v12  ;;  %v1763_v32 = vcombine.low %v382_v27, %v383_v28  ;;  %v386_v39 = vmax.bf16 %v2217_v13, %v354_v33  ;;  %v358_v43 = vld [vmem:[%s2309_s17 + $0x30] sm:$0xf]  ;;  %v359_v44 = vld [vmem:[%s2309_s17 + $0x34] sm:$0xf]  ;;  %v360_v46 = vld [vmem:[%s2309_s17 + $0x38] sm:$0xf] }
  0x16   : > { %1954 = vmatprep.mubr.msk.bf16.mxu1 %vm555_vm0, %v1762_v20  ;;  %v1764_v35 = vcombine.low %v384_v29, %v385_v30  ;;  %v387_v40 = vmax.bf16 %v2217_v13, %v355_v34  ;;  %v388_v41 = vmax.bf16 %v2217_v13, %v356_v36  ;;  %v389_v42 = vmax.bf16 %v2217_v13, %v357_v37  ;;  %v361_v47 = vld [vmem:[%s2309_s17 + $0x3c] sm:$0xf]  ;;  %v362_v55 = vld [vmem:[%s2309_s17 + $0x40] sm:$0xf]  ;;  %v363_v56 = vld [vmem:[%s2309_s17 + $0x44] sm:$0xf] }
  0x17   : > { %1998 = vmatprep.mubr.msk.bf16.mxu0 %vm555_vm0, %v1800_v24  ;;  %v390_v50 = vmax.bf16 %v2217_v13, %v358_v43  ;;  %v391_v51 = vmax.bf16 %v2217_v13, %v359_v44  ;;  %v392_v53 = vmax.bf16 %v2217_v13, %v360_v46  ;;  %v393_v54 = vmax.bf16 %v2217_v13, %v361_v47  ;;  %v364_v57 = vld [vmem:[%s2309_s17 + $0x48] sm:$0xf]  ;;  %v365_v58 = vld [vmem:[%s2309_s17 + $0x4c] sm:$0xf]  ;;  %v970_v59 = vld [vmem:[%s2309_s17 + $0x10] sm:$0xf] }
  0x18   : > { %1951 = vmatpush3.bf16.msra.mxu1 %v2183_v8  ;;  %1995 = vmatpush3.bf16.msra.mxu0 %v2322_v12  ;;  %v1765_v48 = vcombine.low %v386_v39, %v387_v40  ;;  %v2381_v49 = vcombine.low %v388_v41, %v389_v42  ;;  %v971_v60 = vld [vmem:[%s2309_s17 + $0x14] sm:$0xf]  ;;  %v422_v61 = vld [vmem:[%s2309_s17 + $0x80] sm:$0xf]  ;;  %v423_v62 = vld [vmem:[%s2309_s17 + $0x84] sm:$0xf]  ;;  %v2410_v2 = vmax.bf16 %v2217_v13, %v363_v56 }
  0x19   : > { %1952 = vmatprep.subr.bf16.mxu1 %v2185_v22  ;;  %1996 = vmatprep.subr.bf16.mxu0 %v2338_v23  ;;  %v1767_v63 = vcombine.low %v390_v50, %v391_v51  ;;  %v985_v4 = vld [vmem:[%s2309_s17 + $0x4c] sm:$0xf]  ;;  %v986_v6 = vld [vmem:[%s2309_s17 + $0x50] sm:$0xf]  ;;  %v2416_v8 = vcombine.low %v392_v53, %v393_v54  ;;  %v2419_v9 = vmax.bf16 %v2217_v13, %v364_v57  ;;  %v987_v11 = vld [vmem:[%s2309_s17 + $0x54] sm:$0xf] }
  0x1a   : > { %v2422_v10 = vmax.bf16 %v2217_v13, %v365_v58  ;;  %v988_v14 = vld [vmem:[%s2309_s17 + $0x58] sm:$0xf]  ;;  %v989_v15 = vld [vmem:[%s2309_s17 + $0x5c] sm:$0xf]  ;;  %v2429_v16 = vmax.bf16 %v2217_v13, %v970_v59  ;;  %v2432_v17 = vmax.bf16 %v2217_v13, %v422_v61  ;;  %v2435_v18 = vmax.bf16 %v2217_v13, %v423_v62  ;;  %v990_v19 = vld [vmem:[%s2309_s17 + $0x60] sm:$0xf] }
  0x1b   : > { %v992_v21 = vld [vmem:[%s2309_s17 + $0x68] sm:$0xf]  ;;  %v2448_v24 = vmax.bf16 %v2217_v13, %v985_v4  ;;  %v2451_v25 = vmax.bf16 %v2217_v13, %v986_v6  ;;  %v993_v26 = vld [vmem:[%s2309_s17 + $0x6c] sm:$0xf]  ;;  %v2457_v28 = vmax.bf16 %v2217_v13, %v987_v11  ;;  %v2460_v29 = vmax.bf16 %v2217_v13, %v988_v14  ;;  %v996_v37 = vld [vmem:[%s2309_s17 + $0x78] sm:$0xf] }
  0x1c   : > { %1953 = vmatpush3.bf16.msra.mxu1 %v2185_v22  ;;  %1997 = vmatpush3.bf16.msra.mxu0 %v2338_v23  ;;  %v2441_v22 = vmax.bf16 %v2217_v13, %v971_v60  ;;  %v1777_v27 = vcombine.low %v2432_v17, %v2435_v18  ;;  %v2463_v30 = vmax.bf16 %v2217_v13, %v989_v15  ;;  %v2192_v39 = vld [vmem:[%s2886_s1 + $0x88] sm:$0xff]   ;;  %v998_v43 = vld [vmem:[%s2309_s17 + $0x80] sm:$0xf]  ;;  %v999_v44 = vld [vmem:[%s2309_s17 + $0x84] sm:$0xf] }
  0x1d   : > { %2074 = vmatprep.subr.bf16.mxu1 %v2275_v1  ;;  %2030 = vmatprep.subr.bf16.mxu0 %v2187_v31  ;;  %v2470_v34 = vmax.bf16 %v2217_v13, %v990_v19  ;;  %v2476_v36 = vmax.bf16 %v2217_v13, %v992_v21  ;;  %v1843_v40 = vcombine.low %v2451_v25, %v2457_v28  ;;  %v1000_v47 = vld [vmem:[%s2309_s17 + $0x88] sm:$0xf]  ;;  %v366_v60 = vld [vmem:[%s2309_s17 + $0x50] sm:$0xf]  ;;  %v367_v61 = vld [vmem:[%s2309_s17 + $0x54] sm:$0xf] }
  0x1e   : > { %v1844_v41 = vcombine.low %v2460_v29, %v2463_v30  ;;  %v2489_v42 = vmax.bf16 %v2217_v13, %v993_v26  ;;  %v2512_v51 = vmax.bf16 %v2217_v13, %v996_v37  ;;  %v2521_v53 = vmax.bf16 %v2217_v13, %v998_v43  ;;  %v972_v62 = vld [vmem:[%s2309_s17 + $0x18] sm:$0xf]  ;;  %v974_v4 = vld [vmem:[%s2309_s17 + $0x20] sm:$0xf]  ;;  %v975_v6 = vld [vmem:[%s2309_s17 + $0x24] sm:$0xf] }
  0x1f   : > { %1955 = vmatmul.mubr.msk.bf16.vlgmr.msra.gmra.mrb[0].mxu1 %vm555_vm0, %v1763_v32  ;;  %1999 = vmatmul.mubr.msk.bf16.vlgmr.msra.gmra.mrb[0].mxu0 %vm555_vm0, %v1762_v20  ;;  %v991_v20 = vld [vmem:[%s2309_s17 + $0x64] sm:$0xf]  ;;  %v2524_v54 = vmax.bf16 %v2217_v13, %v999_v44  ;;  %v2530_v56 = vmax.bf16 %v2217_v13, %v1000_v47  ;;  %v2544_v59 = vcombine.low %v2419_v9, %v2422_v10  ;;  %v977_v37 = vld [vmem:[%s2309_s17 + $0x2c] sm:$0xf]  ;;  %v978_v43 = vld [vmem:[%s2309_s17 + $0x30] sm:$0xf] }
  0x20   : > { %2080 = vmatpush3.bf16.msra.mxu1 %v2275_v1  ;;  %2031 = vmatpush3.bf16.msra.mxu0 %v2187_v31  ;;  %v2407_v1 = vmax.bf16 %v2217_v13, %v362_v55  ;;  %v994_v31 = vld [vmem:[%s2309_s17 + $0x70] sm:$0xf]  ;;  %v1846_v50 = vcombine.low %v2476_v36, %v2489_v42  ;;  %v398_v9 = vmax.bf16 %v2217_v13, %v366_v60  ;;  %v371_v26 = vld [vmem:[%s2309_s17 + $0x64] sm:$0xf]  ;;  %v979_v44 = vld [vmem:[%s2309_s17 + $0x34] sm:$0xf] }
  0x21   : > { %1958 = vmatprep.mubr.msk.bf16.mxu1 %vm555_vm0, %v1764_v35  ;;  %2032 = vmatprep.subr.bf16.mxu0 %v2188_v38  ;;  %v399_v10 = vmax.bf16 %v2217_v13, %v367_v61  ;;  %v1004_v11 = vmax.bf16 %v2217_v13, %v972_v62  ;;  %v1007_v19 = vmax.bf16 %v2217_v13, %v975_v6 }
  0x22   : > { %2002 = vmatprep.mubr.msk.bf16.mxu0 %vm555_vm0, %v1763_v32  ;;  %2075 = vmatprep.subr.bf16.mxu1 %v2284_v3  ;;  %v995_v32 = vld [vmem:[%s2309_s17 + $0x74] sm:$0xf]  ;;  %v2537_v58 = vcombine.low %v2407_v1, %v2410_v2  ;;  %v973_v1 = vld [vmem:[%s2309_s17 + $0x1c] sm:$0xf]  ;;  %v368_v2 = vld [vmem:[%s2309_s17 + $0x58] sm:$0xf]  ;;  %v1009_v61 = vmax.bf16 %v2217_v13, %v977_v37 }
  0x23   : > { %v2501_v46 = vmax.bf16 %v2217_v13, %v995_v32  ;;  %v400_v14 = vmax.bf16 %v2217_v13, %v368_v2  ;;  %v1011_v2 = vmax.bf16 %v2217_v13, %v979_v44 }
  0x24   : > { %2081 = vmatpush3.bf16.msra.mxu1 %v2284_v3  ;;  %2033 = vmatpush3.bf16.msra.mxu0 %v2188_v38  ;;  %v984_v3 = vld [vmem:[%s2309_s17 + $0x48] sm:$0xf]  ;;  %v997_v38 = vld [vmem:[%s2309_s17 + $0x7c] sm:$0xf] }
  0x25   : > { %2076 = vmatprep.subr.bf16.mxu1 %v2294_v5  ;;  %2034 = vmatprep.subr.bf16.mxu0 %v2189_v45 }
  0x27   : > { %1959 = vmatmul.mubr.msk.bf16.gmra.mrb[4].mxu1 %vm555_vm0, %v1765_v48  ;;  %2003 = vmatmul.mubr.msk.bf16.gmra.mrb[4].mxu0 %vm555_vm0, %v1764_v35  ;;  %v2473_v35 = vmax.bf16 %v2217_v13, %v991_v20 }
  0x28   : > { %1962 = vmatprep.mubr.msk.bf16.mxu1 %vm555_vm0, %v2381_v49  ;;  %2035 = vmatpush3.bf16.msra.mxu0 %v2189_v45 }
  0x29   : > { %2006 = vmatprep.mubr.msk.bf16.mxu0 %vm555_vm0, %v1765_v48  ;;  %2036 = vmatprep.subr.bf16.mxu0 %v2190_v52  ;;  %v1845_v45 = vcombine.low %v2470_v34, %v2473_v35  ;;  %v1001_v48 = vld [vmem:[%s2309_s17 + $0x8c] sm:$0xf] }
  0x2a   : > { %2082 = vmatpush3.bf16.msra.mxu1 %v2294_v5  ;;  %v2445_v5 = vmax.bf16 %v2217_v13, %v984_v3  ;;  %v2533_v57 = vmax.bf16 %v2217_v13, %v1001_v48  ;;  %v369_v3 = vld [vmem:[%s2309_s17 + $0x5c] sm:$0xf]  ;;  %v403_v48 = vmax.bf16 %v2217_v13, %v371_v26 }
  0x2b   : > { %2077 = vmatprep.subr.bf16.mxu1 %v2304_v7  ;;  %v401_v15 = vmax.bf16 %v2217_v13, %v369_v3 }
  0x2c   : > { %2037 = vmatpush3.bf16.msra.mxu0 %v2190_v52  ;;  %v1842_v33 = vcombine.low %v2445_v5, %v2448_v24  ;;  %v2515_v52 = vmax.bf16 %v2217_v13, %v997_v38  ;;  %v372_v38 = vld [vmem:[%s2309_s17 + $0x68] sm:$0xf] }
  0x2d   : > { %2038 = vmatprep.subr.bf16.mxu0 %v2191_v0  ;;  %v1772_v21 = vcombine.low %v400_v14, %v401_v15  ;;  %v404_v62 = vmax.bf16 %v2217_v13, %v372_v38  ;;  %v981_v14 = vld [vmem:[%s2309_s17 + $0x3c] sm:$0xf]  ;;  %v376_v15 = vld [vmem:[%s2309_s17 + $0x78] sm:$0xf] }
  0x2e   : > { %2083 = vmatpush3.bf16.msra.mxu1 %v2304_v7  ;;  %v2498_v7 = vmax.bf16 %v2217_v13, %v994_v31  ;;  %v1848_v55 = vcombine.low %v2512_v51, %v2515_v52  ;;  %v976_v31 = vld [vmem:[%s2309_s17 + $0x28] sm:$0xf]  ;;  %v408_v37 = vmax.bf16 %v2217_v13, %v376_v15 }
  0x2f   : > { %1963 = vmatmul.mubr.msk.bf16.gmra.mrb[8].mxu1 %vm555_vm0, %v1767_v63  ;;  %2078 = vmatprep.subr.bf16.mxu1 %v2322_v12  ;;  %v1008_v60 = vmax.bf16 %v2217_v13, %v976_v31 }
  0x30   : > { %2007 = vmatmul.mubr.msk.bf16.gmra.mrb[8].mxu0 %vm555_vm0, %v2381_v49  ;;  %1966 = vmatprep.mubr.msk.bf16.mxu1 %vm555_vm0, %v2416_v8  ;;  %v1847_v49 = vcombine.low %v2498_v7, %v2501_v46 }
  0x31   : > { %2010 = vmatprep.mubr.msk.bf16.mxu0 %vm555_vm0, %v1767_v63  ;;  %2039 = vmatpush3.bf16.msra.mxu0 %v2191_v0  ;;  %v1850_v63 = vcombine.low %v2530_v56, %v2533_v57  ;;  %v1835_v0 = vcombine.low %v2429_v16, %v2441_v22  ;;  %v1006_v16 = vmax.bf16 %v2217_v13, %v974_v4  ;;  %v370_v22 = vld [vmem:[%s2309_s17 + $0x60] sm:$0xf] }
  0x32   : > { %2040 = vmatprep.subr.bf16.mxu0 %v2192_v39  ;;  %2084 = vmatpush3.bf16.msra.mxu1 %v2322_v12  ;;  %v1849_v12 = vcombine.low %v2521_v53, %v2524_v54  ;;  %v402_v47 = vmax.bf16 %v2217_v13, %v370_v22  ;;  %v1838_v4 = vcombine.low %v1008_v60, %v1009_v61 }
  0x33   : > { %2079 = vmatprep.subr.bf16.mxu1 %v2338_v23  ;;  %v1837_v32 = vcombine.low %v1006_v16, %v1007_v19  ;;  %v377_v16 = vld [vmem:[%s2309_s17 + $0x7c] sm:$0xf]  ;;  %v982_v19 = vld [vmem:[%s2309_s17 + $0x40] sm:$0xf] }
  0x34   : > { %v1773_v3 = vcombine.low %v402_v47, %v403_v48  ;;  %v409_v38 = vmax.bf16 %v2217_v13, %v377_v16 }
  0x35   : > { %2041 = vmatpush3.bf16.msra.mxu0 %v2192_v39  ;;  %v373_v39 = vld [vmem:[%s2309_s17 + $0x6c] sm:$0xf] }
  0x36   : > { %2085 = vmatpush3.bf16.msra.mxu1 %v2338_v23  ;;  %v1005_v23 = vmax.bf16 %v2217_v13, %v973_v1  ;;  %v1010_v1 = vmax.bf16 %v2217_v13, %v978_v43  ;;  %v1776_v48 = vcombine.low %v408_v37, %v409_v38 }
  0x37   : > { %1967 = vmatmul.mubr.msk.bf16.gmra.mrb[12].mxu1 %vm555_vm0, %v2537_v58 }
  0x38   : > { %2011 = vmatmul.mubr.msk.bf16.gmra.mrb[12].mxu0 %vm555_vm0, %v2416_v8  ;;  %1970 = vmatprep.mubr.msk.bf16.mxu1 %vm555_vm0, %v2544_v59  ;;  %v1771_v8 = vcombine.low %v398_v9, %v399_v10  ;;  %v1836_v20 = vcombine.low %v1004_v11, %v1005_v23  ;;  %v374_v9 = vld [vmem:[%s2309_s17 + $0x70] sm:$0xf]  ;;  %v375_v10 = vld [vmem:[%s2309_s17 + $0x74] sm:$0xf]  ;;  %v980_v11 = vld [vmem:[%s2309_s17 + $0x38] sm:$0xf]  ;;  %v1839_v23 = vcombine.low %v1010_v1, %v1011_v2 }
  0x39   : > { %2042 = vmatprep.mubr.msk.bf16.mxu0 %vm555_vm0, %v1835_v0  ;;  %v405_v0 = vmax.bf16 %v2217_v13, %v373_v39  ;;  %v406_v22 = vmax.bf16 %v2217_v13, %v374_v9  ;;  %v407_v26 = vmax.bf16 %v2217_v13, %v375_v10  ;;  %v1012_v31 = vmax.bf16 %v2217_v13, %v980_v11 }
  0x3a   : > { %v1014_v39 = vmax.bf16 %v2217_v13, %v982_v19 }
  0x3b   : > { %v1774_v6 = vcombine.low %v404_v62, %v405_v0  ;;  %v1775_v44 = vcombine.low %v406_v22, %v407_v26 }
  0x3f   : > { %1971 = vmatmul.mubr.msk.bf16.gmra.mrb[16].mxu1 %vm555_vm0, %v1771_v8 }
  0x40   : > { %2043 = vmatmul.mubr.msk.bf16.vlgmr.msra.gmra.mrb[0].mxu0 %vm555_vm0, %v1836_v20  ;;  %1974 = vmatprep.mubr.msk.bf16.mxu1 %vm555_vm0, %v1772_v21  ;;  %v983_v20 = vld [vmem:[%s2309_s17 + $0x44] sm:$0xf]  ;;  %s1744_s17 = sshll.u32 %s2207_s18, 5 }
  0x41   : > { %2046 = vmatprep.mubr.msk.bf16.mxu0 %vm555_vm0, %v1837_v32  ;;  %v1013_v32 = vmax.bf16 %v2217_v13, %v981_v14  ;;  %v1015_v43 = vmax.bf16 %v2217_v13, %v983_v20  ;;  %p319_p5 = scmp.lt.s32.totalorder %s1744_s17, 63 }
  0x43   : > { %v1840_v47 = vcombine.low %v1012_v31, %v1013_v32  ;;  %v1841_v60 = vcombine.low %v1014_v39, %v1015_v43  ;;  %s2898_s17 = smov (!%p319_p5, %s1744_s17), 63 }
  0x44   : > { %s1745_s22 = sshll.u32 %s2898_s17, 3 }
  0x45   : > { %s2690_s25 = scalar_lea.vmem %s2888_s3, %s1745_s22  ;;  %s2700_s29 = scalar_lea.vmem %s2889_s4, %s1745_s22 }
  0x46   : > { %v1443_v53 = vld [vmem:[%s2690_s25] sm:$0xff]  ;;  %v1509_v56 = vld [vmem:[%s2700_s29 + $0x10] sm:$0xff]  ;;  %s2714_s7 = scalar_lea.vmem %s2890_s5, %s1745_s22  ;;  %v1510_v62 = vld [vmem:[%s2700_s29 + $0x18] sm:$0xff] }
  0x47   : > { %1975 = vmatmul.mubr.msk.bf16.gmra.mrb[20].mxu1 %vm555_vm0, %v1773_v3  ;;  %v1449_v15 = vld [vmem:[%s2690_s25 + $0x30] sm:$0xff]  ;;  %v1447_v22 = vld [vmem:[%s2690_s25 + $0x20] sm:$0xff]  ;;  %v1450_v38 = vld [vmem:[%s2690_s25 + $0x38] sm:$0xff] }
  0x48   : > { %2047 = vmatmul.mubr.msk.bf16.gmra.mrb[4].mxu0 %vm555_vm0, %v1838_v4  ;;  %1978 = vmatprep.mubr.msk.bf16.mxu1 %vm555_vm0, %v1774_v6  ;;  %v1513_v32 = vld [vmem:[%s2700_s29 + $0x30] sm:$0xff] }
  0x49   : > { %2050 = vmatprep.mubr.msk.bf16.mxu0 %vm555_vm0, %v1839_v23 }
  0x4f   : > { %1979 = vmatmul.mubr.msk.bf16.gmra.mrb[24].mxu1 %vm555_vm0, %v1775_v44 }
  0x50   : > { %2051 = vmatmul.mubr.msk.bf16.gmra.mrb[8].mxu0 %vm555_vm0, %v1840_v47  ;;  %1982 = vmatprep.mubr.msk.bf16.mxu1 %vm555_vm0, %v1776_v48 }
  0x51   : > { %2054 = vmatprep.mubr.msk.bf16.mxu0 %vm555_vm0, %v1841_v60 }
  0x57   : > { %1983 = vmatmul.mubr.msk.bf16.gmra.mrb[28].mxu1 %vm555_vm0, %v1777_v27 }
  0x58   : > { %2055 = vmatmul.mubr.msk.bf16.gmra.mrb[12].mxu0 %vm555_vm0, %v1842_v33  ;;  %2014 = vmatprep.mubr.msk.bf16.mxu1 %vm555_vm0, %v2537_v58  ;;  %v1446_v58 = vld [vmem:[%s2690_s25 + $0x18] sm:$0xff] }
  0x59   : > { %2058 = vmatprep.mubr.msk.bf16.mxu0 %vm555_vm0, %v1843_v40 }
  0x5f   : > { %2015 = vmatmul.mubr.msk.bf16.vlgmr.msra.gmra.mrb[16].mxu1 %vm555_vm0, %v2544_v59 }
  0x60   : > { %2059 = vmatmul.mubr.msk.bf16.gmra.mrb[16].mxu0 %vm555_vm0, %v1844_v41  ;;  %2018 = vmatprep.mubr.msk.bf16.mxu1 %vm555_vm0, %v1771_v8 }
  0x61   : > { %2062 = vmatprep.mubr.msk.bf16.mxu0 %vm555_vm0, %v1845_v45  ;;  %v2695_v45 = vld [vmem:[%s2887_s2] ss:$0 sm:$0xff] }
  0x67   : > { %2019 = vmatmul.mubr.msk.bf16.gmra.mrb[20].mxu1 %vm555_vm0, %v1772_v21  ;;  %v1444_v21 = vld [vmem:[%s2690_s25 + $0x8] sm:$0xff] }
  0x68   : > { %2063 = vmatmul.mubr.msk.bf16.gmra.mrb[20].mxu0 %vm555_vm0, %v1846_v50  ;;  %2022 = vmatprep.mubr.msk.bf16.mxu1 %vm555_vm0, %v1773_v3  ;;  %v1445_v50 = vld [vmem:[%s2690_s25 + $0x10] sm:$0xff]  ;;  %v1508_v3 = vld [vmem:[%s2700_s29 + $0x8] sm:$0xff] }
  0x69   : > { %2066 = vmatprep.mubr.msk.bf16.mxu0 %vm555_vm0, %v1847_v49 }
  0x6f   : > { %2023 = vmatmul.mubr.msk.bf16.gmra.mrb[24].mxu1 %vm555_vm0, %v1774_v6 }
  0x70   : > { %2067 = vmatmul.mubr.msk.bf16.gmra.mrb[24].mxu0 %vm555_vm0, %v1848_v55  ;;  %2026 = vmatprep.mubr.msk.bf16.mxu1 %vm555_vm0, %v1775_v44  ;;  %v1511_v44 = vld [vmem:[%s2700_s29 + $0x20] sm:$0xff] }
  0x71   : > { %2070 = vmatprep.mubr.msk.bf16.mxu0 %vm555_vm0, %v1849_v12 }
  0x77   : > { %2027 = vmatmul.mubr.msk.bf16.gmra.mrb[28].mxu1 %vm555_vm0, %v1776_v48  ;;  %v1448_v48 = vld [vmem:[%s2690_s25 + $0x28] sm:$0xff] }
  0x78   : > { %2071 = vmatmul.mubr.msk.bf16.gmra.mrb[28].mxu0 %vm555_vm0, %v1850_v63  ;;  %v1507_v63 = vld [vmem:[%s2700_s29] sm:$0xff] }
  0xf2   : > { %v1956_v13 = vpop.f32.mrb[0].mxu1 }
  0xf3   : > { %v638_v17 = vpop.f32.mrb[1].mxu1 }
  0xf4   : > { %v1957_v18 = vpop.f32.mrb[2].mxu1 }
  0xf5   : > { %v641_v5 = vpop.f32.mrb[3].mxu1 }
  0xfa   : > { %v1960_v24 = vpop.f32.mrb[4].mxu1 }
  0xfb   : > { %v654_v25 = vpop.f32.mrb[5].mxu1 }
  0xfc   : > { %v1961_v27 = vpop.f32.mrb[6].mxu1 }
  0xfd   : > { %v2668_v28 = vpop.f32.mrb[7].mxu1 }
 0x102   : > { %v2670_v29 = vpop.f32.mrb[8].mxu1 }
 0x103   : > { %v2672_v30 = vpop.f32.mrb[9].mxu1 }
 0x104   : > { %v2674_v33 = vpop.f32.mrb[10].mxu1 }
 0x105   : > { %v2677_v34 = vpop.f32.mrb[11].mxu1 }
 0x10a   : > { %v2679_v35 = vpop.f32.mrb[12].mxu1 }
 0x10b   : > { %v2681_v36 = vpop.f32.mrb[13].mxu1 }
 0x10c   : > { %v2683_v40 = vpop.f32.mrb[14].mxu1 }
 0x10d   : > { %v2685_v41 = vpop.f32.mrb[15].mxu1 }
 0x113   : > { %v2044_v42 = vpop.f32.mrb[0].mxu0 }
 0x114   : > { %v2086_v7 = vadd.f32 %v2044_v42, %v1956_v13  ;;  %v1245_v46 = vpop.f32.mrb[1].mxu0  ;;  %v1514_v13 = vld [vmem:[%s2700_s29 + $0x38] sm:$0xff] }
 0x115   : > { %v2087_v51 = vadd.f32 %v1245_v46, %v638_v17  ;;  %v2045_v52 = vpop.f32.mrb[2].mxu0 }
 0x116   : > { %v1413_v49 = vadd.f32 %v2086_v7, %v2695_v45  ;;  %v2088_v54 = vadd.f32 %v2045_v52, %v1957_v18  ;;  %v1248_v55 = vpop.f32.mrb[3].mxu0 }
 0x117   : > { %v1411_v57 = vadd.f32 %v2087_v51, %v2695_v45  ;;  %v2089_v12 = vadd.f32 %v1248_v55, %v641_v5  ;;  %v1453_v51 = vld [vmem:[%s2690_s25 + $0x50] sm:$0xff] }
 0x118   : > { %v1477_v59 = vadd.f32 %v1445_v50, %v1413_v49  ;;  %v1414_v8 = vadd.f32 %v2088_v54, %v2695_v45  ;;  %v1451_v54 = vld [vmem:[%s2690_s25 + $0x40] sm:$0xff] }
 0x119   : > { %v1475_v61 = vadd.f32 %v1443_v53, %v1411_v57  ;;  %v1412_v0 = vadd.f32 %v2089_v12, %v2695_v45 }
 0x11a   : > { %v1541_v1 = vadd.f32 %v1509_v56, %v1477_v59  ;;  %v1478_v2 = vadd.f32 %v1446_v58, %v1414_v8  ;;  %v1517_v56 = vld [vmem:[%s2700_s29 + $0x50] sm:$0xff]  ;;  %v1454_v58 = vld [vmem:[%s2690_s25 + $0x58] sm:$0xff]  ;;  %v1515_v59 = vld [vmem:[%s2700_s29 + $0x40] sm:$0xff] }
 0x11b   : > { %v1539_v4 = vadd.f32 %v1507_v63, %v1475_v61  ;;  %v1476_v6 = vadd.f32 %v1444_v21, %v1412_v0  ;;  %v2048_v9 = vpop.f32.mrb[4].mxu0  ;;  %v1452_v8 = vld [vmem:[%s2690_s25 + $0x48] sm:$0xff] }
 0x11c   : > { %1574 = vst.msk [vmem:[%s2714_s7 + $0x10] sm:$0xff] %vm1571_vm1, %v1541_v1  ;;  %v1542_v10 = vadd.f32 %v1510_v62, %v1478_v2  ;;  %v2090_v11 = vadd.f32 %v2048_v9, %v1960_v24  ;;  %v1261_v23 = vpop.f32.mrb[5].mxu0  ;;  %v1512_v24 = vld [vmem:[%s2700_s29 + $0x28] sm:$0xff] }
 0x11d   : > { %1572 = vst.msk [vmem:[%s2714_s7] sm:$0xff] %vm1571_vm1, %v1539_v4  ;;  %v1540_v14 = vadd.f32 %v1508_v3, %v1476_v6  ;;  %v2091_v16 = vadd.f32 %v1261_v23, %v654_v25  ;;  %v2049_v19 = vpop.f32.mrb[6].mxu0  ;;  %v1516_v1 = vld [vmem:[%s2700_s29 + $0x48] sm:$0xff] }
 0x11e   : > { %1575 = vst.msk [vmem:[%s2714_s7 + $0x18] sm:$0xff] %vm1571_vm1, %v1542_v10  ;;  %v1417_v20 = vadd.f32 %v2090_v11, %v2695_v45  ;;  %v2092_v26 = vadd.f32 %v2049_v19, %v1961_v27  ;;  %v1264_v31 = vpop.f32.mrb[7].mxu0  ;;  %v1457_v11 = vld [vmem:[%s2690_s25 + $0x70] sm:$0xff] }
 0x11f   : > { %1573 = vst.msk [vmem:[%s2714_s7 + $0x8] sm:$0xff] %vm1571_vm1, %v1540_v14  ;;  %v1415_v37 = vadd.f32 %v2091_v16, %v2695_v45  ;;  %v2093_v39 = vadd.f32 %v1264_v31, %v2668_v28  ;;  %v1455_v16 = vld [vmem:[%s2690_s25 + $0x60] sm:$0xff] }
 0x120   : > { %v1481_v43 = vadd.f32 %v1449_v15, %v1417_v20  ;;  %v1418_v47 = vadd.f32 %v2092_v26, %v2695_v45  ;;  %v1521_v20 = vld [vmem:[%s2700_s29 + $0x70] sm:$0xff]  ;;  %v1458_v26 = vld [vmem:[%s2690_s25 + $0x78] sm:$0xff] }
 0x121   : > { %v1479_v60 = vadd.f32 %v1447_v22, %v1415_v37  ;;  %v1416_v17 = vadd.f32 %v2093_v39, %v2695_v45 }
 0x122   : > { %v1545_v18 = vadd.f32 %v1513_v32, %v1481_v43  ;;  %v1482_v5 = vadd.f32 %v1450_v38, %v1418_v47  ;;  %v1519_v32 = vld [vmem:[%s2700_s29 + $0x60] sm:$0xff]  ;;  %v1456_v38 = vld [vmem:[%s2690_s25 + $0x68] sm:$0xff]  ;;  %v1522_v43 = vld [vmem:[%s2700_s29 + $0x78] sm:$0xff] }
 0x123   : > { %v1543_v25 = vadd.f32 %v1511_v44, %v1479_v60  ;;  %v1480_v27 = vadd.f32 %v1448_v48, %v1416_v17  ;;  %v2052_v28 = vpop.f32.mrb[8].mxu0  ;;  %v1520_v48 = vld [vmem:[%s2700_s29 + $0x68] sm:$0xff] }
 0x124   : > { %1578 = vst.msk [vmem:[%s2714_s7 + $0x30] sm:$0xff] %vm1571_vm1, %v1545_v18  ;;  %v1546_v42 = vadd.f32 %v1514_v13, %v1482_v5  ;;  %v2094_v7 = vadd.f32 %v2052_v28, %v2670_v29  ;;  %v1277_v46 = vpop.f32.mrb[9].mxu0 }
 0x125   : > { %1576 = vst.msk [vmem:[%s2714_s7 + $0x20] sm:$0xff] %vm1571_vm1, %v1543_v25  ;;  %v1544_v50 = vadd.f32 %v1512_v24, %v1480_v27  ;;  %v2095_v52 = vadd.f32 %v1277_v46, %v2672_v30  ;;  %v2053_v49 = vpop.f32.mrb[10].mxu0 }
 0x126   : > { %1579 = vst.msk [vmem:[%s2714_s7 + $0x38] sm:$0xff] %vm1571_vm1, %v1546_v42  ;;  %v1421_v53 = vadd.f32 %v2094_v7, %v2695_v45  ;;  %v2096_v55 = vadd.f32 %v2053_v49, %v2674_v33  ;;  %v1280_v29 = vpop.f32.mrb[11].mxu0  ;;  %v1518_v33 = vld [vmem:[%s2700_s29 + $0x58] sm:$0xff]  ;;  %v1461_v42 = vld [vmem:[%s2690_s25 + $0x90] sm:$0xff] }
 0x127   : > { %1577 = vst.msk [vmem:[%s2714_s7 + $0x28] sm:$0xff] %vm1571_vm1, %v1544_v50  ;;  %v1419_v57 = vadd.f32 %v2095_v52, %v2695_v45  ;;  %v2097_v30 = vadd.f32 %v1280_v29, %v2677_v34  ;;  %v1459_v52 = vld [vmem:[%s2690_s25 + $0x80] sm:$0xff]  ;;  %v1462_v29 = vld [vmem:[%s2690_s25 + $0x98] sm:$0xff] }
 0x128   : > { %v1485_v12 = vadd.f32 %v1453_v51, %v1421_v53  ;;  %v1422_v63 = vadd.f32 %v2096_v55, %v2695_v45 }
 0x129   : > { %v1483_v21 = vadd.f32 %v1451_v54, %v1419_v57  ;;  %v1420_v61 = vadd.f32 %v2097_v30, %v2695_v45  ;;  %v1525_v54 = vld [vmem:[%s2700_s29 + $0x90] sm:$0xff] }
 0x12a   : > { %v1549_v62 = vadd.f32 %v1517_v56, %v1485_v12  ;;  %v1486_v0 = vadd.f32 %v1454_v58, %v1422_v63  ;;  %v1523_v58 = vld [vmem:[%s2700_s29 + $0x80] sm:$0xff]  ;;  %v1460_v12 = vld [vmem:[%s2690_s25 + $0x88] sm:$0xff]  ;;  %v1526_v63 = vld [vmem:[%s2700_s29 + $0x98] sm:$0xff] }
 0x12b   : > { %v1547_v2 = vadd.f32 %v1515_v59, %v1483_v21  ;;  %v1484_v3 = vadd.f32 %v1452_v8, %v1420_v61  ;;  %v2056_v34 = vpop.f32.mrb[12].mxu0  ;;  %v1524_v61 = vld [vmem:[%s2700_s29 + $0x88] sm:$0xff] }
 0x12c   : > { %1582 = vst.msk [vmem:[%s2714_s7 + $0x50] sm:$0xff] %vm1571_vm1, %v1549_v62  ;;  %v1550_v4 = vadd.f32 %v1518_v33, %v1486_v0  ;;  %v2098_v6 = vadd.f32 %v2056_v34, %v2679_v35  ;;  %v1293_v9 = vpop.f32.mrb[13].mxu0 }
 0x12d   : > { %1580 = vst.msk [vmem:[%s2714_s7 + $0x40] sm:$0xff] %vm1571_vm1, %v1547_v2  ;;  %v1548_v10 = vadd.f32 %v1516_v1, %v1484_v3  ;;  %v2099_v23 = vadd.f32 %v1293_v9, %v2681_v36  ;;  %v2057_v14 = vpop.f32.mrb[14].mxu0 }
 0x12e   : > { %1583 = vst.msk [vmem:[%s2714_s7 + $0x58] sm:$0xff] %vm1571_vm1, %v1550_v4  ;;  %v1425_v15 = vadd.f32 %v2098_v6, %v2695_v45  ;;  %v2100_v19 = vadd.f32 %v2057_v14, %v2683_v40  ;;  %v1296_v35 = vpop.f32.mrb[15].mxu0 }
 0x12f   : > { %1581 = vst.msk [vmem:[%s2714_s7 + $0x48] sm:$0xff] %vm1571_vm1, %v1548_v10  ;;  %v1423_v22 = vadd.f32 %v2099_v23, %v2695_v45  ;;  %v2101_v31 = vadd.f32 %v1296_v35, %v2685_v41 }
 0x130   : > { %v1489_v36 = vadd.f32 %v1457_v11, %v1425_v15  ;;  %v1426_v37 = vadd.f32 %v2100_v19, %v2695_v45  ;;  %v1465_v11 = vld [vmem:[%s2690_s25 + $0xb0] sm:$0xff]  ;;  %v1463_v19 = vld [vmem:[%s2690_s25 + $0xa0] sm:$0xff] }
 0x131   : > { %v1487_v39 = vadd.f32 %v1455_v16, %v1423_v22  ;;  %v1424_v40 = vadd.f32 %v2101_v31, %v2695_v45  ;;  %v1529_v22 = vld [vmem:[%s2700_s29 + $0xb0] sm:$0xff]  ;;  %v1466_v31 = vld [vmem:[%s2690_s25 + $0xb8] sm:$0xff] }
 0x132   : > { %v1553_v44 = vadd.f32 %v1521_v20, %v1489_v36  ;;  %v1490_v47 = vadd.f32 %v1458_v26, %v1426_v37  ;;  %v2016_v60 = vpop.f32.mrb[16].mxu1  ;;  %v1527_v37 = vld [vmem:[%s2700_s29 + $0xa0] sm:$0xff] }
 0x133   : > { %v1551_v13 = vadd.f32 %v1519_v32, %v1487_v39  ;;  %v1488_v17 = vadd.f32 %v1456_v38, %v1424_v40  ;;  %v2060_v41 = vpop.f32.mrb[16].mxu0  ;;  %v907_v18 = vpop.f32.mrb[17].mxu1  ;;  %v1464_v39 = vld [vmem:[%s2690_s25 + $0xa8] sm:$0xff]  ;;  %v1530_v40 = vld [vmem:[%s2700_s29 + $0xb8] sm:$0xff] }
 0x134   : > { %1586 = vst.msk [vmem:[%s2714_s7 + $0x70] sm:$0xff] %vm1571_vm1, %v1553_v44  ;;  %v1554_v5 = vadd.f32 %v1522_v43, %v1490_v47  ;;  %v2102_v24 = vadd.f32 %v2060_v41, %v2016_v60  ;;  %v1309_v25 = vpop.f32.mrb[17].mxu0  ;;  %v2017_v27 = vpop.f32.mrb[18].mxu1  ;;  %v1528_v60 = vld [vmem:[%s2700_s29 + $0xa8] sm:$0xff] }
 0x135   : > { %1584 = vst.msk [vmem:[%s2714_s7 + $0x60] sm:$0xff] %vm1571_vm1, %v1551_v13  ;;  %v1552_v28 = vadd.f32 %v1520_v48, %v1488_v17  ;;  %v2103_v7 = vadd.f32 %v1309_v25, %v907_v18  ;;  %v2061_v46 = vpop.f32.mrb[18].mxu0  ;;  %v910_v50 = vpop.f32.mrb[19].mxu1 }
 0x136   : > { %1587 = vst.msk [vmem:[%s2714_s7 + $0x78] sm:$0xff] %vm1571_vm1, %v1554_v5  ;;  %v1429_v51 = vadd.f32 %v2102_v24, %v2695_v45  ;;  %v2104_v49 = vadd.f32 %v2061_v46, %v2017_v27  ;;  %v1312_v53 = vpop.f32.mrb[19].mxu0 }
 0x137   : > { %1585 = vst.msk [vmem:[%s2714_s7 + $0x68] sm:$0xff] %vm1571_vm1, %v1552_v28  ;;  %v1427_v55 = vadd.f32 %v2103_v7, %v2695_v45  ;;  %v2105_v56 = vadd.f32 %v1312_v53, %v910_v50  ;;  %v1469_v7 = vld [vmem:[%s2690_s25 + $0xd0] sm:$0xff] }
 0x138   : > { %v1493_v57 = vadd.f32 %v1461_v42, %v1429_v51  ;;  %v1430_v30 = vadd.f32 %v2104_v49, %v2695_v45  ;;  %v1467_v49 = vld [vmem:[%s2690_s25 + $0xc0] sm:$0xff] }
 0x139   : > { %v1491_v59 = vadd.f32 %v1459_v52, %v1427_v55  ;;  %v1428_v8 = vadd.f32 %v2105_v56, %v2695_v45  ;;  %v1533_v55 = vld [vmem:[%s2700_s29 + $0xd0] sm:$0xff]  ;;  %v1470_v56 = vld [vmem:[%s2690_s25 + $0xd8] sm:$0xff] }
 0x13a   : > { %v1557_v21 = vadd.f32 %v1525_v54, %v1493_v57  ;;  %v1494_v33 = vadd.f32 %v1462_v29, %v1430_v30  ;;  %v2020_v62 = vpop.f32.mrb[20].mxu1  ;;  %v1531_v30 = vld [vmem:[%s2700_s29 + $0xc0] sm:$0xff] }
 0x13b   : > { %v1555_v0 = vadd.f32 %v1523_v58, %v1491_v59  ;;  %v1492_v1 = vadd.f32 %v1460_v12, %v1428_v8  ;;  %v2064_v2 = vpop.f32.mrb[20].mxu0  ;;  %v923_v3 = vpop.f32.mrb[21].mxu1  ;;  %v1468_v59 = vld [vmem:[%s2690_s25 + $0xc8] sm:$0xff]  ;;  %v1534_v8 = vld [vmem:[%s2700_s29 + $0xd8] sm:$0xff] }
 0x13c   : > { %1590 = vst.msk [vmem:[%s2714_s7 + $0x90] sm:$0xff] %vm1571_vm1, %v1557_v21  ;;  %v1558_v34 = vadd.f32 %v1526_v63, %v1494_v33  ;;  %v2106_v4 = vadd.f32 %v2064_v2, %v2020_v62  ;;  %v1325_v6 = vpop.f32.mrb[21].mxu0  ;;  %v2021_v9 = vpop.f32.mrb[22].mxu1  ;;  %v1532_v62 = vld [vmem:[%s2700_s29 + $0xc8] sm:$0xff] }
 0x13d   : > { %1588 = vst.msk [vmem:[%s2714_s7 + $0x80] sm:$0xff] %vm1571_vm1, %v1555_v0  ;;  %v1556_v10 = vadd.f32 %v1524_v61, %v1492_v1  ;;  %v2107_v23 = vadd.f32 %v1325_v6, %v923_v3  ;;  %v2065_v14 = vpop.f32.mrb[22].mxu0  ;;  %v926_v15 = vpop.f32.mrb[23].mxu1 }
 0x13e   : > { %1591 = vst.msk [vmem:[%s2714_s7 + $0x98] sm:$0xff] %vm1571_vm1, %v1558_v34  ;;  %v1433_v16 = vadd.f32 %v2106_v4, %v2695_v45  ;;  %v2108_v35 = vadd.f32 %v2065_v14, %v2021_v9  ;;  %v1328_v20 = vpop.f32.mrb[23].mxu0 }
 0x13f   : > { %1589 = vst.msk [vmem:[%s2714_s7 + $0x88] sm:$0xff] %vm1571_vm1, %v1556_v10  ;;  %v1431_v26 = vadd.f32 %v2107_v23, %v2695_v45  ;;  %v2109_v36 = vadd.f32 %v1328_v20, %v926_v15  ;;  %v1473_v23 = vld [vmem:[%s2690_s25 + $0xf0] sm:$0xff] }
 0x140   : > { %v1497_v32 = vadd.f32 %v1465_v11, %v1433_v16  ;;  %v1434_v38 = vadd.f32 %v2108_v35, %v2695_v45  ;;  %v1471_v35 = vld [vmem:[%s2690_s25 + $0xe0] sm:$0xff] }
 0x141   : > { %v1495_v43 = vadd.f32 %v1463_v19, %v1431_v26  ;;  %v1432_v44 = vadd.f32 %v2109_v36, %v2695_v45  ;;  %v1537_v26 = vld [vmem:[%s2700_s29 + $0xf0] sm:$0xff]  ;;  %v1474_v36 = vld [vmem:[%s2690_s25 + $0xf8] sm:$0xff] }
 0x142   : > { %v1561_v47 = vadd.f32 %v1529_v22, %v1497_v32  ;;  %v1498_v48 = vadd.f32 %v1466_v31, %v1434_v38  ;;  %v2024_v13 = vpop.f32.mrb[24].mxu1  ;;  %v1535_v38 = vld [vmem:[%s2700_s29 + $0xe0] sm:$0xff] }
 0x143   : > { %v1559_v17 = vadd.f32 %v1527_v37, %v1495_v43  ;;  %v1496_v41 = vadd.f32 %v1464_v39, %v1432_v44  ;;  %v2068_v18 = vpop.f32.mrb[24].mxu0  ;;  %v939_v5 = vpop.f32.mrb[25].mxu1  ;;  %v1472_v43 = vld [vmem:[%s2690_s25 + $0xe8] sm:$0xff]  ;;  %v1538_v44 = vld [vmem:[%s2700_s29 + $0xf8] sm:$0xff] }
 0x144   : > { %1594 = vst.msk [vmem:[%s2714_s7 + $0xb0] sm:$0xff] %vm1571_vm1, %v1561_v47  ;;  %v1562_v24 = vadd.f32 %v1530_v40, %v1498_v48  ;;  %v2110_v25 = vadd.f32 %v2068_v18, %v2024_v13  ;;  %v1341_v27 = vpop.f32.mrb[25].mxu0  ;;  %v2025_v28 = vpop.f32.mrb[26].mxu1  ;;  %v1536_v13 = vld [vmem:[%s2700_s29 + $0xe8] sm:$0xff] }
 0x145   : > { %1592 = vst.msk [vmem:[%s2714_s7 + $0xa0] sm:$0xff] %vm1571_vm1, %v1559_v17  ;;  %v1560_v42 = vadd.f32 %v1528_v60, %v1496_v41  ;;  %v2111_v46 = vadd.f32 %v1341_v27, %v939_v5  ;;  %v2069_v50 = vpop.f32.mrb[26].mxu0  ;;  %v942_v51 = vpop.f32.mrb[27].mxu1 }
 0x146   : > { %1595 = vst.msk [vmem:[%s2714_s7 + $0xb8] sm:$0xff] %vm1571_vm1, %v1562_v24  ;;  %v1437_v52 = vadd.f32 %v2110_v25, %v2695_v45  ;;  %v2112_v53 = vadd.f32 %v2069_v50, %v2025_v28  ;;  %v1344_v54 = vpop.f32.mrb[27].mxu0 }
 0x147   : > { %1593 = vst.msk [vmem:[%s2714_s7 + $0xa8] sm:$0xff] %vm1571_vm1, %v1560_v42  ;;  %v1435_v29 = vadd.f32 %v2111_v46, %v2695_v45  ;;  %v2113_v57 = vadd.f32 %v1344_v54, %v942_v51 }
 0x148   : > { %v1501_v58 = vadd.f32 %v1469_v7, %v1437_v52  ;;  %v1438_v12 = vadd.f32 %v2112_v53, %v2695_v45 }
 0x149   : > { %v1499_v63 = vadd.f32 %v1467_v49, %v1435_v29  ;;  %v1436_v21 = vadd.f32 %v2113_v57, %v2695_v45 }
 0x14a   : > { %v1565_v33 = vadd.f32 %v1533_v55, %v1501_v58  ;;  %v1502_v61 = vadd.f32 %v1470_v56, %v1438_v12  ;;  %v2028_v0 = vpop.f32.mrb[28].mxu1 }
 0x14b   : > { %v1563_v1 = vadd.f32 %v1531_v30, %v1499_v63  ;;  %v1500_v2 = vadd.f32 %v1468_v59, %v1436_v21  ;;  %v2072_v3 = vpop.f32.mrb[28].mxu0  ;;  %v955_v34 = vpop.f32.mrb[29].mxu1 }
 0x14c   : > { %1598 = vst.msk [vmem:[%s2714_s7 + $0xd0] sm:$0xff] %vm1571_vm1, %v1565_v33  ;;  %v1566_v4 = vadd.f32 %v1534_v8, %v1502_v61  ;;  %v2114_v6 = vadd.f32 %v2072_v3, %v2028_v0  ;;  %v1357_v9 = vpop.f32.mrb[29].mxu0  ;;  %v2029_v10 = vpop.f32.mrb[30].mxu1 }
 0x14d   : > { %1596 = vst.msk [vmem:[%s2714_s7 + $0xc0] sm:$0xff] %vm1571_vm1, %v1563_v1  ;;  %v1564_v11 = vadd.f32 %v1532_v62, %v1500_v2  ;;  %v2115_v14 = vadd.f32 %v1357_v9, %v955_v34  ;;  %v2073_v15 = vpop.f32.mrb[30].mxu0  ;;  %v958_v16 = vpop.f32.mrb[31].mxu1 }
 0x14e   : > { %1599 = vst.msk [vmem:[%s2714_s7 + $0xd8] sm:$0xff] %vm1571_vm1, %v1566_v4  ;;  %v1441_v19 = vadd.f32 %v2114_v6, %v2695_v45  ;;  %v2116_v20 = vadd.f32 %v2073_v15, %v2029_v10  ;;  %v1360_v22 = vpop.f32.mrb[31].mxu0 }
 0x14f   : > { %1597 = vst.msk [vmem:[%s2714_s7 + $0xc8] sm:$0xff] %vm1571_vm1, %v1564_v11  ;;  %v1439_v31 = vadd.f32 %v2115_v14, %v2695_v45  ;;  %v2117_v32 = vadd.f32 %v1360_v22, %v958_v16 }
 0x150   : > { %v1505_v37 = vadd.f32 %v1473_v23, %v1441_v19  ;;  %v1442_v39 = vadd.f32 %v2116_v20, %v2695_v45 }
 0x151   : > { %v1503_v40 = vadd.f32 %v1471_v35, %v1439_v31  ;;  %v1440_v47 = vadd.f32 %v2117_v32, %v2695_v45 }
 0x152   : > { %v1569_v48 = vadd.f32 %v1537_v26, %v1505_v37  ;;  %v1506_v60 = vadd.f32 %v1474_v36, %v1442_v39 }
 0x153   : > { %v1567_v17 = vadd.f32 %v1535_v38, %v1503_v40  ;;  %v1504_v41 = vadd.f32 %v1472_v43, %v1440_v47 }
 0x154   : > { %1602 = vst.msk [vmem:[%s2714_s7 + $0xf0] sm:$0xff] %vm1571_vm1, %v1569_v48  ;;  %v1570_v18 = vadd.f32 %v1538_v44, %v1506_v60 }
 0x155   : > { %1600 = vst.msk [vmem:[%s2714_s7 + $0xe0] sm:$0xff] %vm1571_vm1, %v1567_v17  ;;  %v1568_v5 = vadd.f32 %v1536_v13, %v1504_v41 }
 0x156   : > { %1603 = vst.msk [vmem:[%s2714_s7 + $0xf8] sm:$0xff] %vm1571_vm1, %v1570_v18 }
 0x157   : > { %1601 = vst.msk [vmem:[%s2714_s7 + $0xe8] sm:$0xff] %vm1571_vm1, %v1568_v5 }
 0x158 PF: > { %s15_s20 = sadd.s32 1, %s2215_s20   ;;  %s2891_s18 = smov %s2211_s19 }
 0x159   : > { %p12_p6 = scmp.ge.s32.totalorder %s15_s20, 4   ;;  %s2892_s19 = smov %s2894_s21 }
 0x15b   :  { %14 = sbr.rel (!%p12_p6) target bundleno = 2 (0x2), region = 84 }

// kernel: _lambda_.9
= control target key start
LH: loop header
LB: loop body
LE: loop exit
PB: predicated region body
PF: predicated region fallthrough
CT: control target
= control target key end

     0   :  { %9 = vsyncpa [#allocation3], 0  ;;  %s2881_s0 = inlined_call_operand.vmem [shape: bf16[576,96], index: 0, kind: input, shape index: {}]   ;;  %s2882_s1 = inlined_call_operand.vmem [shape: bf16[3,96,32], index: 1, kind: input, shape index: {}]   ;;  %s2883_s2 = inlined_call_operand.vmem [shape: f32[1,32], index: 2, kind: input, shape index: {}]   ;;  %s2884_s3 = inlined_call_operand.vmem [shape: f32[512,32], index: 3, kind: input, shape index: {}]   ;;  %s2885_s4 = inlined_call_operand.hbm [shape: f32[512,32], index: 4, kind: output, shape index: {}]  }
   0x1   :  { %11 = vsyncpa [#allocation3 + $0x1], 0  ;;  %s2201_s15 = smov 0   ;;  %s2203_s16 = smov 0  }
   0x2   :  { %s2205_s17 = smov 0   ;;  %s2207_s18 = smov 0  }
   0x3   :  { %s2209_s19 = smov 0   ;;  %s2211_s20 = smov 0  }
   0x4 LB: > { %s1601_s21 = sadd.s32 4294967295, %s2170_s20   ;;  %s1602_s22 = sadd.s32 4294967294, %s2170_s20   ;;  %s2170_s20 = sphi %s2211_s20, %s17_s20   ;;  %s2166_s19 = sphi %s2209_s19, %s2892_s19   ;;  %s2162_s18 = sphi %s2207_s18, %s2891_s18   ;;  %s2158_s17 = sphi %s2205_s17, %s2890_s17   ;;  %s2154_s16 = sphi %s2203_s16, %s2889_s16   ;;  %s2150_s15 = sphi %s2201_s15, %s2888_s15  }
   0x5   : > { %s29_s23 = sadd.s32 1, %s2166_s19  ;;  %s144_s24 = sadd.s32 1, %s2158_s17 }
   0x6   : > { %p31_p0 = scmp.ge.s32.totalorder %s29_s23, 2  ;;  %p154_p1 = scmp.ne.s32.totalorder %s2158_s17, %s2154_s16 }
   0x7   : > { %p155_p2 = scmp.eq.s32.totalorder %s1601_s21, 1  ;;  %p160_p3 = scmp.ne.s32.totalorder %s2154_s16, %s2150_s15 }
   0x8   : > { %s2894_s23 = smov (%p31_p0, %s29_s23), 0  ;;  %p161_p5 = scmp.eq.s32.totalorder %s1602_s22, 1 }
   0x9   : > { %p2241_p4 = por %p155_p2, %p154_p1  ;;  %s139_s26 = ssub.s32 %s2166_s19, %s2894_s23 }
   0xa   : > { %p1607_p6 = scmp.ge.s32.totalorder %s2170_s20, 1  ;;  %p142_p7 = scmp.eq.s32.totalorder %s139_s26, 0 }
   0xb   : > { %p2248_p8 = por %p161_p5, %p160_p3  ;;  %p213_p9 = scmp.lt.s32.totalorder %s2170_s20, 3 }
   0xc   : > { %s2254_s28 = scalar_select %p142_p7, %s2158_s17, %s144_s24  }
   0xd   : > { %p214_p10 = pnand %p1607_p6, %p213_p9 }
   0xe   : > { %v2074_v0 = vld [vmem:[%s2882_s1 + $0x30] sm:$0xff] (!%p214_p10)   ;;  %s254_s5 = smul.u32 (!%p214_p10), 36, %s2162_s18  ;;  %v2263_v1 = vld [vmem:[%s2882_s1] sm:$0xff] (!%p214_p10)   ;;  %v2076_v2 = vld [vmem:[%s2882_s1 + $0x38] sm:$0xff] (!%p214_p10)   ;;  %v2172_v13 = vmov (!%p214_p10), 0   ;;  %vm487_vm0 = vcmask (!%p214_p10), 785408  }
   0xf   : > { %217 = sbr.rel (%p214_p10) target bundleno = 364 (0x16c), region = 36  ;;  %1808 = vmatprep.subr.bf16.mxu1 (!%p214_p10), %v2074_v0  ;;  %1852 = vmatprep.subr.bf16.mxu0 (!%p214_p10), %v2263_v1  ;;  %v2272_v3 = vld [vmem:[%s2882_s1 + $0x8] sm:$0xff] (!%p214_p10)   ;;  %v2078_v4 = vld [vmem:[%s2882_s1 + $0x40] sm:$0xff] (!%p214_p10)   ;;  %v2282_v5 = vld [vmem:[%s2882_s1 + $0x10] sm:$0xff] (!%p214_p10)   ;;  %s251_s14 = sand.u32 (!%p214_p10), 1, %s2154_s16   ;;  %vm1439_vm1 = vcmask (!%p214_p10), 261120  }
  0x10   : > { %p255_p11 = scmp.lt.s32.totalorder (!%p214_p10), %s254_s5, 71  ;;  %1809 = vmatpush3.bf16.msra.mxu1 (!%p214_p10), %v2074_v0  ;;  %1853 = vmatpush3.bf16.msra.mxu0 (!%p214_p10), %v2263_v1  ;;  %v2080_v6 = vld [vmem:[%s2882_s1 + $0x48] sm:$0xff] (!%p214_p10)   ;;  %v2292_v7 = vld [vmem:[%s2882_s1 + $0x18] sm:$0xff] (!%p214_p10)   ;;  %v2082_v8 = vld [vmem:[%s2882_s1 + $0x50] sm:$0xff] (!%p214_p10)   ;;  %s1608_s30 = sshll.u32 (!%p214_p10), %s251_s14, 8 }
  0x11   : > { %1810 = vmatprep.subr.bf16.mxu1 (!%p214_p10), %v2076_v2  ;;  %1854 = vmatprep.subr.bf16.mxu0 (!%p214_p10), %v2272_v3  ;;  %v2310_v12 = vld [vmem:[%s2882_s1 + $0x20] sm:$0xff] (!%p214_p10)   ;;  %v2084_v22 = vld [vmem:[%s2882_s1 + $0x58] sm:$0xff] (!%p214_p10)   ;;  %v2326_v23 = vld [vmem:[%s2882_s1 + $0x28] sm:$0xff] (!%p214_p10)   ;;  %s2694_s6 = scalar_lea.vmem (!%p214_p10), [#allocation2], %s1608_s30  ;;  %s1741_s7 = sshll.u32 (!%p214_p10), %s2162_s18, 12 }
  0x12   : > { %v2086_v31 = vld [vmem:[%s2882_s1 + $0x60] sm:$0xff] (!%p214_p10)   ;;  %v2087_v38 = vld [vmem:[%s2882_s1 + $0x68] sm:$0xff] (!%p214_p10)   ;;  %v2088_v45 = vld [vmem:[%s2882_s1 + $0x70] sm:$0xff] (!%p214_p10)   ;;  %s2823_s11 = scalar_lea.hbm (!%p214_p10), %s2885_s4, %s1741_s7 }
  0x13   : > { %v2089_v52 = vld [vmem:[%s2882_s1 + $0x78] sm:$0xff] (!%p214_p10)   ;;  %v2090_v0 = vld [vmem:[%s2882_s1 + $0x80] sm:$0xff] (!%p214_p10)  }
  0x14   : > { %1811 = vmatpush3.bf16.msra.mxu1 (!%p214_p10), %v2076_v2  ;;  %1855 = vmatpush3.bf16.msra.mxu0 (!%p214_p10), %v2272_v3 }
  0x15   : > { %1812 = vmatprep.subr.bf16.mxu1 (!%p214_p10), %v2078_v4  ;;  %1856 = vmatprep.subr.bf16.mxu0 (!%p214_p10), %v2282_v5 }
  0x16   : > { %s2896_s5 = smov (!%p255_p11, %s254_s5), 71 }
  0x17   : > { %s1609_s22 = sshll.u32 %s2896_s5, 2  ;;  %s1487_s5 = sshll.u32 %s2694_s6, 4  ;;  %s2825_s5 = int_to_ptr.vmem [resolvable:$true] %s1487_s5 }
  0x18   : > { %s2297_s8 = scalar_lea.vmem %s2881_s0, %s1609_s22  ;;  %1813 = vmatpush3.bf16.msra.mxu1 %v2078_v4  ;;  %1857 = vmatpush3.bf16.msra.mxu0 %v2282_v5  ;;  %s2092_s12 = scalar_lea.vmem %s2825_s5, 4096 }
  0x19   : > { %1814 = vmatprep.subr.bf16.mxu1 %v2080_v6  ;;  %v280_v9 = vld [vmem:[%s2297_s8 + $0x8] sm:$0xf]  ;;  %v281_v10 = vld [vmem:[%s2297_s8 + $0xc] sm:$0xf]  ;;  %v278_v11 = vld [vmem:[%s2297_s8] sm:$0xf]  ;;  %1858 = vmatprep.subr.bf16.mxu0 %v2292_v7  ;;  %p2093_p13 = scmp.ne.s32.totalorder %s2825_s5, %s2092_s12 }
  0x1a   : > { %v312_v14 = vmax.bf16 %v2172_v13, %v280_v9  ;;  %v313_v15 = vmax.bf16 %v2172_v13, %v281_v10  ;;  %v279_v16 = vld [vmem:[%s2297_s8 + $0x4] sm:$0xf]  ;;  %v310_v17 = vmax.bf16 %v2172_v13, %v278_v11  ;;  %v282_v19 = vld [vmem:[%s2297_s8 + $0x10] sm:$0xf]  ;;  %v283_v21 = vld [vmem:[%s2297_s8 + $0x14] sm:$0xf] }
  0x1b   : > { %v311_v18 = vmax.bf16 %v2172_v13, %v279_v16  ;;  %v284_v25 = vld [vmem:[%s2297_s8 + $0x18] sm:$0xf]  ;;  %v285_v26 = vld [vmem:[%s2297_s8 + $0x1c] sm:$0xf]  ;;  %v314_v27 = vmax.bf16 %v2172_v13, %v282_v19  ;;  %v315_v28 = vmax.bf16 %v2172_v13, %v283_v21  ;;  %v286_v33 = vld [vmem:[%s2297_s8 + $0x20] sm:$0xf]  ;;  %p2094_p0 = pnand %p2093_p13, %p2241_p4 }
  0x1c   : > { %1815 = vmatpush3.bf16.msra.mxu1 %v2080_v6  ;;  %v1624_v20 = vcombine.low %v312_v14, %v313_v15  ;;  %1859 = vmatpush3.bf16.msra.mxu0 %v2292_v7  ;;  %v316_v29 = vmax.bf16 %v2172_v13, %v284_v25  ;;  %v317_v30 = vmax.bf16 %v2172_v13, %v285_v26  ;;  %v287_v34 = vld [vmem:[%s2297_s8 + $0x24] sm:$0xf]  ;;  %v288_v36 = vld [vmem:[%s2297_s8 + $0x28] sm:$0xf]  ;;  %v289_v37 = vld [vmem:[%s2297_s8 + $0x2c] sm:$0xf] }
  0x1d   : > { %1816 = vmatprep.subr.bf16.mxu1 %v2082_v8  ;;  %v1662_v24 = vcombine.low %v310_v17, %v311_v18  ;;  %1860 = vmatprep.subr.bf16.mxu0 %v2310_v12  ;;  %v1625_v32 = vcombine.low %v314_v27, %v315_v28  ;;  %v318_v39 = vmax.bf16 %v2172_v13, %v286_v33  ;;  %v290_v43 = vld [vmem:[%s2297_s8 + $0x30] sm:$0xf]  ;;  %v291_v44 = vld [vmem:[%s2297_s8 + $0x34] sm:$0xf]  ;;  %v292_v46 = vld [vmem:[%s2297_s8 + $0x38] sm:$0xf]  ;;  %p2095_p1 = pneg %p2094_p0 }
  0x1e   : > { %1820 = vmatprep.mubr.msk.bf16.mxu1 %vm487_vm0, %v1624_v20  ;;  %v1626_v35 = vcombine.low %v316_v29, %v317_v30  ;;  %v319_v40 = vmax.bf16 %v2172_v13, %v287_v34  ;;  %v320_v41 = vmax.bf16 %v2172_v13, %v288_v36  ;;  %v321_v42 = vmax.bf16 %v2172_v13, %v289_v37  ;;  %v293_v47 = vld [vmem:[%s2297_s8 + $0x3c] sm:$0xf]  ;;  %v294_v55 = vld [vmem:[%s2297_s8 + $0x40] sm:$0xf]  ;;  %v295_v56 = vld [vmem:[%s2297_s8 + $0x44] sm:$0xf] }
  0x1f   : > { %1864 = vmatprep.mubr.msk.bf16.mxu0 %vm487_vm0, %v1662_v24  ;;  %v322_v50 = vmax.bf16 %v2172_v13, %v290_v43  ;;  %v323_v51 = vmax.bf16 %v2172_v13, %v291_v44  ;;  %v324_v53 = vmax.bf16 %v2172_v13, %v292_v46  ;;  %v325_v54 = vmax.bf16 %v2172_v13, %v293_v47  ;;  %v296_v57 = vld [vmem:[%s2297_s8 + $0x48] sm:$0xf]  ;;  %v297_v58 = vld [vmem:[%s2297_s8 + $0x4c] sm:$0xf]  ;;  %v902_v59 = vld [vmem:[%s2297_s8 + $0x10] sm:$0xf] }
  0x20   : > { %1817 = vmatpush3.bf16.msra.mxu1 %v2082_v8  ;;  %1861 = vmatpush3.bf16.msra.mxu0 %v2310_v12  ;;  %v1627_v48 = vcombine.low %v318_v39, %v319_v40  ;;  %v2369_v49 = vcombine.low %v320_v41, %v321_v42  ;;  %v903_v60 = vld [vmem:[%s2297_s8 + $0x14] sm:$0xf]  ;;  %v354_v61 = vld [vmem:[%s2297_s8 + $0x80] sm:$0xf]  ;;  %v355_v62 = vld [vmem:[%s2297_s8 + $0x84] sm:$0xf]  ;;  %v2398_v2 = vmax.bf16 %v2172_v13, %v295_v56 }
  0x21   : > { %1818 = vmatprep.subr.bf16.mxu1 %v2084_v22  ;;  %1862 = vmatprep.subr.bf16.mxu0 %v2326_v23  ;;  %v1629_v63 = vcombine.low %v322_v50, %v323_v51  ;;  %v917_v4 = vld [vmem:[%s2297_s8 + $0x4c] sm:$0xf]  ;;  %v918_v6 = vld [vmem:[%s2297_s8 + $0x50] sm:$0xf]  ;;  %v2404_v8 = vcombine.low %v324_v53, %v325_v54  ;;  %v2407_v9 = vmax.bf16 %v2172_v13, %v296_v57  ;;  %v919_v11 = vld [vmem:[%s2297_s8 + $0x54] sm:$0xf] }
  0x22   : > { %v2410_v10 = vmax.bf16 %v2172_v13, %v297_v58  ;;  %v920_v14 = vld [vmem:[%s2297_s8 + $0x58] sm:$0xf]  ;;  %v921_v15 = vld [vmem:[%s2297_s8 + $0x5c] sm:$0xf]  ;;  %v2417_v16 = vmax.bf16 %v2172_v13, %v902_v59  ;;  %v2420_v17 = vmax.bf16 %v2172_v13, %v354_v61  ;;  %v2423_v18 = vmax.bf16 %v2172_v13, %v355_v62  ;;  %v922_v19 = vld [vmem:[%s2297_s8 + $0x60] sm:$0xf] }
  0x23   : > { %v924_v21 = vld [vmem:[%s2297_s8 + $0x68] sm:$0xf]  ;;  %v2436_v24 = vmax.bf16 %v2172_v13, %v917_v4  ;;  %v2439_v25 = vmax.bf16 %v2172_v13, %v918_v6  ;;  %v925_v26 = vld [vmem:[%s2297_s8 + $0x6c] sm:$0xf]  ;;  %v2445_v28 = vmax.bf16 %v2172_v13, %v919_v11  ;;  %v2448_v29 = vmax.bf16 %v2172_v13, %v920_v14  ;;  %v928_v37 = vld [vmem:[%s2297_s8 + $0x78] sm:$0xf] }
  0x24   : > { %1819 = vmatpush3.bf16.msra.mxu1 %v2084_v22  ;;  %1863 = vmatpush3.bf16.msra.mxu0 %v2326_v23  ;;  %v2429_v22 = vmax.bf16 %v2172_v13, %v903_v60  ;;  %v1639_v27 = vcombine.low %v2420_v17, %v2423_v18  ;;  %v2451_v30 = vmax.bf16 %v2172_v13, %v921_v15  ;;  %v2091_v39 = vld [vmem:[%s2882_s1 + $0x88] sm:$0xff]   ;;  %v930_v43 = vld [vmem:[%s2297_s8 + $0x80] sm:$0xf]  ;;  %v931_v44 = vld [vmem:[%s2297_s8 + $0x84] sm:$0xf] }
  0x25   : > { %1940 = vmatprep.subr.bf16.mxu1 %v2263_v1  ;;  %1896 = vmatprep.subr.bf16.mxu0 %v2086_v31  ;;  %v2458_v34 = vmax.bf16 %v2172_v13, %v922_v19  ;;  %v2464_v36 = vmax.bf16 %v2172_v13, %v924_v21  ;;  %v1705_v40 = vcombine.low %v2439_v25, %v2445_v28  ;;  %v932_v47 = vld [vmem:[%s2297_s8 + $0x88] sm:$0xf]  ;;  %v298_v60 = vld [vmem:[%s2297_s8 + $0x50] sm:$0xf]  ;;  %v299_v61 = vld [vmem:[%s2297_s8 + $0x54] sm:$0xf] }
  0x26   : > { %v1706_v41 = vcombine.low %v2448_v29, %v2451_v30  ;;  %v2477_v42 = vmax.bf16 %v2172_v13, %v925_v26  ;;  %v2500_v51 = vmax.bf16 %v2172_v13, %v928_v37  ;;  %v2509_v53 = vmax.bf16 %v2172_v13, %v930_v43  ;;  %v904_v62 = vld [vmem:[%s2297_s8 + $0x18] sm:$0xf]  ;;  %v906_v4 = vld [vmem:[%s2297_s8 + $0x20] sm:$0xf]  ;;  %v907_v6 = vld [vmem:[%s2297_s8 + $0x24] sm:$0xf] }
  0x27   : > { %1821 = vmatmul.mubr.msk.bf16.vlgmr.msra.gmra.mrb[0].mxu1 %vm487_vm0, %v1625_v32  ;;  %1865 = vmatmul.mubr.msk.bf16.vlgmr.msra.gmra.mrb[0].mxu0 %vm487_vm0, %v1624_v20  ;;  %v923_v20 = vld [vmem:[%s2297_s8 + $0x64] sm:$0xf]  ;;  %v2512_v54 = vmax.bf16 %v2172_v13, %v931_v44  ;;  %v2518_v56 = vmax.bf16 %v2172_v13, %v932_v47  ;;  %v2532_v59 = vcombine.low %v2407_v9, %v2410_v10  ;;  %v909_v37 = vld [vmem:[%s2297_s8 + $0x2c] sm:$0xf]  ;;  %v910_v43 = vld [vmem:[%s2297_s8 + $0x30] sm:$0xf] }
  0x28   : > { %1946 = vmatpush3.bf16.msra.mxu1 %v2263_v1  ;;  %1897 = vmatpush3.bf16.msra.mxu0 %v2086_v31  ;;  %v2395_v1 = vmax.bf16 %v2172_v13, %v294_v55  ;;  %v926_v31 = vld [vmem:[%s2297_s8 + $0x70] sm:$0xf]  ;;  %v1708_v50 = vcombine.low %v2464_v36, %v2477_v42  ;;  %v330_v9 = vmax.bf16 %v2172_v13, %v298_v60  ;;  %v303_v26 = vld [vmem:[%s2297_s8 + $0x64] sm:$0xf]  ;;  %v911_v44 = vld [vmem:[%s2297_s8 + $0x34] sm:$0xf] }
  0x29   : > { %1824 = vmatprep.mubr.msk.bf16.mxu1 %vm487_vm0, %v1626_v35  ;;  %1898 = vmatprep.subr.bf16.mxu0 %v2087_v38  ;;  %v331_v10 = vmax.bf16 %v2172_v13, %v299_v61  ;;  %v936_v11 = vmax.bf16 %v2172_v13, %v904_v62  ;;  %v939_v19 = vmax.bf16 %v2172_v13, %v907_v6 }
  0x2a   : > { %1868 = vmatprep.mubr.msk.bf16.mxu0 %vm487_vm0, %v1625_v32  ;;  %1941 = vmatprep.subr.bf16.mxu1 %v2272_v3  ;;  %v927_v32 = vld [vmem:[%s2297_s8 + $0x74] sm:$0xf]  ;;  %v2525_v58 = vcombine.low %v2395_v1, %v2398_v2  ;;  %v905_v1 = vld [vmem:[%s2297_s8 + $0x1c] sm:$0xf]  ;;  %v300_v2 = vld [vmem:[%s2297_s8 + $0x58] sm:$0xf]  ;;  %v941_v61 = vmax.bf16 %v2172_v13, %v909_v37 }
  0x2b   : > { %v2489_v46 = vmax.bf16 %v2172_v13, %v927_v32  ;;  %v332_v14 = vmax.bf16 %v2172_v13, %v300_v2  ;;  %v943_v2 = vmax.bf16 %v2172_v13, %v911_v44 }
  0x2c   : > { %1947 = vmatpush3.bf16.msra.mxu1 %v2272_v3  ;;  %1899 = vmatpush3.bf16.msra.mxu0 %v2087_v38  ;;  %v916_v3 = vld [vmem:[%s2297_s8 + $0x48] sm:$0xf]  ;;  %v929_v38 = vld [vmem:[%s2297_s8 + $0x7c] sm:$0xf] }
  0x2d   : > { %1942 = vmatprep.subr.bf16.mxu1 %v2282_v5  ;;  %1900 = vmatprep.subr.bf16.mxu0 %v2088_v45 }
  0x2f   : > { %1825 = vmatmul.mubr.msk.bf16.gmra.mrb[4].mxu1 %vm487_vm0, %v1627_v48  ;;  %1869 = vmatmul.mubr.msk.bf16.gmra.mrb[4].mxu0 %vm487_vm0, %v1626_v35  ;;  %v2461_v35 = vmax.bf16 %v2172_v13, %v923_v20 }
  0x30   : > { %1828 = vmatprep.mubr.msk.bf16.mxu1 %vm487_vm0, %v2369_v49  ;;  %1901 = vmatpush3.bf16.msra.mxu0 %v2088_v45 }
  0x31   : > { %1872 = vmatprep.mubr.msk.bf16.mxu0 %vm487_vm0, %v1627_v48  ;;  %1902 = vmatprep.subr.bf16.mxu0 %v2089_v52  ;;  %v1707_v45 = vcombine.low %v2458_v34, %v2461_v35  ;;  %v933_v48 = vld [vmem:[%s2297_s8 + $0x8c] sm:$0xf] }
  0x32   : > { %1948 = vmatpush3.bf16.msra.mxu1 %v2282_v5  ;;  %v2433_v5 = vmax.bf16 %v2172_v13, %v916_v3  ;;  %v2521_v57 = vmax.bf16 %v2172_v13, %v933_v48  ;;  %v301_v3 = vld [vmem:[%s2297_s8 + $0x5c] sm:$0xf]  ;;  %v335_v48 = vmax.bf16 %v2172_v13, %v303_v26 }
  0x33   : > { %1943 = vmatprep.subr.bf16.mxu1 %v2292_v7  ;;  %v333_v15 = vmax.bf16 %v2172_v13, %v301_v3 }
  0x34   : > { %1903 = vmatpush3.bf16.msra.mxu0 %v2089_v52  ;;  %v1704_v33 = vcombine.low %v2433_v5, %v2436_v24  ;;  %v2503_v52 = vmax.bf16 %v2172_v13, %v929_v38  ;;  %v304_v38 = vld [vmem:[%s2297_s8 + $0x68] sm:$0xf] }
  0x35   : > { %1904 = vmatprep.subr.bf16.mxu0 %v2090_v0  ;;  %v1634_v21 = vcombine.low %v332_v14, %v333_v15  ;;  %v336_v62 = vmax.bf16 %v2172_v13, %v304_v38  ;;  %v913_v14 = vld [vmem:[%s2297_s8 + $0x3c] sm:$0xf]  ;;  %v308_v15 = vld [vmem:[%s2297_s8 + $0x78] sm:$0xf] }
  0x36   : > { %1949 = vmatpush3.bf16.msra.mxu1 %v2292_v7  ;;  %v2486_v7 = vmax.bf16 %v2172_v13, %v926_v31  ;;  %v1710_v55 = vcombine.low %v2500_v51, %v2503_v52  ;;  %v908_v31 = vld [vmem:[%s2297_s8 + $0x28] sm:$0xf]  ;;  %v340_v37 = vmax.bf16 %v2172_v13, %v308_v15 }
  0x37   : > { %1829 = vmatmul.mubr.msk.bf16.gmra.mrb[8].mxu1 %vm487_vm0, %v1629_v63  ;;  %1944 = vmatprep.subr.bf16.mxu1 %v2310_v12  ;;  %v940_v60 = vmax.bf16 %v2172_v13, %v908_v31 }
  0x38   : > { %1873 = vmatmul.mubr.msk.bf16.gmra.mrb[8].mxu0 %vm487_vm0, %v2369_v49  ;;  %1832 = vmatprep.mubr.msk.bf16.mxu1 %vm487_vm0, %v2404_v8  ;;  %v1709_v49 = vcombine.low %v2486_v7, %v2489_v46 }
  0x39   : > { %1876 = vmatprep.mubr.msk.bf16.mxu0 %vm487_vm0, %v1629_v63  ;;  %1905 = vmatpush3.bf16.msra.mxu0 %v2090_v0  ;;  %v1712_v63 = vcombine.low %v2518_v56, %v2521_v57  ;;  %v1697_v0 = vcombine.low %v2417_v16, %v2429_v22  ;;  %v938_v16 = vmax.bf16 %v2172_v13, %v906_v4  ;;  %v302_v22 = vld [vmem:[%s2297_s8 + $0x60] sm:$0xf] }
  0x3a   : > { %1906 = vmatprep.subr.bf16.mxu0 %v2091_v39  ;;  %1950 = vmatpush3.bf16.msra.mxu1 %v2310_v12  ;;  %v1711_v12 = vcombine.low %v2509_v53, %v2512_v54  ;;  %v334_v47 = vmax.bf16 %v2172_v13, %v302_v22  ;;  %v1700_v4 = vcombine.low %v940_v60, %v941_v61 }
  0x3b   : > { %1945 = vmatprep.subr.bf16.mxu1 %v2326_v23  ;;  %v1699_v32 = vcombine.low %v938_v16, %v939_v19  ;;  %v309_v16 = vld [vmem:[%s2297_s8 + $0x7c] sm:$0xf]  ;;  %v914_v19 = vld [vmem:[%s2297_s8 + $0x40] sm:$0xf] }
  0x3c   : > { %v1635_v3 = vcombine.low %v334_v47, %v335_v48  ;;  %v341_v38 = vmax.bf16 %v2172_v13, %v309_v16 }
  0x3d   : > { %1907 = vmatpush3.bf16.msra.mxu0 %v2091_v39  ;;  %v305_v39 = vld [vmem:[%s2297_s8 + $0x6c] sm:$0xf] }
  0x3e   : > { %1951 = vmatpush3.bf16.msra.mxu1 %v2326_v23  ;;  %v937_v23 = vmax.bf16 %v2172_v13, %v905_v1  ;;  %v942_v1 = vmax.bf16 %v2172_v13, %v910_v43  ;;  %v1638_v48 = vcombine.low %v340_v37, %v341_v38 }
  0x3f   : > { %1833 = vmatmul.mubr.msk.bf16.gmra.mrb[12].mxu1 %vm487_vm0, %v2525_v58 }
  0x40   : > { %1877 = vmatmul.mubr.msk.bf16.gmra.mrb[12].mxu0 %vm487_vm0, %v2404_v8  ;;  %1836 = vmatprep.mubr.msk.bf16.mxu1 %vm487_vm0, %v2532_v59  ;;  %v1633_v8 = vcombine.low %v330_v9, %v331_v10  ;;  %v1698_v20 = vcombine.low %v936_v11, %v937_v23  ;;  %v306_v9 = vld [vmem:[%s2297_s8 + $0x70] sm:$0xf]  ;;  %v307_v10 = vld [vmem:[%s2297_s8 + $0x74] sm:$0xf]  ;;  %v912_v11 = vld [vmem:[%s2297_s8 + $0x38] sm:$0xf]  ;;  %v1701_v23 = vcombine.low %v942_v1, %v943_v2 }
  0x41   : > { %1908 = vmatprep.mubr.msk.bf16.mxu0 %vm487_vm0, %v1697_v0  ;;  %v337_v0 = vmax.bf16 %v2172_v13, %v305_v39  ;;  %v338_v22 = vmax.bf16 %v2172_v13, %v306_v9  ;;  %v339_v26 = vmax.bf16 %v2172_v13, %v307_v10  ;;  %v944_v31 = vmax.bf16 %v2172_v13, %v912_v11 }
  0x42   : > { %v946_v39 = vmax.bf16 %v2172_v13, %v914_v19 }
  0x43   : > { %v1636_v6 = vcombine.low %v336_v62, %v337_v0  ;;  %v1637_v44 = vcombine.low %v338_v22, %v339_v26 }
  0x47   : > { %1837 = vmatmul.mubr.msk.bf16.gmra.mrb[16].mxu1 %vm487_vm0, %v1633_v8 }
  0x48   : > { %1909 = vmatmul.mubr.msk.bf16.vlgmr.msra.gmra.mrb[0].mxu0 %vm487_vm0, %v1698_v20  ;;  %1840 = vmatprep.mubr.msk.bf16.mxu1 %vm487_vm0, %v1634_v21  ;;  %v915_v20 = vld [vmem:[%s2297_s8 + $0x44] sm:$0xf]  ;;  %s1610_s8 = sshll.u32 %s2162_s18, 5  ;;  %s2835_s18 = scalar_lea.sflag [#allocation3], %s251_s14 }
  0x49   : > { %1912 = vmatprep.mubr.msk.bf16.mxu0 %vm487_vm0, %v1699_v32  ;;  %v945_v32 = vmax.bf16 %v2172_v13, %v913_v14  ;;  %v947_v43 = vmax.bf16 %v2172_v13, %v915_v20  ;;  %p268_p12 = scmp.lt.s32.totalorder %s1610_s8, 63 }
  0x4b   : > { %v1702_v47 = vcombine.low %v944_v31, %v945_v32  ;;  %v1703_v60 = vcombine.low %v946_v39, %v947_v43  ;;  %s2898_s8 = smov (!%p268_p12, %s1610_s8), 63 }
  0x4c   : > { %s1611_s13 = sshll.u32 %s2898_s8, 3  ;;  %s2173_s8 = smov [#allocation2]  }
  0x4d   : > { %s2677_s24 = scalar_lea.vmem %s2884_s3, %s1611_s13  ;;  %s2096_s13 = sshll.u32 %s2173_s8, 4  ;;  %s2097_s13 = int_to_ptr.vmem [resolvable:$false] %s2096_s13 }
  0x4e   : > { %v1375_v53 = vld [vmem:[%s2677_s24] sm:$0xff]  ;;  %v1378_v57 = vld [vmem:[%s2677_s24 + $0x18] sm:$0xff]  ;;  %v1380_v22 = vld [vmem:[%s2677_s24 + $0x28] sm:$0xff]  ;;  %s2098_s21 = scalar_lea.vmem %s2097_s13, 8192  ;;  %p2099_p2 = scmp.lt.s32.totalorder %s2825_s5, %s2097_s13 }
  0x4f   : > { %1841 = vmatmul.mubr.msk.bf16.gmra.mrb[20].mxu1 %vm487_vm0, %v1635_v3  ;;  %v1379_v10 = vld [vmem:[%s2677_s24 + $0x20] sm:$0xff]  ;;  %v1382_v15 = vld [vmem:[%s2677_s24 + $0x38] sm:$0xff]  ;;  %p2100_p3 = scmp.lt.s32.totalorder %s2098_s21, %s2092_s12 }
  0x50   : > { %1913 = vmatmul.mubr.msk.bf16.gmra.mrb[4].mxu0 %vm487_vm0, %v1700_v4  ;;  %1844 = vmatprep.mubr.msk.bf16.mxu1 %vm487_vm0, %v1636_v6 }
  0x51   : > { %1916 = vmatprep.mubr.msk.bf16.mxu0 %vm487_vm0, %v1701_v23  ;;  %p2101_p5 = por %p2100_p3, %p2099_p2 }
  0x53   : > { %p2102_p6 = pnand %p2101_p5, %p2095_p1 }
  0x57   : > { %1845 = vmatmul.mubr.msk.bf16.gmra.mrb[24].mxu1 %vm487_vm0, %v1637_v44 }
  0x58   : > { %1917 = vmatmul.mubr.msk.bf16.gmra.mrb[8].mxu0 %vm487_vm0, %v1702_v47  ;;  %1848 = vmatprep.mubr.msk.bf16.mxu1 %vm487_vm0, %v1638_v48 }
  0x59   : > { %1920 = vmatprep.mubr.msk.bf16.mxu0 %vm487_vm0, %v1703_v60 }
  0x5f   : > { %1849 = vmatmul.mubr.msk.bf16.gmra.mrb[28].mxu1 %vm487_vm0, %v1639_v27 }
  0x60   : > { %1921 = vmatmul.mubr.msk.bf16.gmra.mrb[12].mxu0 %vm487_vm0, %v1704_v33  ;;  %1880 = vmatprep.mubr.msk.bf16.mxu1 %vm487_vm0, %v2525_v58 }
  0x61   : > { %1924 = vmatprep.mubr.msk.bf16.mxu0 %vm487_vm0, %v1705_v40 }
  0x67   : > { %1881 = vmatmul.mubr.msk.bf16.vlgmr.msra.gmra.mrb[16].mxu1 %vm487_vm0, %v2532_v59 }
  0x68   : > { %1925 = vmatmul.mubr.msk.bf16.gmra.mrb[16].mxu0 %vm487_vm0, %v1706_v41  ;;  %1884 = vmatprep.mubr.msk.bf16.mxu1 %vm487_vm0, %v1633_v8 }
  0x69   : > { %1928 = vmatprep.mubr.msk.bf16.mxu0 %vm487_vm0, %v1707_v45  ;;  %v2682_v45 = vld [vmem:[%s2883_s2] ss:$0 sm:$0xff] }
  0x6f   : > { %1885 = vmatmul.mubr.msk.bf16.gmra.mrb[20].mxu1 %vm487_vm0, %v1634_v21 }
  0x70   : > { %1929 = vmatmul.mubr.msk.bf16.gmra.mrb[20].mxu0 %vm487_vm0, %v1708_v50  ;;  %1888 = vmatprep.mubr.msk.bf16.mxu1 %vm487_vm0, %v1635_v3  ;;  %v1377_v50 = vld [vmem:[%s2677_s24 + $0x10] sm:$0xff] }
  0x71   : > { %1932 = vmatprep.mubr.msk.bf16.mxu0 %vm487_vm0, %v1709_v49  ;;  %v1381_v3 = vld [vmem:[%s2677_s24 + $0x30] sm:$0xff] }
  0x77   : > { %1889 = vmatmul.mubr.msk.bf16.gmra.mrb[24].mxu1 %vm487_vm0, %v1636_v6 }
  0x78   : > { %1933 = vmatmul.mubr.msk.bf16.gmra.mrb[24].mxu0 %vm487_vm0, %v1710_v55  ;;  %1892 = vmatprep.mubr.msk.bf16.mxu1 %vm487_vm0, %v1637_v44  ;;  %v1385_v44 = vld [vmem:[%s2677_s24 + $0x50] sm:$0xff] }
  0x79   : > { %1936 = vmatprep.mubr.msk.bf16.mxu0 %vm487_vm0, %v1711_v12 }
  0x7f   : > { %1893 = vmatmul.mubr.msk.bf16.gmra.mrb[28].mxu1 %vm487_vm0, %v1638_v48 }
  0x80   : > { %1937 = vmatmul.mubr.msk.bf16.gmra.mrb[28].mxu0 %vm487_vm0, %v1712_v63  ;;  %v1376_v63 = vld [vmem:[%s2677_s24 + $0x8] sm:$0xff] }
  0xfa   : > { %v1822_v13 = vpop.f32.mrb[0].mxu1 }
  0xfb   : > { %v570_v17 = vpop.f32.mrb[1].mxu1 }
  0xfc   : > { %v1823_v18 = vpop.f32.mrb[2].mxu1 }
  0xfd   : > { %v573_v5 = vpop.f32.mrb[3].mxu1 }
 0x102   : > { %v1826_v24 = vpop.f32.mrb[4].mxu1 }
 0x103   : > { %v586_v25 = vpop.f32.mrb[5].mxu1 }
 0x104   : > { %v1827_v27 = vpop.f32.mrb[6].mxu1 }
 0x105   : > { %v589_v28 = vpop.f32.mrb[7].mxu1 }
 0x10a   : > { %v2656_v29 = vpop.f32.mrb[8].mxu1 }
 0x10b   : > { %v2658_v30 = vpop.f32.mrb[9].mxu1 }
 0x10c   : > { %v2660_v33 = vpop.f32.mrb[10].mxu1 }
 0x10d   : > { %v2663_v34 = vpop.f32.mrb[11].mxu1 }
 0x112   : > { %v2665_v35 = vpop.f32.mrb[12].mxu1 }
 0x113   : > { %v2667_v36 = vpop.f32.mrb[13].mxu1 }
 0x114   : > { %v2669_v40 = vpop.f32.mrb[14].mxu1 }
 0x115   : > { %v2671_v41 = vpop.f32.mrb[15].mxu1 }
 0x11b   : > { %v1910_v42 = vpop.f32.mrb[0].mxu0 }
 0x11c   : > { %v1952_v7 = vadd.f32 %v1910_v42, %v1822_v13  ;;  %v1177_v46 = vpop.f32.mrb[1].mxu0  ;;  %v1383_v13 = vld [vmem:[%s2677_s24 + $0x40] sm:$0xff] }
 0x11d   : > { %v1953_v51 = vadd.f32 %v1177_v46, %v570_v17  ;;  %v1911_v52 = vpop.f32.mrb[2].mxu0 }
 0x11e   : > { %v1345_v49 = vadd.f32 %v1952_v7, %v2682_v45  ;;  %v1954_v54 = vadd.f32 %v1911_v52, %v1823_v18  ;;  %v1180_v55 = vpop.f32.mrb[3].mxu0 }
 0x11f   : > { %v1343_v56 = vadd.f32 %v1953_v51, %v2682_v45  ;;  %v1955_v58 = vadd.f32 %v1180_v55, %v573_v5  ;;  %v1389_v51 = vld [vmem:[%s2677_s24 + $0x70] sm:$0xff] }
 0x120   : > { %v1409_v12 = vadd.f32 %v1377_v50, %v1345_v49  ;;  %v1346_v59 = vadd.f32 %v1954_v54, %v2682_v45  ;;  %v1387_v54 = vld [vmem:[%s2677_s24 + $0x60] sm:$0xff] }
 0x121   : > { %v1407_v8 = vadd.f32 %v1375_v53, %v1343_v56  ;;  %v1344_v21 = vadd.f32 %v1955_v58, %v2682_v45  ;;  %v1390_v58 = vld [vmem:[%s2677_s24 + $0x78] sm:$0xff] }
 0x122   : > { %1442 = vst.msk [vmem:[%s2694_s6 + $0x10] sm:$0xff] %vm1439_vm1, %v1409_v12  ;;  %v1410_v61 = vadd.f32 %v1378_v57, %v1346_v59 }
 0x123   : > { %1440 = vst.msk [vmem:[%s2694_s6] sm:$0xff] %vm1439_vm1, %v1407_v8  ;;  %v1408_v62 = vadd.f32 %v1376_v63, %v1344_v21  ;;  %v1914_v0 = vpop.f32.mrb[4].mxu0 }
 0x124   : > { %1443 = vst.msk [vmem:[%s2694_s6 + $0x18] sm:$0xff] %vm1439_vm1, %v1410_v61  ;;  %v1956_v1 = vadd.f32 %v1914_v0, %v1826_v24  ;;  %v1193_v2 = vpop.f32.mrb[5].mxu0  ;;  %v1386_v24 = vld [vmem:[%s2677_s24 + $0x58] sm:$0xff] }
 0x125   : > { %1441 = vst.msk [vmem:[%s2694_s6 + $0x8] sm:$0xff] %vm1439_vm1, %v1408_v62  ;;  %v1957_v4 = vadd.f32 %v1193_v2, %v586_v25  ;;  %v1915_v6 = vpop.f32.mrb[6].mxu0 }
 0x126   : > { %v1349_v9 = vadd.f32 %v1956_v1, %v2682_v45  ;;  %v1958_v11 = vadd.f32 %v1915_v6, %v1827_v27  ;;  %v1196_v23 = vpop.f32.mrb[7].mxu0 }
 0x127   : > { %v1347_v14 = vadd.f32 %v1957_v4, %v2682_v45  ;;  %v1959_v16 = vadd.f32 %v1196_v23, %v589_v28 }
 0x128   : > { %v1413_v19 = vadd.f32 %v1381_v3, %v1349_v9  ;;  %v1350_v20 = vadd.f32 %v1958_v11, %v2682_v45  ;;  %v1393_v3 = vld [vmem:[%s2677_s24 + $0x90] sm:$0xff]  ;;  %v1391_v11 = vld [vmem:[%s2677_s24 + $0x80] sm:$0xff] }
 0x129   : > { %v1411_v26 = vadd.f32 %v1379_v10, %v1347_v14  ;;  %v1348_v31 = vadd.f32 %v1959_v16, %v2682_v45  ;;  %v1394_v16 = vld [vmem:[%s2677_s24 + $0x98] sm:$0xff] }
 0x12a   : > { %1446 = vst.msk [vmem:[%s2694_s6 + $0x30] sm:$0xff] %vm1439_vm1, %v1413_v19  ;;  %v1414_v32 = vadd.f32 %v1382_v15, %v1350_v20 }
 0x12b   : > { %1444 = vst.msk [vmem:[%s2694_s6 + $0x20] sm:$0xff] %vm1439_vm1, %v1411_v26  ;;  %v1412_v37 = vadd.f32 %v1380_v22, %v1348_v31  ;;  %v1918_v38 = vpop.f32.mrb[8].mxu0  ;;  %v1392_v26 = vld [vmem:[%s2677_s24 + $0x88] sm:$0xff] }
 0x12c   : > { %1447 = vst.msk [vmem:[%s2694_s6 + $0x38] sm:$0xff] %vm1439_vm1, %v1414_v32  ;;  %v1960_v39 = vadd.f32 %v1918_v38, %v2656_v29  ;;  %v1209_v43 = vpop.f32.mrb[9].mxu0  ;;  %v1384_v29 = vld [vmem:[%s2677_s24 + $0x48] sm:$0xff] }
 0x12d   : > { %1445 = vst.msk [vmem:[%s2694_s6 + $0x28] sm:$0xff] %vm1439_vm1, %v1412_v37  ;;  %v1961_v47 = vadd.f32 %v1209_v43, %v2658_v30  ;;  %v1919_v48 = vpop.f32.mrb[10].mxu0 }
 0x12e   : > { %v1353_v60 = vadd.f32 %v1960_v39, %v2682_v45  ;;  %v1962_v17 = vadd.f32 %v1919_v48, %v2660_v33  ;;  %v1212_v18 = vpop.f32.mrb[11].mxu0 }
 0x12f   : > { %v1351_v5 = vadd.f32 %v1961_v47, %v2682_v45  ;;  %v1963_v25 = vadd.f32 %v1212_v18, %v2663_v34 }
 0x130   : > { %v1417_v27 = vadd.f32 %v1385_v44, %v1353_v60  ;;  %v1354_v28 = vadd.f32 %v1962_v17, %v2682_v45 }
 0x131   : > { %v1415_v30 = vadd.f32 %v1383_v13, %v1351_v5  ;;  %v1352_v42 = vadd.f32 %v1963_v25, %v2682_v45  ;;  %v1397_v13 = vld [vmem:[%s2677_s24 + $0xb0] sm:$0xff]  ;;  %v1395_v25 = vld [vmem:[%s2677_s24 + $0xa0] sm:$0xff] }
 0x132   : > { %1450 = vst.msk [vmem:[%s2694_s6 + $0x50] sm:$0xff] %vm1439_vm1, %v1417_v27  ;;  %v1418_v7 = vadd.f32 %v1386_v24, %v1354_v28 }
 0x133   : > { %1448 = vst.msk [vmem:[%s2694_s6 + $0x40] sm:$0xff] %vm1439_vm1, %v1415_v30  ;;  %v1416_v33 = vadd.f32 %v1384_v29, %v1352_v42  ;;  %v1922_v46 = vpop.f32.mrb[12].mxu0  ;;  %v1398_v30 = vld [vmem:[%s2677_s24 + $0xb8] sm:$0xff] }
 0x134   : > { %1451 = vst.msk [vmem:[%s2694_s6 + $0x58] sm:$0xff] %vm1439_vm1, %v1418_v7  ;;  %v1964_v34 = vadd.f32 %v1922_v46, %v2665_v35  ;;  %v1225_v50 = vpop.f32.mrb[13].mxu0  ;;  %v1396_v46 = vld [vmem:[%s2677_s24 + $0xa8] sm:$0xff] }
 0x135   : > { %1449 = vst.msk [vmem:[%s2694_s6 + $0x48] sm:$0xff] %vm1439_vm1, %v1416_v33  ;;  %v1965_v52 = vadd.f32 %v1225_v50, %v2667_v36  ;;  %v1923_v49 = vpop.f32.mrb[14].mxu0  ;;  %v1388_v36 = vld [vmem:[%s2677_s24 + $0x68] sm:$0xff] }
 0x136   : > { %v1357_v53 = vadd.f32 %v1964_v34, %v2682_v45  ;;  %v1966_v55 = vadd.f32 %v1923_v49, %v2669_v40  ;;  %v1228_v56 = vpop.f32.mrb[15].mxu0 }
 0x137   : > { %v1355_v57 = vadd.f32 %v1965_v52, %v2682_v45  ;;  %v1967_v35 = vadd.f32 %v1228_v56, %v2671_v41 }
 0x138   : > { %v1421_v12 = vadd.f32 %v1389_v51, %v1357_v53  ;;  %v1358_v59 = vadd.f32 %v1966_v55, %v2682_v45 }
 0x139   : > { %v1419_v63 = vadd.f32 %v1387_v54, %v1355_v57  ;;  %v1356_v8 = vadd.f32 %v1967_v35, %v2682_v45 }
 0x13a   : > { %1454 = vst.msk [vmem:[%s2694_s6 + $0x70] sm:$0xff] %vm1439_vm1, %v1421_v12  ;;  %v1422_v21 = vadd.f32 %v1390_v58, %v1358_v59  ;;  %v1882_v40 = vpop.f32.mrb[16].mxu1  ;;  %v1401_v58 = vld [vmem:[%s2677_s24 + $0xd0] sm:$0xff] }
 0x13b   : > { %1452 = vst.msk [vmem:[%s2694_s6 + $0x60] sm:$0xff] %vm1439_vm1, %v1419_v63  ;;  %v1420_v61 = vadd.f32 %v1388_v36, %v1356_v8  ;;  %v1926_v62 = vpop.f32.mrb[16].mxu0  ;;  %v839_v41 = vpop.f32.mrb[17].mxu1  ;;  %v1399_v63 = vld [vmem:[%s2677_s24 + $0xc0] sm:$0xff] }
 0x13c   : > { %1455 = vst.msk [vmem:[%s2694_s6 + $0x78] sm:$0xff] %vm1439_vm1, %v1422_v21  ;;  %v1968_v0 = vadd.f32 %v1926_v62, %v1882_v40  ;;  %v1241_v1 = vpop.f32.mrb[17].mxu0  ;;  %v1883_v2 = vpop.f32.mrb[18].mxu1 }
 0x13d   : > { %1453 = vst.msk [vmem:[%s2694_s6 + $0x68] sm:$0xff] %vm1439_vm1, %v1420_v61  ;;  %v1969_v4 = vadd.f32 %v1241_v1, %v839_v41  ;;  %v1927_v6 = vpop.f32.mrb[18].mxu0  ;;  %v842_v9 = vpop.f32.mrb[19].mxu1  ;;  %v1402_v61 = vld [vmem:[%s2677_s24 + $0xd8] sm:$0xff]  ;;  %v1400_v1 = vld [vmem:[%s2677_s24 + $0xc8] sm:$0xff] }
 0x13e   : > { %v1361_v10 = vadd.f32 %v1968_v0, %v2682_v45  ;;  %v1970_v23 = vadd.f32 %v1927_v6, %v1883_v2  ;;  %v1244_v14 = vpop.f32.mrb[19].mxu0 }
 0x13f   : > { %v1359_v15 = vadd.f32 %v1969_v4, %v2682_v45  ;;  %v1971_v19 = vadd.f32 %v1244_v14, %v842_v9 }
 0x140   : > { %v1425_v20 = vadd.f32 %v1393_v3, %v1361_v10  ;;  %v1362_v22 = vadd.f32 %v1970_v23, %v2682_v45 }
 0x141   : > { %v1423_v31 = vadd.f32 %v1391_v11, %v1359_v15  ;;  %v1360_v32 = vadd.f32 %v1971_v19, %v2682_v45 }
 0x142   : > { %1458 = vst.msk [vmem:[%s2694_s6 + $0x90] sm:$0xff] %vm1439_vm1, %v1425_v20  ;;  %v1426_v37 = vadd.f32 %v1394_v16, %v1362_v22  ;;  %v1886_v38 = vpop.f32.mrb[20].mxu1  ;;  %v1405_v16 = vld [vmem:[%s2677_s24 + $0xf0] sm:$0xff] }
 0x143   : > { %1456 = vst.msk [vmem:[%s2694_s6 + $0x80] sm:$0xff] %vm1439_vm1, %v1423_v31  ;;  %v1424_v39 = vadd.f32 %v1392_v26, %v1360_v32  ;;  %v1930_v43 = vpop.f32.mrb[20].mxu0  ;;  %v855_v44 = vpop.f32.mrb[21].mxu1  ;;  %v1403_v31 = vld [vmem:[%s2677_s24 + $0xe0] sm:$0xff] }
 0x144   : > { %1459 = vst.msk [vmem:[%s2694_s6 + $0x98] sm:$0xff] %vm1439_vm1, %v1426_v37  ;;  %v1972_v47 = vadd.f32 %v1930_v43, %v1886_v38  ;;  %v1257_v48 = vpop.f32.mrb[21].mxu0  ;;  %v1887_v60 = vpop.f32.mrb[22].mxu1 }
 0x145   : > { %1457 = vst.msk [vmem:[%s2694_s6 + $0x88] sm:$0xff] %vm1439_vm1, %v1424_v39  ;;  %v1973_v17 = vadd.f32 %v1257_v48, %v855_v44  ;;  %v1931_v18 = vpop.f32.mrb[22].mxu0  ;;  %v858_v5 = vpop.f32.mrb[23].mxu1  ;;  %v1406_v39 = vld [vmem:[%s2677_s24 + $0xf8] sm:$0xff]  ;;  %v1404_v48 = vld [vmem:[%s2677_s24 + $0xe8] sm:$0xff] }
 0x146   : > { %v1365_v24 = vadd.f32 %v1972_v47, %v2682_v45  ;;  %v1974_v27 = vadd.f32 %v1931_v18, %v1887_v60  ;;  %v1260_v28 = vpop.f32.mrb[23].mxu0 }
 0x147   : > { %v1363_v29 = vadd.f32 %v1973_v17, %v2682_v45  ;;  %v1975_v42 = vadd.f32 %v1260_v28, %v858_v5 }
 0x148   : > { %v1429_v7 = vadd.f32 %v1397_v13, %v1365_v24  ;;  %v1366_v33 = vadd.f32 %v1974_v27, %v2682_v45 }
 0x149   : > { %v1427_v34 = vadd.f32 %v1395_v25, %v1363_v29  ;;  %v1364_v50 = vadd.f32 %v1975_v42, %v2682_v45 }
 0x14a   : > { %1462 = vst.msk [vmem:[%s2694_s6 + $0xb0] sm:$0xff] %vm1439_vm1, %v1429_v7  ;;  %v1430_v51 = vadd.f32 %v1398_v30, %v1366_v33  ;;  %v1890_v52 = vpop.f32.mrb[24].mxu1 }
 0x14b   : > { %1460 = vst.msk [vmem:[%s2694_s6 + $0xa0] sm:$0xff] %vm1439_vm1, %v1427_v34  ;;  %v1428_v49 = vadd.f32 %v1396_v46, %v1364_v50  ;;  %v1934_v53 = vpop.f32.mrb[24].mxu0  ;;  %v871_v54 = vpop.f32.mrb[25].mxu1 }
 0x14c   : > { %1463 = vst.msk [vmem:[%s2694_s6 + $0xb8] sm:$0xff] %vm1439_vm1, %v1430_v51  ;;  %v1976_v55 = vadd.f32 %v1934_v53, %v1890_v52  ;;  %v1273_v56 = vpop.f32.mrb[25].mxu0  ;;  %v1891_v57 = vpop.f32.mrb[26].mxu1 }
 0x14d   : > { %1461 = vst.msk [vmem:[%s2694_s6 + $0xa8] sm:$0xff] %vm1439_vm1, %v1428_v49  ;;  %v1977_v35 = vadd.f32 %v1273_v56, %v871_v54  ;;  %v1935_v12 = vpop.f32.mrb[26].mxu0  ;;  %v874_v59 = vpop.f32.mrb[27].mxu1 }
 0x14e   : > { %v1369_v36 = vadd.f32 %v1976_v55, %v2682_v45  ;;  %v1978_v8 = vadd.f32 %v1935_v12, %v1891_v57  ;;  %v1276_v21 = vpop.f32.mrb[27].mxu0 }
 0x14f   : > { %v1367_v40 = vadd.f32 %v1977_v35, %v2682_v45  ;;  %v1979_v62 = vadd.f32 %v1276_v21, %v874_v59 }
 0x150   : > { %v1433_v41 = vadd.f32 %v1401_v58, %v1369_v36  ;;  %v1370_v0 = vadd.f32 %v1978_v8, %v2682_v45 }
 0x151   : > { %v1431_v2 = vadd.f32 %v1399_v63, %v1367_v40  ;;  %v1368_v3 = vadd.f32 %v1979_v62, %v2682_v45 }
 0x152   : > { %1466 = vst.msk [vmem:[%s2694_s6 + $0xd0] sm:$0xff] %vm1439_vm1, %v1433_v41  ;;  %v1434_v4 = vadd.f32 %v1402_v61, %v1370_v0  ;;  %v1894_v6 = vpop.f32.mrb[28].mxu1 }
 0x153   : > { %1464 = vst.msk [vmem:[%s2694_s6 + $0xc0] sm:$0xff] %vm1439_vm1, %v1431_v2  ;;  %v1432_v9 = vadd.f32 %v1400_v1, %v1368_v3  ;;  %v1938_v10 = vpop.f32.mrb[28].mxu0  ;;  %v887_v11 = vpop.f32.mrb[29].mxu1 }
 0x154   : > { %1467 = vst.msk [vmem:[%s2694_s6 + $0xd8] sm:$0xff] %vm1439_vm1, %v1434_v4  ;;  %v1980_v23 = vadd.f32 %v1938_v10, %v1894_v6  ;;  %v1289_v14 = vpop.f32.mrb[29].mxu0  ;;  %v1895_v15 = vpop.f32.mrb[30].mxu1 }
 0x155   : > { %1465 = vst.msk [vmem:[%s2694_s6 + $0xc8] sm:$0xff] %vm1439_vm1, %v1432_v9  ;;  %v1981_v19 = vadd.f32 %v1289_v14, %v887_v11  ;;  %v1939_v20 = vpop.f32.mrb[30].mxu0  ;;  %v890_v22 = vpop.f32.mrb[31].mxu1 }
 0x156   : > { %v1373_v26 = vadd.f32 %v1980_v23, %v2682_v45  ;;  %v1982_v32 = vadd.f32 %v1939_v20, %v1895_v15  ;;  %v1292_v37 = vpop.f32.mrb[31].mxu0 }
 0x157   : > { %v1371_v38 = vadd.f32 %v1981_v19, %v2682_v45  ;;  %v1983_v43 = vadd.f32 %v1292_v37, %v890_v22 }
 0x158   : > { %v1437_v44 = vadd.f32 %v1405_v16, %v1373_v26  ;;  %v1374_v47 = vadd.f32 %v1982_v32, %v2682_v45 }
 0x159   : > { %v1435_v60 = vadd.f32 %v1403_v31, %v1371_v38  ;;  %v1372_v13 = vadd.f32 %v1983_v43, %v2682_v45 }
 0x15a   : > { %1470 = vst.msk [vmem:[%s2694_s6 + $0xf0] sm:$0xff] %vm1439_vm1, %v1437_v44  ;;  %v1438_v17 = vadd.f32 %v1406_v39, %v1374_v47 }
 0x15b   : > { %1468 = vst.msk [vmem:[%s2694_s6 + $0xe0] sm:$0xff] %vm1439_vm1, %v1435_v60  ;;  %v1436_v18 = vadd.f32 %v1404_v48, %v1372_v13 }
 0x15c   : > { %1471 = vst.msk [vmem:[%s2694_s6 + $0xf8] sm:$0xff] %vm1439_vm1, %v1438_v17 }
 0x15d   : > { %1469 = vst.msk [vmem:[%s2694_s6 + $0xe8] sm:$0xff] %vm1439_vm1, %v1436_v18 }
 0x15e   : > { %2105 = shalt.err (!%p2102_p6)
}
 0x15f   : > { %s2106_s14 = scalar_lea.hbm %s2823_s11, 4096  ;;  %s2110_s26 = scalar_lea.hbm %s2885_s4, 8192 }
 0x160   : > { %p2107_p7 = scmp.ne.s32.totalorder %s2823_s11, %s2106_s14  ;;  %p2111_p11 = scmp.lt.u32.totalorder %s2823_s11, %s2885_s4 }
 0x161   : > { %p2112_p12 = scmp.lt.u32.totalorder %s2110_s26, %s2106_s14  ;;  %p2114_p0 = scmp.lt.u32.totalorder %s2106_s14, %s2823_s11 }
 0x162   : > { %p2108_p9 = pnand %p2107_p7, %p2241_p4 }
 0x163   : > { %p2113_p13 = por %p2112_p12, %p2111_p11 }
 0x164   : > { %p2109_p10 = pneg %p2108_p9 }
 0x165   : > { %p2115_p1 = por %p2114_p0, %p2113_p13 }
 0x167   : > { %p2116_p2 = pnand %p2115_p1, %p2109_p10 }
 0x169   : > { %2119 = shalt.err (!%p2116_p2)
}
 0x16a   : > { %s2174_s6 = smov 128   ;;  %s2175_s7 = smov 8  }
 0x16b   : > { %2016 = dma.vmem_to_hbm [thread:$0]  (%p2241_p4), %s2825_s5, 4096, %s2823_s11, %s2835_s18, %s2174_s6, %s2174_s6, %s2175_s7  }
 0x16c PF: > { %p2022_p3 = scmp.ge.s32.totalorder %s2170_s20, 2  ;;  %s1502_s9 = sand.u32 1, %s2150_s15  }
 0x16d   : > { %s1503_s10 = scalar_lea.sflag [#allocation3], %s1502_s9 }
 0x16e   : > { %p2019_p5 = pnand %p2022_p3, %p2248_p8 }
 0x170   : > { %2145 = dma.done.wait (!%p2019_p5), %s1503_s10, 4096  }
 0x171   : > { %2147 = vsyncadd (!%p2019_p5), %s1503_s10, 4294963200  ;;  %s17_s20 = sadd.s32 1, %s2170_s20   ;;  %s2888_s15 = smov %s2154_s16 }
 0x172   : > { %p14_p6 = scmp.ge.s32.totalorder %s17_s20, 4   ;;  %s2889_s16 = smov %s2158_s17 }
 0x173   : > { %s2890_s17 = smov %s2254_s28  ;;  %s2891_s18 = smov %s2166_s19 }
 0x174   : > { %s2892_s19 = smov %s2894_s23  ;;  %16 = sbr.rel (!%p14_p6) target bundleno = 4 (0x4), region = 82 }
 0x17b   :  { %1508 = vsyncpa [#allocation3], 1 }
 0x17c   :  { %1510 = vsyncpa [#allocation3 + $0x1], 1 }

</bundles_post_ra>
